<compile_context>
chip_gen: v7x
topology: tpu7x:2x2x1
jax: 0.10.0
libtpu: 0.0.40
codegen_flags: <defaults>
</compile_context>

<pallas_src>
import functools

import jax
import jax.numpy as jnp
from jax import lax
from jax.experimental import pallas as pl
from jax.experimental.pallas import tpu as pltpu

KH = 10        # conv kernel height; every layer uses a (10, 1) kernel
POOL = 3       # MaxPool2d((3, 1))
NCLS = 4
BN_EPS = 1e-5
AFF_W = 200    # packed affine row width = max channel count (conv4)

# (Cin, Cout, pad) for conv1..conv4 -- matches nn.Conv2d(..., (10,1), padding=(p,0))
_CONV_CFG = [(22, 25, 6), (25, 50, 5), (50, 100, 6), (100, 200, 6)]


# ----------------------------------------------------------------------------
# Fused whole-network kernel (single invocation, no grid)
# ----------------------------------------------------------------------------
def _fused_forward_kernel(layer_meta, batch, width,
                          x_ref, w1_ref, w2_ref, w3_ref, w4_ref,
                          aff_ref, fcw_ref, o_ref):
    """layer_meta: static tuple of (pad, hpool, cout) per conv layer.

    x_ref   : (H, W*B, Cin) f32 channels-last input, row s = w*B + b.
    wN_ref  : (KH, Cin, Cout) bf16 tight conv weights.
    aff_ref : (13, AFF_W) f32, rows [bias, bn_scale, bn_shift] x 4 layers, row 12 = fc bias.
    fcw_ref : (W, C_last, NCLS) f32, fcw[w, c, k] = fc1.weight[k, c*W + w].
    """
    w_refs = (w1_ref, w2_ref, w3_ref, w4_ref)
    aff = aff_ref[...]

    def elu(z):  # PyTorch ELU(alpha=1), f32
        return jnp.where(z > 0, z, jnp.exp(jnp.minimum(z, 0.0)) - 1.0)

    x = x_ref[...]                                    # (H, S, Cin) f32
    for li, (pad, hpool, cout) in enumerate(layer_meta):
        hin, s, cin = x.shape
        r = POOL * hpool                              # conv rows consumed by floor-mode pooling

        # zero-pad along H; bf16 only for the MXU operands
        xb = x.astype(jnp.bfloat16)
        zpad = jnp.zeros((pad, s, cin), jnp.bfloat16)
        xp = jnp.concatenate([zpad, xb, zpad], axis=0)

        # Conv as KH accumulated matmuls with tight K = Cin (no im2col buffer,
        # no zero-padded weight rows), f32 accumulation.
        acc = None
        for dh in range(KH):
            lhs = xp[dh:dh + r].reshape(r * s, cin)               # (r*s, Cin) bf16
            part = jnp.dot(lhs, w_refs[li][dh],                   # (Cin, Cout) bf16
                           preferred_element_type=jnp.float32)
            acc = part if acc is None else acc + part

        bias = aff[3 * li + 0:3 * li + 1, :cout]      # (1, Cout)
        scale = aff[3 * li + 1:3 * li + 2, :cout]     # BN eval scale
        shift = aff[3 * li + 2:3 * li + 3, :cout]     # BN eval shift

        a = elu(acc + bias).reshape(r, s, cout)       # f32 elementwise (v5e-safe)

        # MaxPool2d((3, 1)) -- statically unrolled over pool windows
        pooled = jnp.stack(
            [jnp.maximum(a[POOL * hp],
                         jnp.maximum(a[POOL * hp + 1], a[POOL * hp + 2]))
             for hp in range(hpool)],
            axis=0)                                   # (hpool, s, Cout)

        x = pooled * scale + shift                    # BatchNorm2d eval; Dropout = identity

    # ---- flatten + Linear(800, 4) + Softmax ----------------------------------
    y = x[0]                                          # (S, C_last) f32; final hpool == 1
    fcb = aff[12:13, :NCLS]                           # (1, NCLS)
    logits = fcb
    for wi in range(width):                           # W small per-column dots
        logits = logits + jnp.dot(y[wi * batch:(wi + 1) * batch], fcw_ref[wi],
                                  preferred_element_type=jnp.float32)

    m = jnp.max(logits, axis=1, keepdims=True)
    e = jnp.exp(logits - m)
    o_ref[...] = e / jnp.sum(e, axis=1, keepdims=True)   # exact softmax divide


# ----------------------------------------------------------------------------
# Parameter layout prep (done once, outside the hot path)
# ----------------------------------------------------------------------------
def _prepare_operands(params, width):
    """Torch-layout parameters -> tight, kernel-layout operands."""
    w_ops = []
    aff_rows = []
    for layer in params["convs"]:
        w = layer["weight"][..., 0]                           # (Cout, Cin, KH)
        cout = w.shape[0]
        # (KH, Cin, Cout) bf16 -- tight, no channel padding.
        w_ops.append(jnp.transpose(w, (2, 1, 0)).astype(jnp.bfloat16))
        scale = layer["bn_gamma"] / jnp.sqrt(layer["bn_var"] + BN_EPS)
        shift = layer["bn_beta"] - layer["bn_mean"] * scale
        for vec in (layer["bias"], scale, shift):
            aff_rows.append(jnp.pad(vec, (0, AFF_W - cout)))
    aff_rows.append(jnp.pad(params["fc_b"], (0, AFF_W - NCLS)))
    aff = jnp.stack(aff_rows, axis=0)                         # (13, AFF_W) f32

    c_last = params["convs"][-1]["weight"].shape[0]
    # torch.flatten of (B, C, 1, W) gives feature f = c*W + w.
    fw = params["fc_w"].reshape(NCLS, c_last, width)          # [k, c, w]
    fw = jnp.transpose(fw, (2, 1, 0))                         # (W, C_last, NCLS)
    return w_ops + [aff, fw]


def build_forward(params, batch, height, width):
    """Returns a jitted fn: x (B, Cin0, H, W) NCHW float32 -> (B, NCLS) probs."""
    cin0 = params["convs"][0]["weight"].shape[1]

    # static H chain through conv / floor-mode MaxPool((3,1))
    layer_meta = []
    h = height
    for layer in params["convs"]:
        pad = layer["pad"]
        cout = layer["weight"].shape[0]
        hout = h + 2 * pad - KH + 1
        hpool = hout // POOL
        layer_meta.append((pad, hpool, cout))
        h = hpool
    c_last = params["convs"][-1]["weight"].shape[0]
    assert h == 1 and c_last * width * h == params["fc_w"].shape[1], (
        "conv/pool chain inconsistent with the Linear layer")

    opnds = _prepare_operands(params, width)
    kernel = functools.partial(_fused_forward_kernel, tuple(layer_meta), batch, width)

    fused = pl.pallas_call(
        kernel,
        out_shape=jax.ShapeDtypeStruct((batch, NCLS), jnp.float32),
        in_specs=[pl.BlockSpec(memory_space=pltpu.MemorySpace.VMEM)] * (1 + len(opnds)),
        out_specs=pl.BlockSpec(memory_space=pltpu.MemorySpace.VMEM),
    )

    @jax.jit
    def forward(x):
        # NCHW -> (H, W*B, Cin): channels-last, rows ordered (w, b); no lane pad.
        xt = jnp.transpose(x, (2, 3, 0, 1)).reshape(height, width * batch, cin0)
        return fused(xt, *opnds)

    return forward


# ----------------------------------------------------------------------------
# Pure-JAX f32 reference (mirrors the PyTorch eval forward)
# ----------------------------------------------------------------------------
def _reference_forward(params, x):
    h = x
    for layer in params["convs"]:
        p = layer["pad"]
        h = lax.conv_general_dilated(h, layer["weight"], window_strides=(1, 1),
                                     padding=((p, p), (0, 0)),
                                     dimension_numbers=("NCHW", "OIHW", "NCHW"))
        h = h + layer["bias"][None, :, None, None]
        h = jnp.where(h > 0, h, jnp.exp(jnp.minimum(h, 0.0)) - 1.0)          # ELU
        b_, c_, hh, ww = h.shape
        hp = hh // POOL
        h = h[:, :, :hp * POOL].reshape(b_, c_, hp, POOL, ww).max(axis=3)    # MaxPool (3,1)
        scale = layer["bn_gamma"] / jnp.sqrt(layer["bn_var"] + BN_EPS)
        shift = layer["bn_beta"] - layer["bn_mean"] * scale
        h = h * scale[None, :, None, None] + shift[None, :, None, None]      # BN eval
    flat = h.reshape(h.shape[0], -1)
    logits = flat @ params["fc_w"].T + params["fc_b"]
    return jax.nn.softmax(logits, axis=1)


# ----------------------------------------------------------------------------
# Deterministic synthetic parameters (shapes mirror the PyTorch module)
# ----------------------------------------------------------------------------
def init_params(key):
    convs = []
    for li, (cin, cout, pad) in enumerate(_CONV_CFG):
        k = jax.random.fold_in(key, li)
        kw, kb, kg, kbe, km, kv = jax.random.split(k, 6)
        convs.append(dict(
            pad=pad,
            weight=0.05 * jax.random.normal(kw, (cout, cin, KH, 1), jnp.float32),
            bias=0.05 * jax.random.normal(kb, (cout,), jnp.float32),
            bn_gamma=1.0 + 0.1 * jax.random.normal(kg, (cout,), jnp.float32),
            bn_beta=0.1 * jax.random.normal(kbe, (cout,), jnp.float32),
            bn_mean=0.1 * jax.random.normal(km, (cout,), jnp.float32),
            bn_var=jax.random.uniform(kv, (cout,), jnp.float32, 0.5, 1.5),
        ))
    kfw, kfb = jax.random.split(jax.random.fold_in(key, 100))
    return dict(
        convs=convs,
        fc_w=0.05 * jax.random.normal(kfw, (NCLS, 800), jnp.float32),  # nn.Linear(800,4).weight
        fc_b=0.05 * jax.random.normal(kfb, (NCLS,), jnp.float32),
    )


# ----------------------------------------------------------------------------
if __name__ == "__main__":
    key = jax.random.PRNGKey(0)
    pkey, xkey = jax.random.split(key)
    params = init_params(pkey)

    # (B=2, C=22, H=16, W=4): the conv/pool chain yields (2, 200, 1, 4)
    # -> flatten 800, consistent with nn.Linear(800, 4).
    B, C, H, W = 2, 22, 16, 4
    x = jax.random.normal(xkey, (B, C, H, W), dtype=jnp.float32)

    forward = build_forward(params, B, H, W)
    out = jax.block_until_ready(forward(x))

    assert out.shape == (B, NCLS), out.shape
    assert bool(jnp.all(jnp.isfinite(out)))
    # exact softmax divide -> rows sum to 1 up to f32 rounding
    assert bool(jnp.allclose(jnp.sum(out, axis=1), 1.0, atol=1e-5))
    # cross-check against the pure-f32 JAX reference (bf16 matmul operands ->
    # small, bounded deviation on the output probabilities)
    ref = jax.block_until_ready(_reference_forward(params, x))
    assert bool(jnp.allclose(out, ref, atol=5e-2)), jnp.max(jnp.abs(out - ref))
    print("KERNEL_OK")
</pallas_src>

<mosaic_0001>
module attributes {stable_mosaic.version = 11 : i64} {
  func.func @_fused_forward_kernel(%arg0: memref<16x8x22xf32, #tpu.memory_space<vmem>>, %arg1: memref<10x22x25xbf16, #tpu.memory_space<vmem>>, %arg2: memref<10x25x50xbf16, #tpu.memory_space<vmem>>, %arg3: memref<10x50x100xbf16, #tpu.memory_space<vmem>>, %arg4: memref<10x100x200xbf16, #tpu.memory_space<vmem>>, %arg5: memref<13x200xf32, #tpu.memory_space<vmem>>, %arg6: memref<4x200x4xf32, #tpu.memory_space<vmem>>, %arg7: memref<2x4xf32, #tpu.memory_space<vmem>>) attributes {dimension_semantics = [], scalar_prefetch = 0 : i64, scratch_operands = 0 : i64, tpu.core_type = #tpu.core_type<tc>} {
    %c0 = arith.constant 0 : index
    %c0_0 = arith.constant 0 : index
    %0 = vector.load %arg5[%c0, %c0_0] : memref<13x200xf32, #tpu.memory_space<vmem>>, vector<13x200xf32>
    %c0_1 = arith.constant 0 : index
    %c0_2 = arith.constant 0 : index
    %c0_3 = arith.constant 0 : index
    %1 = vector.load %arg0[%c0_1, %c0_2, %c0_3] : memref<16x8x22xf32, #tpu.memory_space<vmem>>, vector<16x8x22xf32>
    %2 = arith.truncf %1 : vector<16x8x22xf32> to vector<16x8x22xbf16>
    %cst = arith.constant 0.000000e+00 : bf16
    %3 = vector.broadcast %cst : bf16 to vector<6x8x22xbf16>
    %4 = tpu.concatenate %3, %2, %3 in 0 : vector<6x8x22xbf16>, vector<16x8x22xbf16>, vector<6x8x22xbf16> -> vector<28x8x22xbf16>
    %5 = vector.extract_strided_slice %4 {offsets = [0, 0, 0], sizes = [18, 8, 22], strides = [1, 1, 1]} : vector<28x8x22xbf16> to vector<18x8x22xbf16>
    %6 = vector.shape_cast %5 : vector<18x8x22xbf16> to vector<144x22xbf16>
    %c0_4 = arith.constant 0 : index
    %c0_5 = arith.constant 0 : index
    %c0_6 = arith.constant 0 : index
    %7 = vector.load %arg1[%c0_4, %c0_5, %c0_6] : memref<10x22x25xbf16, #tpu.memory_space<vmem>>, vector<1x22x25xbf16>
    %8 = vector.shape_cast %7 : vector<1x22x25xbf16> to vector<22x25xbf16>
    %cst_7 = arith.constant dense<0.000000e+00> : vector<144x25xf32>
    %9 = tpu.matmul %6, %8, %cst_7 {dimension_numbers = #tpu.dot_dimension_numbers<[1], [0], [0], [1], [0, 0, 1, 1], [], []>} : vector<144x22xbf16>, vector<22x25xbf16>, vector<144x25xf32> -> vector<144x25xf32>
    %10 = vector.extract_strided_slice %4 {offsets = [1, 0, 0], sizes = [18, 8, 22], strides = [1, 1, 1]} : vector<28x8x22xbf16> to vector<18x8x22xbf16>
    %11 = vector.shape_cast %10 : vector<18x8x22xbf16> to vector<144x22xbf16>
    %c1 = arith.constant 1 : index
    %c0_8 = arith.constant 0 : index
    %c0_9 = arith.constant 0 : index
    %12 = vector.load %arg1[%c1, %c0_8, %c0_9] : memref<10x22x25xbf16, #tpu.memory_space<vmem>>, vector<1x22x25xbf16>
    %13 = vector.shape_cast %12 : vector<1x22x25xbf16> to vector<22x25xbf16>
    %cst_10 = arith.constant dense<0.000000e+00> : vector<144x25xf32>
    %14 = tpu.matmul %11, %13, %cst_10 {dimension_numbers = #tpu.dot_dimension_numbers<[1], [0], [0], [1], [0, 0, 1, 1], [], []>} : vector<144x22xbf16>, vector<22x25xbf16>, vector<144x25xf32> -> vector<144x25xf32>
    %15 = arith.addf %9, %14 : vector<144x25xf32>
    %16 = vector.extract_strided_slice %4 {offsets = [2, 0, 0], sizes = [18, 8, 22], strides = [1, 1, 1]} : vector<28x8x22xbf16> to vector<18x8x22xbf16>
    %17 = vector.shape_cast %16 : vector<18x8x22xbf16> to vector<144x22xbf16>
    %c2 = arith.constant 2 : index
    %c0_11 = arith.constant 0 : index
    %c0_12 = arith.constant 0 : index
    %18 = vector.load %arg1[%c2, %c0_11, %c0_12] : memref<10x22x25xbf16, #tpu.memory_space<vmem>>, vector<1x22x25xbf16>
    %19 = vector.shape_cast %18 : vector<1x22x25xbf16> to vector<22x25xbf16>
    %cst_13 = arith.constant dense<0.000000e+00> : vector<144x25xf32>
    %20 = tpu.matmul %17, %19, %cst_13 {dimension_numbers = #tpu.dot_dimension_numbers<[1], [0], [0], [1], [0, 0, 1, 1], [], []>} : vector<144x22xbf16>, vector<22x25xbf16>, vector<144x25xf32> -> vector<144x25xf32>
    %21 = arith.addf %15, %20 : vector<144x25xf32>
    %22 = vector.extract_strided_slice %4 {offsets = [3, 0, 0], sizes = [18, 8, 22], strides = [1, 1, 1]} : vector<28x8x22xbf16> to vector<18x8x22xbf16>
    %23 = vector.shape_cast %22 : vector<18x8x22xbf16> to vector<144x22xbf16>
    %c3 = arith.constant 3 : index
    %c0_14 = arith.constant 0 : index
    %c0_15 = arith.constant 0 : index
    %24 = vector.load %arg1[%c3, %c0_14, %c0_15] : memref<10x22x25xbf16, #tpu.memory_space<vmem>>, vector<1x22x25xbf16>
    %25 = vector.shape_cast %24 : vector<1x22x25xbf16> to vector<22x25xbf16>
    %cst_16 = arith.constant dense<0.000000e+00> : vector<144x25xf32>
    %26 = tpu.matmul %23, %25, %cst_16 {dimension_numbers = #tpu.dot_dimension_numbers<[1], [0], [0], [1], [0, 0, 1, 1], [], []>} : vector<144x22xbf16>, vector<22x25xbf16>, vector<144x25xf32> -> vector<144x25xf32>
    %27 = arith.addf %21, %26 : vector<144x25xf32>
    %28 = vector.extract_strided_slice %4 {offsets = [4, 0, 0], sizes = [18, 8, 22], strides = [1, 1, 1]} : vector<28x8x22xbf16> to vector<18x8x22xbf16>
    %29 = vector.shape_cast %28 : vector<18x8x22xbf16> to vector<144x22xbf16>
    %c4 = arith.constant 4 : index
    %c0_17 = arith.constant 0 : index
    %c0_18 = arith.constant 0 : index
    %30 = vector.load %arg1[%c4, %c0_17, %c0_18] : memref<10x22x25xbf16, #tpu.memory_space<vmem>>, vector<1x22x25xbf16>
    %31 = vector.shape_cast %30 : vector<1x22x25xbf16> to vector<22x25xbf16>
    %cst_19 = arith.constant dense<0.000000e+00> : vector<144x25xf32>
    %32 = tpu.matmul %29, %31, %cst_19 {dimension_numbers = #tpu.dot_dimension_numbers<[1], [0], [0], [1], [0, 0, 1, 1], [], []>} : vector<144x22xbf16>, vector<22x25xbf16>, vector<144x25xf32> -> vector<144x25xf32>
    %33 = arith.addf %27, %32 : vector<144x25xf32>
    %34 = vector.extract_strided_slice %4 {offsets = [5, 0, 0], sizes = [18, 8, 22], strides = [1, 1, 1]} : vector<28x8x22xbf16> to vector<18x8x22xbf16>
    %35 = vector.shape_cast %34 : vector<18x8x22xbf16> to vector<144x22xbf16>
    %c5 = arith.constant 5 : index
    %c0_20 = arith.constant 0 : index
    %c0_21 = arith.constant 0 : index
    %36 = vector.load %arg1[%c5, %c0_20, %c0_21] : memref<10x22x25xbf16, #tpu.memory_space<vmem>>, vector<1x22x25xbf16>
    %37 = vector.shape_cast %36 : vector<1x22x25xbf16> to vector<22x25xbf16>
    %cst_22 = arith.constant dense<0.000000e+00> : vector<144x25xf32>
    %38 = tpu.matmul %35, %37, %cst_22 {dimension_numbers = #tpu.dot_dimension_numbers<[1], [0], [0], [1], [0, 0, 1, 1], [], []>} : vector<144x22xbf16>, vector<22x25xbf16>, vector<144x25xf32> -> vector<144x25xf32>
    %39 = arith.addf %33, %38 : vector<144x25xf32>
    %40 = vector.extract_strided_slice %4 {offsets = [6, 0, 0], sizes = [18, 8, 22], strides = [1, 1, 1]} : vector<28x8x22xbf16> to vector<18x8x22xbf16>
    %41 = vector.shape_cast %40 : vector<18x8x22xbf16> to vector<144x22xbf16>
    %c6 = arith.constant 6 : index
    %c0_23 = arith.constant 0 : index
    %c0_24 = arith.constant 0 : index
    %42 = vector.load %arg1[%c6, %c0_23, %c0_24] : memref<10x22x25xbf16, #tpu.memory_space<vmem>>, vector<1x22x25xbf16>
    %43 = vector.shape_cast %42 : vector<1x22x25xbf16> to vector<22x25xbf16>
    %cst_25 = arith.constant dense<0.000000e+00> : vector<144x25xf32>
    %44 = tpu.matmul %41, %43, %cst_25 {dimension_numbers = #tpu.dot_dimension_numbers<[1], [0], [0], [1], [0, 0, 1, 1], [], []>} : vector<144x22xbf16>, vector<22x25xbf16>, vector<144x25xf32> -> vector<144x25xf32>
    %45 = arith.addf %39, %44 : vector<144x25xf32>
    %46 = vector.extract_strided_slice %4 {offsets = [7, 0, 0], sizes = [18, 8, 22], strides = [1, 1, 1]} : vector<28x8x22xbf16> to vector<18x8x22xbf16>
    %47 = vector.shape_cast %46 : vector<18x8x22xbf16> to vector<144x22xbf16>
    %c7 = arith.constant 7 : index
    %c0_26 = arith.constant 0 : index
    %c0_27 = arith.constant 0 : index
    %48 = vector.load %arg1[%c7, %c0_26, %c0_27] : memref<10x22x25xbf16, #tpu.memory_space<vmem>>, vector<1x22x25xbf16>
    %49 = vector.shape_cast %48 : vector<1x22x25xbf16> to vector<22x25xbf16>
    %cst_28 = arith.constant dense<0.000000e+00> : vector<144x25xf32>
    %50 = tpu.matmul %47, %49, %cst_28 {dimension_numbers = #tpu.dot_dimension_numbers<[1], [0], [0], [1], [0, 0, 1, 1], [], []>} : vector<144x22xbf16>, vector<22x25xbf16>, vector<144x25xf32> -> vector<144x25xf32>
    %51 = arith.addf %45, %50 : vector<144x25xf32>
    %52 = vector.extract_strided_slice %4 {offsets = [8, 0, 0], sizes = [18, 8, 22], strides = [1, 1, 1]} : vector<28x8x22xbf16> to vector<18x8x22xbf16>
    %53 = vector.shape_cast %52 : vector<18x8x22xbf16> to vector<144x22xbf16>
    %c8 = arith.constant 8 : index
    %c0_29 = arith.constant 0 : index
    %c0_30 = arith.constant 0 : index
    %54 = vector.load %arg1[%c8, %c0_29, %c0_30] : memref<10x22x25xbf16, #tpu.memory_space<vmem>>, vector<1x22x25xbf16>
    %55 = vector.shape_cast %54 : vector<1x22x25xbf16> to vector<22x25xbf16>
    %cst_31 = arith.constant dense<0.000000e+00> : vector<144x25xf32>
    %56 = tpu.matmul %53, %55, %cst_31 {dimension_numbers = #tpu.dot_dimension_numbers<[1], [0], [0], [1], [0, 0, 1, 1], [], []>} : vector<144x22xbf16>, vector<22x25xbf16>, vector<144x25xf32> -> vector<144x25xf32>
    %57 = arith.addf %51, %56 : vector<144x25xf32>
    %58 = vector.extract_strided_slice %4 {offsets = [9, 0, 0], sizes = [18, 8, 22], strides = [1, 1, 1]} : vector<28x8x22xbf16> to vector<18x8x22xbf16>
    %59 = vector.shape_cast %58 : vector<18x8x22xbf16> to vector<144x22xbf16>
    %c9 = arith.constant 9 : index
    %c0_32 = arith.constant 0 : index
    %c0_33 = arith.constant 0 : index
    %60 = vector.load %arg1[%c9, %c0_32, %c0_33] : memref<10x22x25xbf16, #tpu.memory_space<vmem>>, vector<1x22x25xbf16>
    %61 = vector.shape_cast %60 : vector<1x22x25xbf16> to vector<22x25xbf16>
    %cst_34 = arith.constant dense<0.000000e+00> : vector<144x25xf32>
    %62 = tpu.matmul %59, %61, %cst_34 {dimension_numbers = #tpu.dot_dimension_numbers<[1], [0], [0], [1], [0, 0, 1, 1], [], []>} : vector<144x22xbf16>, vector<22x25xbf16>, vector<144x25xf32> -> vector<144x25xf32>
    %63 = arith.addf %57, %62 : vector<144x25xf32>
    %64 = vector.extract_strided_slice %0 {offsets = [0, 0], sizes = [1, 25], strides = [1, 1]} : vector<13x200xf32> to vector<1x25xf32>
    %65 = vector.extract_strided_slice %0 {offsets = [1, 0], sizes = [1, 25], strides = [1, 1]} : vector<13x200xf32> to vector<1x25xf32>
    %66 = vector.extract_strided_slice %0 {offsets = [2, 0], sizes = [1, 25], strides = [1, 1]} : vector<13x200xf32> to vector<1x25xf32>
    %67 = vector.broadcast %64 : vector<1x25xf32> to vector<144x25xf32>
    %68 = arith.addf %63, %67 : vector<144x25xf32>
    %cst_35 = arith.constant 0.000000e+00 : f32
    %69 = vector.broadcast %cst_35 : f32 to vector<144x25xf32>
    %70 = arith.cmpf ogt, %68, %69 : vector<144x25xf32>
    %cst_36 = arith.constant 0.000000e+00 : f32
    %71 = vector.broadcast %cst_36 : f32 to vector<144x25xf32>
    %72 = arith.minimumf %68, %71 : vector<144x25xf32>
    %73 = math.exp %72 : vector<144x25xf32>
    %cst_37 = arith.constant 1.000000e+00 : f32
    %74 = vector.broadcast %cst_37 : f32 to vector<144x25xf32>
    %75 = arith.subf %73, %74 : vector<144x25xf32>
    %76 = arith.select %70, %68, %75 : vector<144x25xi1>, vector<144x25xf32>
    %77 = vector.shape_cast %76 : vector<144x25xf32> to vector<18x8x25xf32>
    %78 = vector.extract_strided_slice %77 {offsets = [0, 0, 0], sizes = [1, 8, 25], strides = [1, 1, 1]} : vector<18x8x25xf32> to vector<1x8x25xf32>
    %79 = vector.shape_cast %78 : vector<1x8x25xf32> to vector<8x25xf32>
    %80 = vector.extract_strided_slice %77 {offsets = [1, 0, 0], sizes = [1, 8, 25], strides = [1, 1, 1]} : vector<18x8x25xf32> to vector<1x8x25xf32>
    %81 = vector.shape_cast %80 : vector<1x8x25xf32> to vector<8x25xf32>
    %82 = vector.extract_strided_slice %77 {offsets = [2, 0, 0], sizes = [1, 8, 25], strides = [1, 1, 1]} : vector<18x8x25xf32> to vector<1x8x25xf32>
    %83 = vector.shape_cast %82 : vector<1x8x25xf32> to vector<8x25xf32>
    %84 = arith.maximumf %81, %83 : vector<8x25xf32>
    %85 = arith.maximumf %79, %84 : vector<8x25xf32>
    %86 = vector.extract_strided_slice %77 {offsets = [3, 0, 0], sizes = [1, 8, 25], strides = [1, 1, 1]} : vector<18x8x25xf32> to vector<1x8x25xf32>
    %87 = vector.shape_cast %86 : vector<1x8x25xf32> to vector<8x25xf32>
    %88 = vector.extract_strided_slice %77 {offsets = [4, 0, 0], sizes = [1, 8, 25], strides = [1, 1, 1]} : vector<18x8x25xf32> to vector<1x8x25xf32>
    %89 = vector.shape_cast %88 : vector<1x8x25xf32> to vector<8x25xf32>
    %90 = vector.extract_strided_slice %77 {offsets = [5, 0, 0], sizes = [1, 8, 25], strides = [1, 1, 1]} : vector<18x8x25xf32> to vector<1x8x25xf32>
    %91 = vector.shape_cast %90 : vector<1x8x25xf32> to vector<8x25xf32>
    %92 = arith.maximumf %89, %91 : vector<8x25xf32>
    %93 = arith.maximumf %87, %92 : vector<8x25xf32>
    %94 = vector.extract_strided_slice %77 {offsets = [6, 0, 0], sizes = [1, 8, 25], strides = [1, 1, 1]} : vector<18x8x25xf32> to vector<1x8x25xf32>
    %95 = vector.shape_cast %94 : vector<1x8x25xf32> to vector<8x25xf32>
    %96 = vector.extract_strided_slice %77 {offsets = [7, 0, 0], sizes = [1, 8, 25], strides = [1, 1, 1]} : vector<18x8x25xf32> to vector<1x8x25xf32>
    %97 = vector.shape_cast %96 : vector<1x8x25xf32> to vector<8x25xf32>
    %98 = vector.extract_strided_slice %77 {offsets = [8, 0, 0], sizes = [1, 8, 25], strides = [1, 1, 1]} : vector<18x8x25xf32> to vector<1x8x25xf32>
    %99 = vector.shape_cast %98 : vector<1x8x25xf32> to vector<8x25xf32>
    %100 = arith.maximumf %97, %99 : vector<8x25xf32>
    %101 = arith.maximumf %95, %100 : vector<8x25xf32>
    %102 = vector.extract_strided_slice %77 {offsets = [9, 0, 0], sizes = [1, 8, 25], strides = [1, 1, 1]} : vector<18x8x25xf32> to vector<1x8x25xf32>
    %103 = vector.shape_cast %102 : vector<1x8x25xf32> to vector<8x25xf32>
    %104 = vector.extract_strided_slice %77 {offsets = [10, 0, 0], sizes = [1, 8, 25], strides = [1, 1, 1]} : vector<18x8x25xf32> to vector<1x8x25xf32>
    %105 = vector.shape_cast %104 : vector<1x8x25xf32> to vector<8x25xf32>
    %106 = vector.extract_strided_slice %77 {offsets = [11, 0, 0], sizes = [1, 8, 25], strides = [1, 1, 1]} : vector<18x8x25xf32> to vector<1x8x25xf32>
    %107 = vector.shape_cast %106 : vector<1x8x25xf32> to vector<8x25xf32>
    %108 = arith.maximumf %105, %107 : vector<8x25xf32>
    %109 = arith.maximumf %103, %108 : vector<8x25xf32>
    %110 = vector.extract_strided_slice %77 {offsets = [12, 0, 0], sizes = [1, 8, 25], strides = [1, 1, 1]} : vector<18x8x25xf32> to vector<1x8x25xf32>
    %111 = vector.shape_cast %110 : vector<1x8x25xf32> to vector<8x25xf32>
    %112 = vector.extract_strided_slice %77 {offsets = [13, 0, 0], sizes = [1, 8, 25], strides = [1, 1, 1]} : vector<18x8x25xf32> to vector<1x8x25xf32>
    %113 = vector.shape_cast %112 : vector<1x8x25xf32> to vector<8x25xf32>
    %114 = vector.extract_strided_slice %77 {offsets = [14, 0, 0], sizes = [1, 8, 25], strides = [1, 1, 1]} : vector<18x8x25xf32> to vector<1x8x25xf32>
    %115 = vector.shape_cast %114 : vector<1x8x25xf32> to vector<8x25xf32>
    %116 = arith.maximumf %113, %115 : vector<8x25xf32>
    %117 = arith.maximumf %111, %116 : vector<8x25xf32>
    %118 = vector.extract_strided_slice %77 {offsets = [15, 0, 0], sizes = [1, 8, 25], strides = [1, 1, 1]} : vector<18x8x25xf32> to vector<1x8x25xf32>
    %119 = vector.shape_cast %118 : vector<1x8x25xf32> to vector<8x25xf32>
    %120 = vector.extract_strided_slice %77 {offsets = [16, 0, 0], sizes = [1, 8, 25], strides = [1, 1, 1]} : vector<18x8x25xf32> to vector<1x8x25xf32>
    %121 = vector.shape_cast %120 : vector<1x8x25xf32> to vector<8x25xf32>
    %122 = vector.extract_strided_slice %77 {offsets = [17, 0, 0], sizes = [1, 8, 25], strides = [1, 1, 1]} : vector<18x8x25xf32> to vector<1x8x25xf32>
    %123 = vector.shape_cast %122 : vector<1x8x25xf32> to vector<8x25xf32>
    %124 = arith.maximumf %121, %123 : vector<8x25xf32>
    %125 = arith.maximumf %119, %124 : vector<8x25xf32>
    %126 = vector.shape_cast %85 : vector<8x25xf32> to vector<1x8x25xf32>
    %127 = vector.shape_cast %93 : vector<8x25xf32> to vector<1x8x25xf32>
    %128 = vector.shape_cast %101 : vector<8x25xf32> to vector<1x8x25xf32>
    %129 = vector.shape_cast %109 : vector<8x25xf32> to vector<1x8x25xf32>
    %130 = vector.shape_cast %117 : vector<8x25xf32> to vector<1x8x25xf32>
    %131 = vector.shape_cast %125 : vector<8x25xf32> to vector<1x8x25xf32>
    %132 = tpu.concatenate %126, %127, %128, %129, %130, %131 in 0 : vector<1x8x25xf32>, vector<1x8x25xf32>, vector<1x8x25xf32>, vector<1x8x25xf32>, vector<1x8x25xf32>, vector<1x8x25xf32> -> vector<6x8x25xf32>
    %133 = vector.shape_cast %65 : vector<1x25xf32> to vector<1x1x25xf32>
    %134 = vector.broadcast %133 : vector<1x1x25xf32> to vector<6x8x25xf32>
    %135 = arith.mulf %132, %134 : vector<6x8x25xf32>
    %136 = vector.shape_cast %66 : vector<1x25xf32> to vector<1x1x25xf32>
    %137 = vector.broadcast %136 : vector<1x1x25xf32> to vector<6x8x25xf32>
    %138 = arith.addf %135, %137 : vector<6x8x25xf32>
    %139 = arith.truncf %138 : vector<6x8x25xf32> to vector<6x8x25xbf16>
    %cst_38 = arith.constant 0.000000e+00 : bf16
    %140 = vector.broadcast %cst_38 : bf16 to vector<5x8x25xbf16>
    %141 = tpu.concatenate %140, %139, %140 in 0 : vector<5x8x25xbf16>, vector<6x8x25xbf16>, vector<5x8x25xbf16> -> vector<16x8x25xbf16>
    %142 = vector.extract_strided_slice %141 {offsets = [0, 0, 0], sizes = [6, 8, 25], strides = [1, 1, 1]} : vector<16x8x25xbf16> to vector<6x8x25xbf16>
    %143 = vector.shape_cast %142 : vector<6x8x25xbf16> to vector<48x25xbf16>
    %c0_39 = arith.constant 0 : index
    %c0_40 = arith.constant 0 : index
    %c0_41 = arith.constant 0 : index
    %144 = vector.load %arg2[%c0_39, %c0_40, %c0_41] : memref<10x25x50xbf16, #tpu.memory_space<vmem>>, vector<1x25x50xbf16>
    %145 = vector.shape_cast %144 : vector<1x25x50xbf16> to vector<25x50xbf16>
    %cst_42 = arith.constant dense<0.000000e+00> : vector<48x50xf32>
    %146 = tpu.matmul %143, %145, %cst_42 {dimension_numbers = #tpu.dot_dimension_numbers<[1], [0], [0], [1], [0, 0, 1, 1], [], []>} : vector<48x25xbf16>, vector<25x50xbf16>, vector<48x50xf32> -> vector<48x50xf32>
    %147 = vector.extract_strided_slice %141 {offsets = [1, 0, 0], sizes = [6, 8, 25], strides = [1, 1, 1]} : vector<16x8x25xbf16> to vector<6x8x25xbf16>
    %148 = vector.shape_cast %147 : vector<6x8x25xbf16> to vector<48x25xbf16>
    %c1_43 = arith.constant 1 : index
    %c0_44 = arith.constant 0 : index
    %c0_45 = arith.constant 0 : index
    %149 = vector.load %arg2[%c1_43, %c0_44, %c0_45] : memref<10x25x50xbf16, #tpu.memory_space<vmem>>, vector<1x25x50xbf16>
    %150 = vector.shape_cast %149 : vector<1x25x50xbf16> to vector<25x50xbf16>
    %cst_46 = arith.constant dense<0.000000e+00> : vector<48x50xf32>
    %151 = tpu.matmul %148, %150, %cst_46 {dimension_numbers = #tpu.dot_dimension_numbers<[1], [0], [0], [1], [0, 0, 1, 1], [], []>} : vector<48x25xbf16>, vector<25x50xbf16>, vector<48x50xf32> -> vector<48x50xf32>
    %152 = arith.addf %146, %151 : vector<48x50xf32>
    %153 = vector.extract_strided_slice %141 {offsets = [2, 0, 0], sizes = [6, 8, 25], strides = [1, 1, 1]} : vector<16x8x25xbf16> to vector<6x8x25xbf16>
    %154 = vector.shape_cast %153 : vector<6x8x25xbf16> to vector<48x25xbf16>
    %c2_47 = arith.constant 2 : index
    %c0_48 = arith.constant 0 : index
    %c0_49 = arith.constant 0 : index
    %155 = vector.load %arg2[%c2_47, %c0_48, %c0_49] : memref<10x25x50xbf16, #tpu.memory_space<vmem>>, vector<1x25x50xbf16>
    %156 = vector.shape_cast %155 : vector<1x25x50xbf16> to vector<25x50xbf16>
    %cst_50 = arith.constant dense<0.000000e+00> : vector<48x50xf32>
    %157 = tpu.matmul %154, %156, %cst_50 {dimension_numbers = #tpu.dot_dimension_numbers<[1], [0], [0], [1], [0, 0, 1, 1], [], []>} : vector<48x25xbf16>, vector<25x50xbf16>, vector<48x50xf32> -> vector<48x50xf32>
    %158 = arith.addf %152, %157 : vector<48x50xf32>
    %159 = vector.extract_strided_slice %141 {offsets = [3, 0, 0], sizes = [6, 8, 25], strides = [1, 1, 1]} : vector<16x8x25xbf16> to vector<6x8x25xbf16>
    %160 = vector.shape_cast %159 : vector<6x8x25xbf16> to vector<48x25xbf16>
    %c3_51 = arith.constant 3 : index
    %c0_52 = arith.constant 0 : index
    %c0_53 = arith.constant 0 : index
    %161 = vector.load %arg2[%c3_51, %c0_52, %c0_53] : memref<10x25x50xbf16, #tpu.memory_space<vmem>>, vector<1x25x50xbf16>
    %162 = vector.shape_cast %161 : vector<1x25x50xbf16> to vector<25x50xbf16>
    %cst_54 = arith.constant dense<0.000000e+00> : vector<48x50xf32>
    %163 = tpu.matmul %160, %162, %cst_54 {dimension_numbers = #tpu.dot_dimension_numbers<[1], [0], [0], [1], [0, 0, 1, 1], [], []>} : vector<48x25xbf16>, vector<25x50xbf16>, vector<48x50xf32> -> vector<48x50xf32>
    %164 = arith.addf %158, %163 : vector<48x50xf32>
    %165 = vector.extract_strided_slice %141 {offsets = [4, 0, 0], sizes = [6, 8, 25], strides = [1, 1, 1]} : vector<16x8x25xbf16> to vector<6x8x25xbf16>
    %166 = vector.shape_cast %165 : vector<6x8x25xbf16> to vector<48x25xbf16>
    %c4_55 = arith.constant 4 : index
    %c0_56 = arith.constant 0 : index
    %c0_57 = arith.constant 0 : index
    %167 = vector.load %arg2[%c4_55, %c0_56, %c0_57] : memref<10x25x50xbf16, #tpu.memory_space<vmem>>, vector<1x25x50xbf16>
    %168 = vector.shape_cast %167 : vector<1x25x50xbf16> to vector<25x50xbf16>
    %cst_58 = arith.constant dense<0.000000e+00> : vector<48x50xf32>
    %169 = tpu.matmul %166, %168, %cst_58 {dimension_numbers = #tpu.dot_dimension_numbers<[1], [0], [0], [1], [0, 0, 1, 1], [], []>} : vector<48x25xbf16>, vector<25x50xbf16>, vector<48x50xf32> -> vector<48x50xf32>
    %170 = arith.addf %164, %169 : vector<48x50xf32>
    %171 = vector.extract_strided_slice %141 {offsets = [5, 0, 0], sizes = [6, 8, 25], strides = [1, 1, 1]} : vector<16x8x25xbf16> to vector<6x8x25xbf16>
    %172 = vector.shape_cast %171 : vector<6x8x25xbf16> to vector<48x25xbf16>
    %c5_59 = arith.constant 5 : index
    %c0_60 = arith.constant 0 : index
    %c0_61 = arith.constant 0 : index
    %173 = vector.load %arg2[%c5_59, %c0_60, %c0_61] : memref<10x25x50xbf16, #tpu.memory_space<vmem>>, vector<1x25x50xbf16>
    %174 = vector.shape_cast %173 : vector<1x25x50xbf16> to vector<25x50xbf16>
    %cst_62 = arith.constant dense<0.000000e+00> : vector<48x50xf32>
    %175 = tpu.matmul %172, %174, %cst_62 {dimension_numbers = #tpu.dot_dimension_numbers<[1], [0], [0], [1], [0, 0, 1, 1], [], []>} : vector<48x25xbf16>, vector<25x50xbf16>, vector<48x50xf32> -> vector<48x50xf32>
    %176 = arith.addf %170, %175 : vector<48x50xf32>
    %177 = vector.extract_strided_slice %141 {offsets = [6, 0, 0], sizes = [6, 8, 25], strides = [1, 1, 1]} : vector<16x8x25xbf16> to vector<6x8x25xbf16>
    %178 = vector.shape_cast %177 : vector<6x8x25xbf16> to vector<48x25xbf16>
    %c6_63 = arith.constant 6 : index
    %c0_64 = arith.constant 0 : index
    %c0_65 = arith.constant 0 : index
    %179 = vector.load %arg2[%c6_63, %c0_64, %c0_65] : memref<10x25x50xbf16, #tpu.memory_space<vmem>>, vector<1x25x50xbf16>
    %180 = vector.shape_cast %179 : vector<1x25x50xbf16> to vector<25x50xbf16>
    %cst_66 = arith.constant dense<0.000000e+00> : vector<48x50xf32>
    %181 = tpu.matmul %178, %180, %cst_66 {dimension_numbers = #tpu.dot_dimension_numbers<[1], [0], [0], [1], [0, 0, 1, 1], [], []>} : vector<48x25xbf16>, vector<25x50xbf16>, vector<48x50xf32> -> vector<48x50xf32>
    %182 = arith.addf %176, %181 : vector<48x50xf32>
    %183 = vector.extract_strided_slice %141 {offsets = [7, 0, 0], sizes = [6, 8, 25], strides = [1, 1, 1]} : vector<16x8x25xbf16> to vector<6x8x25xbf16>
    %184 = vector.shape_cast %183 : vector<6x8x25xbf16> to vector<48x25xbf16>
    %c7_67 = arith.constant 7 : index
    %c0_68 = arith.constant 0 : index
    %c0_69 = arith.constant 0 : index
    %185 = vector.load %arg2[%c7_67, %c0_68, %c0_69] : memref<10x25x50xbf16, #tpu.memory_space<vmem>>, vector<1x25x50xbf16>
    %186 = vector.shape_cast %185 : vector<1x25x50xbf16> to vector<25x50xbf16>
    %cst_70 = arith.constant dense<0.000000e+00> : vector<48x50xf32>
    %187 = tpu.matmul %184, %186, %cst_70 {dimension_numbers = #tpu.dot_dimension_numbers<[1], [0], [0], [1], [0, 0, 1, 1], [], []>} : vector<48x25xbf16>, vector<25x50xbf16>, vector<48x50xf32> -> vector<48x50xf32>
    %188 = arith.addf %182, %187 : vector<48x50xf32>
    %189 = vector.extract_strided_slice %141 {offsets = [8, 0, 0], sizes = [6, 8, 25], strides = [1, 1, 1]} : vector<16x8x25xbf16> to vector<6x8x25xbf16>
    %190 = vector.shape_cast %189 : vector<6x8x25xbf16> to vector<48x25xbf16>
    %c8_71 = arith.constant 8 : index
    %c0_72 = arith.constant 0 : index
    %c0_73 = arith.constant 0 : index
    %191 = vector.load %arg2[%c8_71, %c0_72, %c0_73] : memref<10x25x50xbf16, #tpu.memory_space<vmem>>, vector<1x25x50xbf16>
    %192 = vector.shape_cast %191 : vector<1x25x50xbf16> to vector<25x50xbf16>
    %cst_74 = arith.constant dense<0.000000e+00> : vector<48x50xf32>
    %193 = tpu.matmul %190, %192, %cst_74 {dimension_numbers = #tpu.dot_dimension_numbers<[1], [0], [0], [1], [0, 0, 1, 1], [], []>} : vector<48x25xbf16>, vector<25x50xbf16>, vector<48x50xf32> -> vector<48x50xf32>
    %194 = arith.addf %188, %193 : vector<48x50xf32>
    %195 = vector.extract_strided_slice %141 {offsets = [9, 0, 0], sizes = [6, 8, 25], strides = [1, 1, 1]} : vector<16x8x25xbf16> to vector<6x8x25xbf16>
    %196 = vector.shape_cast %195 : vector<6x8x25xbf16> to vector<48x25xbf16>
    %c9_75 = arith.constant 9 : index
    %c0_76 = arith.constant 0 : index
    %c0_77 = arith.constant 0 : index
    %197 = vector.load %arg2[%c9_75, %c0_76, %c0_77] : memref<10x25x50xbf16, #tpu.memory_space<vmem>>, vector<1x25x50xbf16>
    %198 = vector.shape_cast %197 : vector<1x25x50xbf16> to vector<25x50xbf16>
    %cst_78 = arith.constant dense<0.000000e+00> : vector<48x50xf32>
    %199 = tpu.matmul %196, %198, %cst_78 {dimension_numbers = #tpu.dot_dimension_numbers<[1], [0], [0], [1], [0, 0, 1, 1], [], []>} : vector<48x25xbf16>, vector<25x50xbf16>, vector<48x50xf32> -> vector<48x50xf32>
    %200 = arith.addf %194, %199 : vector<48x50xf32>
    %201 = vector.extract_strided_slice %0 {offsets = [3, 0], sizes = [1, 50], strides = [1, 1]} : vector<13x200xf32> to vector<1x50xf32>
    %202 = vector.extract_strided_slice %0 {offsets = [4, 0], sizes = [1, 50], strides = [1, 1]} : vector<13x200xf32> to vector<1x50xf32>
    %203 = vector.extract_strided_slice %0 {offsets = [5, 0], sizes = [1, 50], strides = [1, 1]} : vector<13x200xf32> to vector<1x50xf32>
    %204 = vector.broadcast %201 : vector<1x50xf32> to vector<48x50xf32>
    %205 = arith.addf %200, %204 : vector<48x50xf32>
    %cst_79 = arith.constant 0.000000e+00 : f32
    %206 = vector.broadcast %cst_79 : f32 to vector<48x50xf32>
    %207 = arith.cmpf ogt, %205, %206 : vector<48x50xf32>
    %cst_80 = arith.constant 0.000000e+00 : f32
    %208 = vector.broadcast %cst_80 : f32 to vector<48x50xf32>
    %209 = arith.minimumf %205, %208 : vector<48x50xf32>
    %210 = math.exp %209 : vector<48x50xf32>
    %cst_81 = arith.constant 1.000000e+00 : f32
    %211 = vector.broadcast %cst_81 : f32 to vector<48x50xf32>
    %212 = arith.subf %210, %211 : vector<48x50xf32>
    %213 = arith.select %207, %205, %212 : vector<48x50xi1>, vector<48x50xf32>
    %214 = vector.shape_cast %213 : vector<48x50xf32> to vector<6x8x50xf32>
    %215 = vector.extract_strided_slice %214 {offsets = [0, 0, 0], sizes = [1, 8, 50], strides = [1, 1, 1]} : vector<6x8x50xf32> to vector<1x8x50xf32>
    %216 = vector.shape_cast %215 : vector<1x8x50xf32> to vector<8x50xf32>
    %217 = vector.extract_strided_slice %214 {offsets = [1, 0, 0], sizes = [1, 8, 50], strides = [1, 1, 1]} : vector<6x8x50xf32> to vector<1x8x50xf32>
    %218 = vector.shape_cast %217 : vector<1x8x50xf32> to vector<8x50xf32>
    %219 = vector.extract_strided_slice %214 {offsets = [2, 0, 0], sizes = [1, 8, 50], strides = [1, 1, 1]} : vector<6x8x50xf32> to vector<1x8x50xf32>
    %220 = vector.shape_cast %219 : vector<1x8x50xf32> to vector<8x50xf32>
    %221 = arith.maximumf %218, %220 : vector<8x50xf32>
    %222 = arith.maximumf %216, %221 : vector<8x50xf32>
    %223 = vector.extract_strided_slice %214 {offsets = [3, 0, 0], sizes = [1, 8, 50], strides = [1, 1, 1]} : vector<6x8x50xf32> to vector<1x8x50xf32>
    %224 = vector.shape_cast %223 : vector<1x8x50xf32> to vector<8x50xf32>
    %225 = vector.extract_strided_slice %214 {offsets = [4, 0, 0], sizes = [1, 8, 50], strides = [1, 1, 1]} : vector<6x8x50xf32> to vector<1x8x50xf32>
    %226 = vector.shape_cast %225 : vector<1x8x50xf32> to vector<8x50xf32>
    %227 = vector.extract_strided_slice %214 {offsets = [5, 0, 0], sizes = [1, 8, 50], strides = [1, 1, 1]} : vector<6x8x50xf32> to vector<1x8x50xf32>
    %228 = vector.shape_cast %227 : vector<1x8x50xf32> to vector<8x50xf32>
    %229 = arith.maximumf %226, %228 : vector<8x50xf32>
    %230 = arith.maximumf %224, %229 : vector<8x50xf32>
    %231 = vector.shape_cast %222 : vector<8x50xf32> to vector<1x8x50xf32>
    %232 = vector.shape_cast %230 : vector<8x50xf32> to vector<1x8x50xf32>
    %233 = tpu.concatenate %231, %232 in 0 : vector<1x8x50xf32>, vector<1x8x50xf32> -> vector<2x8x50xf32>
    %234 = vector.shape_cast %202 : vector<1x50xf32> to vector<1x1x50xf32>
    %235 = vector.broadcast %234 : vector<1x1x50xf32> to vector<2x8x50xf32>
    %236 = arith.mulf %233, %235 : vector<2x8x50xf32>
    %237 = vector.shape_cast %203 : vector<1x50xf32> to vector<1x1x50xf32>
    %238 = vector.broadcast %237 : vector<1x1x50xf32> to vector<2x8x50xf32>
    %239 = arith.addf %236, %238 : vector<2x8x50xf32>
    %240 = arith.truncf %239 : vector<2x8x50xf32> to vector<2x8x50xbf16>
    %cst_82 = arith.constant 0.000000e+00 : bf16
    %241 = vector.broadcast %cst_82 : bf16 to vector<6x8x50xbf16>
    %242 = tpu.concatenate %241, %240, %241 in 0 : vector<6x8x50xbf16>, vector<2x8x50xbf16>, vector<6x8x50xbf16> -> vector<14x8x50xbf16>
    %243 = vector.extract_strided_slice %242 {offsets = [0, 0, 0], sizes = [3, 8, 50], strides = [1, 1, 1]} : vector<14x8x50xbf16> to vector<3x8x50xbf16>
    %244 = vector.shape_cast %243 : vector<3x8x50xbf16> to vector<24x50xbf16>
    %c0_83 = arith.constant 0 : index
    %c0_84 = arith.constant 0 : index
    %c0_85 = arith.constant 0 : index
    %245 = vector.load %arg3[%c0_83, %c0_84, %c0_85] : memref<10x50x100xbf16, #tpu.memory_space<vmem>>, vector<1x50x100xbf16>
    %246 = vector.shape_cast %245 : vector<1x50x100xbf16> to vector<50x100xbf16>
    %cst_86 = arith.constant dense<0.000000e+00> : vector<24x100xf32>
    %247 = tpu.matmul %244, %246, %cst_86 {dimension_numbers = #tpu.dot_dimension_numbers<[1], [0], [0], [1], [0, 0, 1, 1], [], []>} : vector<24x50xbf16>, vector<50x100xbf16>, vector<24x100xf32> -> vector<24x100xf32>
    %248 = vector.extract_strided_slice %242 {offsets = [1, 0, 0], sizes = [3, 8, 50], strides = [1, 1, 1]} : vector<14x8x50xbf16> to vector<3x8x50xbf16>
    %249 = vector.shape_cast %248 : vector<3x8x50xbf16> to vector<24x50xbf16>
    %c1_87 = arith.constant 1 : index
    %c0_88 = arith.constant 0 : index
    %c0_89 = arith.constant 0 : index
    %250 = vector.load %arg3[%c1_87, %c0_88, %c0_89] : memref<10x50x100xbf16, #tpu.memory_space<vmem>>, vector<1x50x100xbf16>
    %251 = vector.shape_cast %250 : vector<1x50x100xbf16> to vector<50x100xbf16>
    %cst_90 = arith.constant dense<0.000000e+00> : vector<24x100xf32>
    %252 = tpu.matmul %249, %251, %cst_90 {dimension_numbers = #tpu.dot_dimension_numbers<[1], [0], [0], [1], [0, 0, 1, 1], [], []>} : vector<24x50xbf16>, vector<50x100xbf16>, vector<24x100xf32> -> vector<24x100xf32>
    %253 = arith.addf %247, %252 : vector<24x100xf32>
    %254 = vector.extract_strided_slice %242 {offsets = [2, 0, 0], sizes = [3, 8, 50], strides = [1, 1, 1]} : vector<14x8x50xbf16> to vector<3x8x50xbf16>
    %255 = vector.shape_cast %254 : vector<3x8x50xbf16> to vector<24x50xbf16>
    %c2_91 = arith.constant 2 : index
    %c0_92 = arith.constant 0 : index
    %c0_93 = arith.constant 0 : index
    %256 = vector.load %arg3[%c2_91, %c0_92, %c0_93] : memref<10x50x100xbf16, #tpu.memory_space<vmem>>, vector<1x50x100xbf16>
    %257 = vector.shape_cast %256 : vector<1x50x100xbf16> to vector<50x100xbf16>
    %cst_94 = arith.constant dense<0.000000e+00> : vector<24x100xf32>
    %258 = tpu.matmul %255, %257, %cst_94 {dimension_numbers = #tpu.dot_dimension_numbers<[1], [0], [0], [1], [0, 0, 1, 1], [], []>} : vector<24x50xbf16>, vector<50x100xbf16>, vector<24x100xf32> -> vector<24x100xf32>
    %259 = arith.addf %253, %258 : vector<24x100xf32>
    %260 = vector.extract_strided_slice %242 {offsets = [3, 0, 0], sizes = [3, 8, 50], strides = [1, 1, 1]} : vector<14x8x50xbf16> to vector<3x8x50xbf16>
    %261 = vector.shape_cast %260 : vector<3x8x50xbf16> to vector<24x50xbf16>
    %c3_95 = arith.constant 3 : index
    %c0_96 = arith.constant 0 : index
    %c0_97 = arith.constant 0 : index
    %262 = vector.load %arg3[%c3_95, %c0_96, %c0_97] : memref<10x50x100xbf16, #tpu.memory_space<vmem>>, vector<1x50x100xbf16>
    %263 = vector.shape_cast %262 : vector<1x50x100xbf16> to vector<50x100xbf16>
    %cst_98 = arith.constant dense<0.000000e+00> : vector<24x100xf32>
    %264 = tpu.matmul %261, %263, %cst_98 {dimension_numbers = #tpu.dot_dimension_numbers<[1], [0], [0], [1], [0, 0, 1, 1], [], []>} : vector<24x50xbf16>, vector<50x100xbf16>, vector<24x100xf32> -> vector<24x100xf32>
    %265 = arith.addf %259, %264 : vector<24x100xf32>
    %266 = vector.extract_strided_slice %242 {offsets = [4, 0, 0], sizes = [3, 8, 50], strides = [1, 1, 1]} : vector<14x8x50xbf16> to vector<3x8x50xbf16>
    %267 = vector.shape_cast %266 : vector<3x8x50xbf16> to vector<24x50xbf16>
    %c4_99 = arith.constant 4 : index
    %c0_100 = arith.constant 0 : index
    %c0_101 = arith.constant 0 : index
    %268 = vector.load %arg3[%c4_99, %c0_100, %c0_101] : memref<10x50x100xbf16, #tpu.memory_space<vmem>>, vector<1x50x100xbf16>
    %269 = vector.shape_cast %268 : vector<1x50x100xbf16> to vector<50x100xbf16>
    %cst_102 = arith.constant dense<0.000000e+00> : vector<24x100xf32>
    %270 = tpu.matmul %267, %269, %cst_102 {dimension_numbers = #tpu.dot_dimension_numbers<[1], [0], [0], [1], [0, 0, 1, 1], [], []>} : vector<24x50xbf16>, vector<50x100xbf16>, vector<24x100xf32> -> vector<24x100xf32>
    %271 = arith.addf %265, %270 : vector<24x100xf32>
    %272 = vector.extract_strided_slice %242 {offsets = [5, 0, 0], sizes = [3, 8, 50], strides = [1, 1, 1]} : vector<14x8x50xbf16> to vector<3x8x50xbf16>
    %273 = vector.shape_cast %272 : vector<3x8x50xbf16> to vector<24x50xbf16>
    %c5_103 = arith.constant 5 : index
    %c0_104 = arith.constant 0 : index
    %c0_105 = arith.constant 0 : index
    %274 = vector.load %arg3[%c5_103, %c0_104, %c0_105] : memref<10x50x100xbf16, #tpu.memory_space<vmem>>, vector<1x50x100xbf16>
    %275 = vector.shape_cast %274 : vector<1x50x100xbf16> to vector<50x100xbf16>
    %cst_106 = arith.constant dense<0.000000e+00> : vector<24x100xf32>
    %276 = tpu.matmul %273, %275, %cst_106 {dimension_numbers = #tpu.dot_dimension_numbers<[1], [0], [0], [1], [0, 0, 1, 1], [], []>} : vector<24x50xbf16>, vector<50x100xbf16>, vector<24x100xf32> -> vector<24x100xf32>
    %277 = arith.addf %271, %276 : vector<24x100xf32>
    %278 = vector.extract_strided_slice %242 {offsets = [6, 0, 0], sizes = [3, 8, 50], strides = [1, 1, 1]} : vector<14x8x50xbf16> to vector<3x8x50xbf16>
    %279 = vector.shape_cast %278 : vector<3x8x50xbf16> to vector<24x50xbf16>
    %c6_107 = arith.constant 6 : index
    %c0_108 = arith.constant 0 : index
    %c0_109 = arith.constant 0 : index
    %280 = vector.load %arg3[%c6_107, %c0_108, %c0_109] : memref<10x50x100xbf16, #tpu.memory_space<vmem>>, vector<1x50x100xbf16>
    %281 = vector.shape_cast %280 : vector<1x50x100xbf16> to vector<50x100xbf16>
    %cst_110 = arith.constant dense<0.000000e+00> : vector<24x100xf32>
    %282 = tpu.matmul %279, %281, %cst_110 {dimension_numbers = #tpu.dot_dimension_numbers<[1], [0], [0], [1], [0, 0, 1, 1], [], []>} : vector<24x50xbf16>, vector<50x100xbf16>, vector<24x100xf32> -> vector<24x100xf32>
    %283 = arith.addf %277, %282 : vector<24x100xf32>
    %284 = vector.extract_strided_slice %242 {offsets = [7, 0, 0], sizes = [3, 8, 50], strides = [1, 1, 1]} : vector<14x8x50xbf16> to vector<3x8x50xbf16>
    %285 = vector.shape_cast %284 : vector<3x8x50xbf16> to vector<24x50xbf16>
    %c7_111 = arith.constant 7 : index
    %c0_112 = arith.constant 0 : index
    %c0_113 = arith.constant 0 : index
    %286 = vector.load %arg3[%c7_111, %c0_112, %c0_113] : memref<10x50x100xbf16, #tpu.memory_space<vmem>>, vector<1x50x100xbf16>
    %287 = vector.shape_cast %286 : vector<1x50x100xbf16> to vector<50x100xbf16>
    %cst_114 = arith.constant dense<0.000000e+00> : vector<24x100xf32>
    %288 = tpu.matmul %285, %287, %cst_114 {dimension_numbers = #tpu.dot_dimension_numbers<[1], [0], [0], [1], [0, 0, 1, 1], [], []>} : vector<24x50xbf16>, vector<50x100xbf16>, vector<24x100xf32> -> vector<24x100xf32>
    %289 = arith.addf %283, %288 : vector<24x100xf32>
    %290 = vector.extract_strided_slice %242 {offsets = [8, 0, 0], sizes = [3, 8, 50], strides = [1, 1, 1]} : vector<14x8x50xbf16> to vector<3x8x50xbf16>
    %291 = vector.shape_cast %290 : vector<3x8x50xbf16> to vector<24x50xbf16>
    %c8_115 = arith.constant 8 : index
    %c0_116 = arith.constant 0 : index
    %c0_117 = arith.constant 0 : index
    %292 = vector.load %arg3[%c8_115, %c0_116, %c0_117] : memref<10x50x100xbf16, #tpu.memory_space<vmem>>, vector<1x50x100xbf16>
    %293 = vector.shape_cast %292 : vector<1x50x100xbf16> to vector<50x100xbf16>
    %cst_118 = arith.constant dense<0.000000e+00> : vector<24x100xf32>
    %294 = tpu.matmul %291, %293, %cst_118 {dimension_numbers = #tpu.dot_dimension_numbers<[1], [0], [0], [1], [0, 0, 1, 1], [], []>} : vector<24x50xbf16>, vector<50x100xbf16>, vector<24x100xf32> -> vector<24x100xf32>
    %295 = arith.addf %289, %294 : vector<24x100xf32>
    %296 = vector.extract_strided_slice %242 {offsets = [9, 0, 0], sizes = [3, 8, 50], strides = [1, 1, 1]} : vector<14x8x50xbf16> to vector<3x8x50xbf16>
    %297 = vector.shape_cast %296 : vector<3x8x50xbf16> to vector<24x50xbf16>
    %c9_119 = arith.constant 9 : index
    %c0_120 = arith.constant 0 : index
    %c0_121 = arith.constant 0 : index
    %298 = vector.load %arg3[%c9_119, %c0_120, %c0_121] : memref<10x50x100xbf16, #tpu.memory_space<vmem>>, vector<1x50x100xbf16>
    %299 = vector.shape_cast %298 : vector<1x50x100xbf16> to vector<50x100xbf16>
    %cst_122 = arith.constant dense<0.000000e+00> : vector<24x100xf32>
    %300 = tpu.matmul %297, %299, %cst_122 {dimension_numbers = #tpu.dot_dimension_numbers<[1], [0], [0], [1], [0, 0, 1, 1], [], []>} : vector<24x50xbf16>, vector<50x100xbf16>, vector<24x100xf32> -> vector<24x100xf32>
    %301 = arith.addf %295, %300 : vector<24x100xf32>
    %302 = vector.extract_strided_slice %0 {offsets = [6, 0], sizes = [1, 100], strides = [1, 1]} : vector<13x200xf32> to vector<1x100xf32>
    %303 = vector.extract_strided_slice %0 {offsets = [7, 0], sizes = [1, 100], strides = [1, 1]} : vector<13x200xf32> to vector<1x100xf32>
    %304 = vector.extract_strided_slice %0 {offsets = [8, 0], sizes = [1, 100], strides = [1, 1]} : vector<13x200xf32> to vector<1x100xf32>
    %305 = vector.broadcast %302 : vector<1x100xf32> to vector<24x100xf32>
    %306 = arith.addf %301, %305 : vector<24x100xf32>
    %cst_123 = arith.constant 0.000000e+00 : f32
    %307 = vector.broadcast %cst_123 : f32 to vector<24x100xf32>
    %308 = arith.cmpf ogt, %306, %307 : vector<24x100xf32>
    %cst_124 = arith.constant 0.000000e+00 : f32
    %309 = vector.broadcast %cst_124 : f32 to vector<24x100xf32>
    %310 = arith.minimumf %306, %309 : vector<24x100xf32>
    %311 = math.exp %310 : vector<24x100xf32>
    %cst_125 = arith.constant 1.000000e+00 : f32
    %312 = vector.broadcast %cst_125 : f32 to vector<24x100xf32>
    %313 = arith.subf %311, %312 : vector<24x100xf32>
    %314 = arith.select %308, %306, %313 : vector<24x100xi1>, vector<24x100xf32>
    %315 = vector.shape_cast %314 : vector<24x100xf32> to vector<3x8x100xf32>
    %316 = vector.extract_strided_slice %315 {offsets = [0, 0, 0], sizes = [1, 8, 100], strides = [1, 1, 1]} : vector<3x8x100xf32> to vector<1x8x100xf32>
    %317 = vector.shape_cast %316 : vector<1x8x100xf32> to vector<8x100xf32>
    %318 = vector.extract_strided_slice %315 {offsets = [1, 0, 0], sizes = [1, 8, 100], strides = [1, 1, 1]} : vector<3x8x100xf32> to vector<1x8x100xf32>
    %319 = vector.shape_cast %318 : vector<1x8x100xf32> to vector<8x100xf32>
    %320 = vector.extract_strided_slice %315 {offsets = [2, 0, 0], sizes = [1, 8, 100], strides = [1, 1, 1]} : vector<3x8x100xf32> to vector<1x8x100xf32>
    %321 = vector.shape_cast %320 : vector<1x8x100xf32> to vector<8x100xf32>
    %322 = arith.maximumf %319, %321 : vector<8x100xf32>
    %323 = arith.maximumf %317, %322 : vector<8x100xf32>
    %324 = vector.shape_cast %323 : vector<8x100xf32> to vector<1x8x100xf32>
    %325 = vector.shape_cast %303 : vector<1x100xf32> to vector<1x1x100xf32>
    %326 = vector.broadcast %325 : vector<1x1x100xf32> to vector<1x8x100xf32>
    %327 = arith.mulf %324, %326 : vector<1x8x100xf32>
    %328 = vector.shape_cast %304 : vector<1x100xf32> to vector<1x1x100xf32>
    %329 = vector.broadcast %328 : vector<1x1x100xf32> to vector<1x8x100xf32>
    %330 = arith.addf %327, %329 : vector<1x8x100xf32>
    %331 = arith.truncf %330 : vector<1x8x100xf32> to vector<1x8x100xbf16>
    %cst_126 = arith.constant 0.000000e+00 : bf16
    %332 = vector.broadcast %cst_126 : bf16 to vector<6x8x100xbf16>
    %333 = tpu.concatenate %332, %331, %332 in 0 : vector<6x8x100xbf16>, vector<1x8x100xbf16>, vector<6x8x100xbf16> -> vector<13x8x100xbf16>
    %334 = vector.extract_strided_slice %333 {offsets = [0, 0, 0], sizes = [3, 8, 100], strides = [1, 1, 1]} : vector<13x8x100xbf16> to vector<3x8x100xbf16>
    %335 = vector.shape_cast %334 : vector<3x8x100xbf16> to vector<24x100xbf16>
    %c0_127 = arith.constant 0 : index
    %c0_128 = arith.constant 0 : index
    %c0_129 = arith.constant 0 : index
    %336 = vector.load %arg4[%c0_127, %c0_128, %c0_129] : memref<10x100x200xbf16, #tpu.memory_space<vmem>>, vector<1x100x200xbf16>
    %337 = vector.shape_cast %336 : vector<1x100x200xbf16> to vector<100x200xbf16>
    %cst_130 = arith.constant dense<0.000000e+00> : vector<24x200xf32>
    %338 = tpu.matmul %335, %337, %cst_130 {dimension_numbers = #tpu.dot_dimension_numbers<[1], [0], [0], [1], [0, 0, 1, 1], [], []>} : vector<24x100xbf16>, vector<100x200xbf16>, vector<24x200xf32> -> vector<24x200xf32>
    %339 = vector.extract_strided_slice %333 {offsets = [1, 0, 0], sizes = [3, 8, 100], strides = [1, 1, 1]} : vector<13x8x100xbf16> to vector<3x8x100xbf16>
    %340 = vector.shape_cast %339 : vector<3x8x100xbf16> to vector<24x100xbf16>
    %c1_131 = arith.constant 1 : index
    %c0_132 = arith.constant 0 : index
    %c0_133 = arith.constant 0 : index
    %341 = vector.load %arg4[%c1_131, %c0_132, %c0_133] : memref<10x100x200xbf16, #tpu.memory_space<vmem>>, vector<1x100x200xbf16>
    %342 = vector.shape_cast %341 : vector<1x100x200xbf16> to vector<100x200xbf16>
    %cst_134 = arith.constant dense<0.000000e+00> : vector<24x200xf32>
    %343 = tpu.matmul %340, %342, %cst_134 {dimension_numbers = #tpu.dot_dimension_numbers<[1], [0], [0], [1], [0, 0, 1, 1], [], []>} : vector<24x100xbf16>, vector<100x200xbf16>, vector<24x200xf32> -> vector<24x200xf32>
    %344 = arith.addf %338, %343 : vector<24x200xf32>
    %345 = vector.extract_strided_slice %333 {offsets = [2, 0, 0], sizes = [3, 8, 100], strides = [1, 1, 1]} : vector<13x8x100xbf16> to vector<3x8x100xbf16>
    %346 = vector.shape_cast %345 : vector<3x8x100xbf16> to vector<24x100xbf16>
    %c2_135 = arith.constant 2 : index
    %c0_136 = arith.constant 0 : index
    %c0_137 = arith.constant 0 : index
    %347 = vector.load %arg4[%c2_135, %c0_136, %c0_137] : memref<10x100x200xbf16, #tpu.memory_space<vmem>>, vector<1x100x200xbf16>
    %348 = vector.shape_cast %347 : vector<1x100x200xbf16> to vector<100x200xbf16>
    %cst_138 = arith.constant dense<0.000000e+00> : vector<24x200xf32>
    %349 = tpu.matmul %346, %348, %cst_138 {dimension_numbers = #tpu.dot_dimension_numbers<[1], [0], [0], [1], [0, 0, 1, 1], [], []>} : vector<24x100xbf16>, vector<100x200xbf16>, vector<24x200xf32> -> vector<24x200xf32>
    %350 = arith.addf %344, %349 : vector<24x200xf32>
    %351 = vector.extract_strided_slice %333 {offsets = [3, 0, 0], sizes = [3, 8, 100], strides = [1, 1, 1]} : vector<13x8x100xbf16> to vector<3x8x100xbf16>
    %352 = vector.shape_cast %351 : vector<3x8x100xbf16> to vector<24x100xbf16>
    %c3_139 = arith.constant 3 : index
    %c0_140 = arith.constant 0 : index
    %c0_141 = arith.constant 0 : index
    %353 = vector.load %arg4[%c3_139, %c0_140, %c0_141] : memref<10x100x200xbf16, #tpu.memory_space<vmem>>, vector<1x100x200xbf16>
    %354 = vector.shape_cast %353 : vector<1x100x200xbf16> to vector<100x200xbf16>
    %cst_142 = arith.constant dense<0.000000e+00> : vector<24x200xf32>
    %355 = tpu.matmul %352, %354, %cst_142 {dimension_numbers = #tpu.dot_dimension_numbers<[1], [0], [0], [1], [0, 0, 1, 1], [], []>} : vector<24x100xbf16>, vector<100x200xbf16>, vector<24x200xf32> -> vector<24x200xf32>
    %356 = arith.addf %350, %355 : vector<24x200xf32>
    %357 = vector.extract_strided_slice %333 {offsets = [4, 0, 0], sizes = [3, 8, 100], strides = [1, 1, 1]} : vector<13x8x100xbf16> to vector<3x8x100xbf16>
    %358 = vector.shape_cast %357 : vector<3x8x100xbf16> to vector<24x100xbf16>
    %c4_143 = arith.constant 4 : index
    %c0_144 = arith.constant 0 : index
    %c0_145 = arith.constant 0 : index
    %359 = vector.load %arg4[%c4_143, %c0_144, %c0_145] : memref<10x100x200xbf16, #tpu.memory_space<vmem>>, vector<1x100x200xbf16>
    %360 = vector.shape_cast %359 : vector<1x100x200xbf16> to vector<100x200xbf16>
    %cst_146 = arith.constant dense<0.000000e+00> : vector<24x200xf32>
    %361 = tpu.matmul %358, %360, %cst_146 {dimension_numbers = #tpu.dot_dimension_numbers<[1], [0], [0], [1], [0, 0, 1, 1], [], []>} : vector<24x100xbf16>, vector<100x200xbf16>, vector<24x200xf32> -> vector<24x200xf32>
    %362 = arith.addf %356, %361 : vector<24x200xf32>
    %363 = vector.extract_strided_slice %333 {offsets = [5, 0, 0], sizes = [3, 8, 100], strides = [1, 1, 1]} : vector<13x8x100xbf16> to vector<3x8x100xbf16>
    %364 = vector.shape_cast %363 : vector<3x8x100xbf16> to vector<24x100xbf16>
    %c5_147 = arith.constant 5 : index
    %c0_148 = arith.constant 0 : index
    %c0_149 = arith.constant 0 : index
    %365 = vector.load %arg4[%c5_147, %c0_148, %c0_149] : memref<10x100x200xbf16, #tpu.memory_space<vmem>>, vector<1x100x200xbf16>
    %366 = vector.shape_cast %365 : vector<1x100x200xbf16> to vector<100x200xbf16>
    %cst_150 = arith.constant dense<0.000000e+00> : vector<24x200xf32>
    %367 = tpu.matmul %364, %366, %cst_150 {dimension_numbers = #tpu.dot_dimension_numbers<[1], [0], [0], [1], [0, 0, 1, 1], [], []>} : vector<24x100xbf16>, vector<100x200xbf16>, vector<24x200xf32> -> vector<24x200xf32>
    %368 = arith.addf %362, %367 : vector<24x200xf32>
    %369 = vector.extract_strided_slice %333 {offsets = [6, 0, 0], sizes = [3, 8, 100], strides = [1, 1, 1]} : vector<13x8x100xbf16> to vector<3x8x100xbf16>
    %370 = vector.shape_cast %369 : vector<3x8x100xbf16> to vector<24x100xbf16>
    %c6_151 = arith.constant 6 : index
    %c0_152 = arith.constant 0 : index
    %c0_153 = arith.constant 0 : index
    %371 = vector.load %arg4[%c6_151, %c0_152, %c0_153] : memref<10x100x200xbf16, #tpu.memory_space<vmem>>, vector<1x100x200xbf16>
    %372 = vector.shape_cast %371 : vector<1x100x200xbf16> to vector<100x200xbf16>
    %cst_154 = arith.constant dense<0.000000e+00> : vector<24x200xf32>
    %373 = tpu.matmul %370, %372, %cst_154 {dimension_numbers = #tpu.dot_dimension_numbers<[1], [0], [0], [1], [0, 0, 1, 1], [], []>} : vector<24x100xbf16>, vector<100x200xbf16>, vector<24x200xf32> -> vector<24x200xf32>
    %374 = arith.addf %368, %373 : vector<24x200xf32>
    %375 = vector.extract_strided_slice %333 {offsets = [7, 0, 0], sizes = [3, 8, 100], strides = [1, 1, 1]} : vector<13x8x100xbf16> to vector<3x8x100xbf16>
    %376 = vector.shape_cast %375 : vector<3x8x100xbf16> to vector<24x100xbf16>
    %c7_155 = arith.constant 7 : index
    %c0_156 = arith.constant 0 : index
    %c0_157 = arith.constant 0 : index
    %377 = vector.load %arg4[%c7_155, %c0_156, %c0_157] : memref<10x100x200xbf16, #tpu.memory_space<vmem>>, vector<1x100x200xbf16>
    %378 = vector.shape_cast %377 : vector<1x100x200xbf16> to vector<100x200xbf16>
    %cst_158 = arith.constant dense<0.000000e+00> : vector<24x200xf32>
    %379 = tpu.matmul %376, %378, %cst_158 {dimension_numbers = #tpu.dot_dimension_numbers<[1], [0], [0], [1], [0, 0, 1, 1], [], []>} : vector<24x100xbf16>, vector<100x200xbf16>, vector<24x200xf32> -> vector<24x200xf32>
    %380 = arith.addf %374, %379 : vector<24x200xf32>
    %381 = vector.extract_strided_slice %333 {offsets = [8, 0, 0], sizes = [3, 8, 100], strides = [1, 1, 1]} : vector<13x8x100xbf16> to vector<3x8x100xbf16>
    %382 = vector.shape_cast %381 : vector<3x8x100xbf16> to vector<24x100xbf16>
    %c8_159 = arith.constant 8 : index
    %c0_160 = arith.constant 0 : index
    %c0_161 = arith.constant 0 : index
    %383 = vector.load %arg4[%c8_159, %c0_160, %c0_161] : memref<10x100x200xbf16, #tpu.memory_space<vmem>>, vector<1x100x200xbf16>
    %384 = vector.shape_cast %383 : vector<1x100x200xbf16> to vector<100x200xbf16>
    %cst_162 = arith.constant dense<0.000000e+00> : vector<24x200xf32>
    %385 = tpu.matmul %382, %384, %cst_162 {dimension_numbers = #tpu.dot_dimension_numbers<[1], [0], [0], [1], [0, 0, 1, 1], [], []>} : vector<24x100xbf16>, vector<100x200xbf16>, vector<24x200xf32> -> vector<24x200xf32>
    %386 = arith.addf %380, %385 : vector<24x200xf32>
    %387 = vector.extract_strided_slice %333 {offsets = [9, 0, 0], sizes = [3, 8, 100], strides = [1, 1, 1]} : vector<13x8x100xbf16> to vector<3x8x100xbf16>
    %388 = vector.shape_cast %387 : vector<3x8x100xbf16> to vector<24x100xbf16>
    %c9_163 = arith.constant 9 : index
    %c0_164 = arith.constant 0 : index
    %c0_165 = arith.constant 0 : index
    %389 = vector.load %arg4[%c9_163, %c0_164, %c0_165] : memref<10x100x200xbf16, #tpu.memory_space<vmem>>, vector<1x100x200xbf16>
    %390 = vector.shape_cast %389 : vector<1x100x200xbf16> to vector<100x200xbf16>
    %cst_166 = arith.constant dense<0.000000e+00> : vector<24x200xf32>
    %391 = tpu.matmul %388, %390, %cst_166 {dimension_numbers = #tpu.dot_dimension_numbers<[1], [0], [0], [1], [0, 0, 1, 1], [], []>} : vector<24x100xbf16>, vector<100x200xbf16>, vector<24x200xf32> -> vector<24x200xf32>
    %392 = arith.addf %386, %391 : vector<24x200xf32>
    %393 = vector.extract_strided_slice %0 {offsets = [9, 0], sizes = [1, 200], strides = [1, 1]} : vector<13x200xf32> to vector<1x200xf32>
    %394 = vector.extract_strided_slice %0 {offsets = [10, 0], sizes = [1, 200], strides = [1, 1]} : vector<13x200xf32> to vector<1x200xf32>
    %395 = vector.extract_strided_slice %0 {offsets = [11, 0], sizes = [1, 200], strides = [1, 1]} : vector<13x200xf32> to vector<1x200xf32>
    %396 = vector.broadcast %393 : vector<1x200xf32> to vector<24x200xf32>
    %397 = arith.addf %392, %396 : vector<24x200xf32>
    %cst_167 = arith.constant 0.000000e+00 : f32
    %398 = vector.broadcast %cst_167 : f32 to vector<24x200xf32>
    %399 = arith.cmpf ogt, %397, %398 : vector<24x200xf32>
    %cst_168 = arith.constant 0.000000e+00 : f32
    %400 = vector.broadcast %cst_168 : f32 to vector<24x200xf32>
    %401 = arith.minimumf %397, %400 : vector<24x200xf32>
    %402 = math.exp %401 : vector<24x200xf32>
    %cst_169 = arith.constant 1.000000e+00 : f32
    %403 = vector.broadcast %cst_169 : f32 to vector<24x200xf32>
    %404 = arith.subf %402, %403 : vector<24x200xf32>
    %405 = arith.select %399, %397, %404 : vector<24x200xi1>, vector<24x200xf32>
    %406 = vector.shape_cast %405 : vector<24x200xf32> to vector<3x8x200xf32>
    %407 = vector.extract_strided_slice %406 {offsets = [0, 0, 0], sizes = [1, 8, 200], strides = [1, 1, 1]} : vector<3x8x200xf32> to vector<1x8x200xf32>
    %408 = vector.shape_cast %407 : vector<1x8x200xf32> to vector<8x200xf32>
    %409 = vector.extract_strided_slice %406 {offsets = [1, 0, 0], sizes = [1, 8, 200], strides = [1, 1, 1]} : vector<3x8x200xf32> to vector<1x8x200xf32>
    %410 = vector.shape_cast %409 : vector<1x8x200xf32> to vector<8x200xf32>
    %411 = vector.extract_strided_slice %406 {offsets = [2, 0, 0], sizes = [1, 8, 200], strides = [1, 1, 1]} : vector<3x8x200xf32> to vector<1x8x200xf32>
    %412 = vector.shape_cast %411 : vector<1x8x200xf32> to vector<8x200xf32>
    %413 = arith.maximumf %410, %412 : vector<8x200xf32>
    %414 = arith.maximumf %408, %413 : vector<8x200xf32>
    %415 = vector.shape_cast %414 : vector<8x200xf32> to vector<1x8x200xf32>
    %416 = vector.shape_cast %394 : vector<1x200xf32> to vector<1x1x200xf32>
    %417 = vector.broadcast %416 : vector<1x1x200xf32> to vector<1x8x200xf32>
    %418 = arith.mulf %415, %417 : vector<1x8x200xf32>
    %419 = vector.shape_cast %395 : vector<1x200xf32> to vector<1x1x200xf32>
    %420 = vector.broadcast %419 : vector<1x1x200xf32> to vector<1x8x200xf32>
    %421 = arith.addf %418, %420 : vector<1x8x200xf32>
    %422 = vector.shape_cast %421 : vector<1x8x200xf32> to vector<8x200xf32>
    %423 = vector.extract_strided_slice %0 {offsets = [12, 0], sizes = [1, 4], strides = [1, 1]} : vector<13x200xf32> to vector<1x4xf32>
    %424 = vector.extract_strided_slice %422 {offsets = [0, 0], sizes = [2, 200], strides = [1, 1]} : vector<8x200xf32> to vector<2x200xf32>
    %c0_170 = arith.constant 0 : index
    %c0_171 = arith.constant 0 : index
    %c0_172 = arith.constant 0 : index
    %425 = vector.load %arg6[%c0_170, %c0_171, %c0_172] : memref<4x200x4xf32, #tpu.memory_space<vmem>>, vector<1x200x4xf32>
    %426 = vector.shape_cast %425 : vector<1x200x4xf32> to vector<200x4xf32>
    %cst_173 = arith.constant dense<0.000000e+00> : vector<2x4xf32>
    %427 = tpu.matmul %424, %426, %cst_173 {dimension_numbers = #tpu.dot_dimension_numbers<[1], [0], [0], [1], [0, 0, 1, 1], [], []>} : vector<2x200xf32>, vector<200x4xf32>, vector<2x4xf32> -> vector<2x4xf32>
    %428 = vector.broadcast %423 : vector<1x4xf32> to vector<2x4xf32>
    %429 = arith.addf %428, %427 : vector<2x4xf32>
    %430 = vector.extract_strided_slice %422 {offsets = [2, 0], sizes = [2, 200], strides = [1, 1]} : vector<8x200xf32> to vector<2x200xf32>
    %c1_174 = arith.constant 1 : index
    %c0_175 = arith.constant 0 : index
    %c0_176 = arith.constant 0 : index
    %431 = vector.load %arg6[%c1_174, %c0_175, %c0_176] : memref<4x200x4xf32, #tpu.memory_space<vmem>>, vector<1x200x4xf32>
    %432 = vector.shape_cast %431 : vector<1x200x4xf32> to vector<200x4xf32>
    %cst_177 = arith.constant dense<0.000000e+00> : vector<2x4xf32>
    %433 = tpu.matmul %430, %432, %cst_177 {dimension_numbers = #tpu.dot_dimension_numbers<[1], [0], [0], [1], [0, 0, 1, 1], [], []>} : vector<2x200xf32>, vector<200x4xf32>, vector<2x4xf32> -> vector<2x4xf32>
    %434 = arith.addf %429, %433 : vector<2x4xf32>
    %435 = vector.extract_strided_slice %422 {offsets = [4, 0], sizes = [2, 200], strides = [1, 1]} : vector<8x200xf32> to vector<2x200xf32>
    %c2_178 = arith.constant 2 : index
    %c0_179 = arith.constant 0 : index
    %c0_180 = arith.constant 0 : index
    %436 = vector.load %arg6[%c2_178, %c0_179, %c0_180] : memref<4x200x4xf32, #tpu.memory_space<vmem>>, vector<1x200x4xf32>
    %437 = vector.shape_cast %436 : vector<1x200x4xf32> to vector<200x4xf32>
    %cst_181 = arith.constant dense<0.000000e+00> : vector<2x4xf32>
    %438 = tpu.matmul %435, %437, %cst_181 {dimension_numbers = #tpu.dot_dimension_numbers<[1], [0], [0], [1], [0, 0, 1, 1], [], []>} : vector<2x200xf32>, vector<200x4xf32>, vector<2x4xf32> -> vector<2x4xf32>
    %439 = arith.addf %434, %438 : vector<2x4xf32>
    %440 = vector.extract_strided_slice %422 {offsets = [6, 0], sizes = [2, 200], strides = [1, 1]} : vector<8x200xf32> to vector<2x200xf32>
    %c3_182 = arith.constant 3 : index
    %c0_183 = arith.constant 0 : index
    %c0_184 = arith.constant 0 : index
    %441 = vector.load %arg6[%c3_182, %c0_183, %c0_184] : memref<4x200x4xf32, #tpu.memory_space<vmem>>, vector<1x200x4xf32>
    %442 = vector.shape_cast %441 : vector<1x200x4xf32> to vector<200x4xf32>
    %cst_185 = arith.constant dense<0.000000e+00> : vector<2x4xf32>
    %443 = tpu.matmul %440, %442, %cst_185 {dimension_numbers = #tpu.dot_dimension_numbers<[1], [0], [0], [1], [0, 0, 1, 1], [], []>} : vector<2x200xf32>, vector<200x4xf32>, vector<2x4xf32> -> vector<2x4xf32>
    %444 = arith.addf %439, %443 : vector<2x4xf32>
    %cst_186 = arith.constant dense<0xFF800000> : vector<2xf32>
    %445 = vector.multi_reduction <maximumf>, %444, %cst_186 [1] : vector<2x4xf32> to vector<2xf32>
    %446 = vector.shape_cast %445 : vector<2xf32> to vector<2x1xf32>
    %447 = vector.broadcast %446 : vector<2x1xf32> to vector<2x4xf32>
    %448 = arith.subf %444, %447 : vector<2x4xf32>
    %449 = math.exp %448 : vector<2x4xf32>
    %cst_187 = arith.constant dense<0.000000e+00> : vector<2xf32>
    %450 = vector.multi_reduction <add>, %449, %cst_187 [1] : vector<2x4xf32> to vector<2xf32>
    %451 = vector.shape_cast %450 : vector<2xf32> to vector<2x1xf32>
    %452 = vector.broadcast %451 : vector<2x1xf32> to vector<2x4xf32>
    %453 = arith.divf %449, %452 : vector<2x4xf32>
    %c0_188 = arith.constant 0 : index
    %c0_189 = arith.constant 0 : index
    %454 = vector.load %arg7[%c0_188, %c0_189] : memref<2x4xf32, #tpu.memory_space<vmem>>, vector<2x4xf32>
    tpu.vector_store %arg7[%c0_188, %c0_189], %453 {strides = array<i32>} : memref<2x4xf32, #tpu.memory_space<vmem>>, vector<2x4xf32>,
    return
  }
}

</mosaic_0001>

<bundles_post_ra>
// kernel: forward.1
= control target key start
LH: loop header
LB: loop body
LE: loop exit
PB: predicated region body
PF: predicated region fallthrough
CT: control target
= control target key end

     0   :  { %12 = vsyncpa [#allocation3], 0  ;;  %s9142_s0 = inlined_call_operand.vmem [shape: f32[16,8,22], index: 0, kind: input, shape index: {}]   ;;  %s9143_s1 = inlined_call_operand.hbm [shape: bf16[10,22,25], index: 1, kind: input, shape index: {}]   ;;  %s9144_s2 = inlined_call_operand.vmem [shape: bf16[10,25,50], index: 2, kind: input, shape index: {}]   ;;  %s9145_s3 = inlined_call_operand.hbm [shape: bf16[10,50,100], index: 3, kind: input, shape index: {}]   ;;  %s9146_s4 = inlined_call_operand.hbm [shape: bf16[10,100,200], index: 4, kind: input, shape index: {}]   ;;  %s9147_s5 = inlined_call_operand.vmem [shape: f32[13,200], index: 5, kind: input, shape index: {}]   ;;  %s9148_s6 = inlined_call_operand.hbm [shape: f32[4,200,4], index: 6, kind: input, shape index: {}]   ;;  %s9149_s7 = inlined_call_operand.hbm [shape: f32[2,4], index: 7, kind: output, shape index: {}]  }
   0x1   :  { %13 = vsyncpa [#allocation6], 0 }
   0x2   :  { %14 = vsyncpa [#allocation9], 0 }
   0x3   :  { %15 = vsyncpa [#allocation4], 0  ;;  %s7603_s24 = smov [#allocation5]   ;;  %s7604_s26 = smov [#allocation2]  }
   0x4   :  { %s37_s25 = sshll.u32 %s7603_s24, 4  ;;  %s23_s27 = sshll.u32 %s7604_s26, 4  ;;  %s38_s25 = int_to_ptr.vmem [resolvable:$true] %s37_s25  ;;  %s7657_s27 = int_to_ptr.vmem [resolvable:$true] %s23_s27 }
   0x5   :  { %s7485_s30 = scalar_lea.hbm %s9145_s3, 4480 }
   0x6   :  { %p7486_p0 = scmp.ne.s32.totalorder %s9145_s3, %s7485_s30  ;;  %p7489_p1 = scmp.lt.u32.totalorder %s7485_s30, %s9145_s3 }
   0x8   :  { %p7491_p2 = pnand %p7489_p1, %p7486_p0 }
   0xa   :  { %7494 = shalt.err (!%p7491_p2)
}
   0xb   :  { %s7495_s12 = scalar_lea.vmem %s38_s25, 4480  ;;  %p7500_p4 = scmp.lt.s32.totalorder %s38_s25, %s38_s25 }
   0xc   :  { %p7496_p3 = scmp.ne.s32.totalorder %s38_s25, %s7495_s12  ;;  %p7501_p5 = scmp.lt.s32.totalorder %s7495_s12, %s7495_s12 }
   0xe   :  { %p7502_p6 = por %p7501_p5, %p7500_p4 }
  0x10   :  { %p7503_p7 = pnand %p7502_p6, %p7496_p3 }
  0x12   :  { %7506 = shalt.err (!%p7503_p7)
}
  0x13   :  { %s7605_s13 = smov 64   ;;  %s7606_s14 = smov 4  }
  0x14   :  { %43 = dma.hbm_to_vmem [thread:$0]  %s9145_s3, 4480, %s38_s25, [#allocation6], %s7605_s13, %s7605_s13, %s7606_s14  }
  0x15   :  { %s7507_s19 = scalar_lea.hbm %s9143_s1, 1920 }
  0x16   :  { %p7508_p8 = scmp.ne.s32.totalorder %s9143_s1, %s7507_s19  ;;  %p7511_p9 = scmp.lt.u32.totalorder %s7507_s19, %s9143_s1 }
  0x18   :  { %p7513_p10 = pnand %p7511_p9, %p7508_p8 }
  0x1a   :  { %7516 = shalt.err (!%p7513_p10)
}
  0x1b   :  { %s7517_s24 = scalar_lea.vmem %s7657_s27, 1920  ;;  %p7522_p12 = scmp.lt.s32.totalorder %s7657_s27, %s7657_s27 }
  0x1c   :  { %p7518_p11 = scmp.ne.s32.totalorder %s7657_s27, %s7517_s24  ;;  %p7523_p13 = scmp.lt.s32.totalorder %s7517_s24, %s7517_s24 }
  0x1e   :  { %p7524_p0 = por %p7523_p13, %p7522_p12 }
  0x20   :  { %p7525_p1 = pnand %p7524_p0, %p7518_p11 }
  0x22   :  { %7528 = shalt.err (!%p7525_p1)
}
  0x23   :  { %29 = dma.hbm_to_vmem [thread:$0]  %s9143_s1, 1920, %s7657_s27, [#allocation3], %s7605_s13, %s7605_s13, %s7606_s14  }
  0x24   :  { %s7607_s26 = smov [#allocation7]   ;;  %s7529_s8 = scalar_lea.hbm %s9146_s4, 16640 }
  0x25   :  { %s49_s28 = sshll.u32 %s7607_s26, 4  ;;  %p7530_p2 = scmp.ne.s32.totalorder %s9146_s4, %s7529_s8  ;;  %s50_s28 = int_to_ptr.vmem [resolvable:$true] %s49_s28 }
  0x26   :  { %p7533_p3 = scmp.lt.u32.totalorder %s7529_s8, %s9146_s4 }
  0x28   :  { %p7535_p4 = pnand %p7533_p3, %p7530_p2 }
  0x2a   :  { %7538 = shalt.err (!%p7535_p4)
}
  0x2b   :  { %s7539_s15 = scalar_lea.vmem %s50_s28, 16640  ;;  %p7544_p6 = scmp.lt.s32.totalorder %s50_s28, %s50_s28 }
  0x2c   :  { %p7540_p5 = scmp.ne.s32.totalorder %s50_s28, %s7539_s15  ;;  %p7545_p7 = scmp.lt.s32.totalorder %s7539_s15, %s7539_s15 }
  0x2e   :  { %p7546_p8 = por %p7545_p7, %p7544_p6 }
  0x30   :  { %p7547_p9 = pnand %p7546_p8, %p7540_p5 }
  0x32   :  { %7550 = shalt.err (!%p7547_p9)
}
  0x33   :  { %s7608_s1 = smov 128   ;;  %s7609_s27 = smov 8  }
  0x34   :  { %55 = dma.hbm_to_vmem [thread:$0]  %s9146_s4, 16640, %s50_s28, [#allocation6], %s7608_s1, %s7608_s1, %s7609_s27  }
  0x35   :  { %s7610_s16 = smov [#allocation8]   ;;  %s7551_s20 = scalar_lea.hbm %s9148_s6, 12800 }
  0x36   :  { %s63_s17 = sshll.u32 %s7610_s16, 4  ;;  %p7552_p10 = scmp.ne.s32.totalorder %s9148_s6, %s7551_s20  ;;  %s64_s17 = int_to_ptr.vmem [resolvable:$true] %s63_s17 }
  0x37   :  { %p7555_p11 = scmp.lt.u32.totalorder %s7551_s20, %s9148_s6 }
  0x39   :  { %p7557_p12 = pnand %p7555_p11, %p7552_p10 }
  0x3b   :  { %7560 = shalt.err (!%p7557_p12)
}
  0x3c   :  { %s7561_s3 = scalar_lea.vmem %s64_s17, 12800  ;;  %p7566_p0 = scmp.lt.s32.totalorder %s64_s17, %s64_s17 }
  0x3d   :  { %p7562_p13 = scmp.ne.s32.totalorder %s64_s17, %s7561_s3  ;;  %p7567_p1 = scmp.lt.s32.totalorder %s7561_s3, %s7561_s3 }
  0x3f   :  { %p7568_p2 = por %p7567_p1, %p7566_p0 }
  0x41   :  { %p7569_p3 = pnand %p7568_p2, %p7562_p13 }
  0x43   :  { %7572 = shalt.err (!%p7569_p3)
}
  0x44   :  { %69 = dma.hbm_to_vmem [thread:$0]  %s9148_s6, 12800, %s64_s17, [#allocation9], %s7608_s1, %s7608_s1, %s7609_s27  }
  0x45   :  { %7595 = dma.done.wait [#allocation3], 1920  }
  0x46   :  { %7596 = vsyncadd [#allocation3], 4294965376 }
  0x47   :  { %7597 = dma.done.wait [#allocation6], 21120  }
  0x48   :  { %7598 = vsyncadd [#allocation6], 4294946176 }
  0x49   :  { %7599 = dma.done.wait [#allocation9], 12800  }
  0x4a   :  { %7600 = vsyncadd [#allocation9], 4294954496  ;;  %v7611_v0 = vmov 0.0   ;;  %vm7612_vm0 = vmmov 0   ;;  %v7133_v1 = vld [vmem:[#allocation2 + $0xc] sm:$0xff]   ;;  %vm195_vm1 = vcmask 1042432  }
  0x4b   :  { %7058 = vmatprep.subr.bf16.mxu1 %v7611_v0  ;;  %6254 = vmatprep.mubr.msk.bf16.mxu1 %vm7612_vm0, %v7611_v0  ;;  %v7134_v2 = vld [vmem:[#allocation2 + $0x14] ss:$0 sps:$4 sm:$0x77]   ;;  %v7721_v3 = vld [vmem:[%s9142_s0 + $0x18] sm:$0xff]  ;;  %v7726_v4 = vld [vmem:[%s9142_s0 + $0x20] sm:$0xff]  ;;  %v7613_v7 = vmov 0  }
  0x4c   :  { %6234 = vmatprep.subr.bf16.mxu0 %v7611_v0  ;;  %6238 = vmatprep.mubr.msk.bf16.mxu0 %vm7612_vm0, %v7611_v0  ;;  %v197_v5 = vsel %vm195_vm1, %v7134_v2, 0  ;;  %v7733_v6 = vpack.c.bf16 %v7726_v4, %v7721_v3  ;;  %v7737_v8 = vcombine.low %v7613_v7, %v7613_v7  ;;  %vm170_vm2 = vcmask 179200   ;;  %v7135_v9 = vld [vmem:[#allocation2] sm:$0xff]   ;;  %v7136_v10 = vld [vmem:[#allocation2 + $0x8] ss:$0 sps:$4 sm:$0x77]  }
  0x4d   :  { %7060 = vmatpush3.bf16.msra.mxu1 %v7133_v1  ;;  %6235 = vmatpush3.bf16.msra.mxu0 %v7133_v1  ;;  %v7137_v11 = vld [vmem:[#allocation2 + $0x18] sm:$0xff]   ;;  %v7746_v12 = vld [vmem:[%s9142_s0 + $0x28] sm:$0xff]  ;;  %v7138_v13 = vld [vmem:[#allocation2 + $0x20] ss:$0 sps:$4 sm:$0x77]   ;;  %v338_v15 = vsel %vm195_vm1, %v7136_v10, 0 }
  0x4e   :  { %7059 = vmatprep.subr.bf16.mxu1 %v7611_v0  ;;  %6236 = vmatprep.subr.bf16.mxu0 %v7611_v0  ;;  %v7755_v14 = vld [vmem:[%s9142_s0 + $0x30] sm:$0xff]  ;;  %v465_v17 = vsel %vm195_vm1, %v7138_v13, 0  ;;  %v86_v18 = vld [vmem:[%s9142_s0] sm:$0xff]  ;;  %v7774_v19 = vld [vmem:[%s9142_s0 + $0x38] sm:$0xff]  ;;  %v7882_v41 = vpack.c.bf16 %v7746_v12, %v7726_v4  ;;  %vm1778_vm3 = vcmask 1043456   ;;  %vm1779_vm4 = vcmask 1044480  }
  0x4f   :  { %v7763_v16 = vpack.c.bf16 %v7755_v14, %v7746_v12  ;;  %v7779_v20 = vld [vmem:[%s9142_s0 + $0x40] sm:$0xff]  ;;  %v102_v21 = vpack.c.bf16 %v86_v18, %v86_v18  ;;  %v7142_v24 = vld [vmem:[#allocation2 + $0x38] ss:$0 sps:$4 sm:$0x77]   ;;  %v95_v25 = vld [vmem:[%s9142_s0 + $0x48] sm:$0xff]  ;;  %v7894_v42 = vpack.c.bf16 %v7774_v19, %v7755_v14  ;;  %vm1772_vm5 = vcmask 203776  }
  0x50   :  { %v7792_v22 = vpack.c.bf16 %v7779_v20, %v7774_v19  ;;  %v96_v26 = vld [vmem:[%s9142_s0 + $0x50] sm:$0xff]  ;;  %v87_v27 = vld [vmem:[%s9142_s0 + $0x8] sm:$0xff]  ;;  %v755_v29 = vsel %vm195_vm1, %v7142_v24, 0  ;;  %v97_v32 = vld [vmem:[%s9142_s0 + $0x58] sm:$0xff]  ;;  %v7905_v43 = vpack.c.bf16 %v95_v25, %v7779_v20 }
  0x51   :  { %7061 = vmatpush3.bf16.msra.mxu1 %v197_v5  ;;  %6237 = vmatpush3.bf16.msra.mxu0 %v197_v5  ;;  %v7795_v23 = vcombine.low %v7613_v7, %v102_v21  ;;  %v88_v28 = vld [vmem:[%s9142_s0 + $0x10] sm:$0xff]  ;;  %v7818_v30 = vpack.c.bf16 %v96_v26, %v95_v25  ;;  %v98_v33 = vld [vmem:[%s9142_s0 + $0x60] sm:$0xff]  ;;  %v7140_v37 = vld [vmem:[#allocation2 + $0x2c] ss:$0 sps:$4 sm:$0x77]   ;;  %v7858_v39 = vpack.c.bf16 %v87_v27, %v86_v18 }
  0x52   :  { %6274 = vmatprep.subr.bf16.mxu1 %v7611_v0  ;;  %6314 = vmatprep.subr.bf16.mxu0 %v7611_v0  ;;  %v7820_v31 = vpack.c.bf16 %v88_v28, %v87_v27  ;;  %v7836_v34 = vpack.c.bf16 %v98_v33, %v97_v32  ;;  %v7141_v35 = vld [vmem:[#allocation2 + $0x30] sm:$0xff]   ;;  %v7139_v36 = vld [vmem:[#allocation2 + $0x24] sm:$0xff]   ;;  %v610_v38 = vsel %vm195_vm1, %v7140_v37, 0  ;;  %v7870_v40 = vpack.c.bf16 %v7721_v3, %v88_v28  ;;  %v7143_v50 = vld [vmem:[#allocation2 + $0x3c] sm:$0xff]  }
  0x53   :  { %v7915_v44 = vpack.c.bf16 %v97_v32, %v96_v26  ;;  %v99_v45 = vld [vmem:[%s9142_s0 + $0x68] sm:$0xff]  ;;  %v7146_v48 = vld [vmem:[#allocation2 + $0x50] ss:$0 sps:$4 sm:$0x77]   ;;  %v8011_v53 = vld [vmem:[%s9142_s0 + $0x78] sm:$0xff] }
  0x54   :  { %6255 = vmatmul.mubr.msk.bf16.vlgmr.msra.gmra.mrb[0].mxu1 %vm170_vm2, %v7733_v6  ;;  %6239 = vmatmul.mubr.msk.bf16.vlgmr.msra.gmra.mrb[0].mxu0 %vm170_vm2, %v7737_v8  ;;  %v7928_v46 = vpack.c.bf16 %v99_v45, %v98_v33  ;;  %v7145_v47 = vld [vmem:[#allocation2 + $0x48] sm:$0xff]   ;;  %v1037_v49 = vsel %vm195_vm1, %v7146_v48, 0  ;;  %v7144_v51 = vld [vmem:[#allocation2 + $0x44] ss:$0 sps:$4 sm:$0x77]   ;;  %v100_v54 = vld [vmem:[%s9142_s0 + $0x70] sm:$0xff] }
  0x55   :  { %6275 = vmatpush3.bf16.msra.mxu1 %v7135_v9  ;;  %6258 = vmatprep.mubr.msk.bf16.mxu1 %vm7612_vm0, %v7611_v0  ;;  %v898_v52 = vsel %vm195_vm1, %v7144_v51, 0  ;;  %v8017_v55 = vpack.c.bf16 %v8011_v53, %v100_v54  ;;  %v8027_v56 = vpack.c.bf16 %v100_v54, %v99_v45  ;;  %v7149_v57 = vld [vmem:[#allocation2 + $0x60] sm:$0xff]   ;;  %v7150_v58 = vld [vmem:[#allocation2 + $0x68] ss:$0 sps:$4 sm:$0x77]   ;;  %v7147_v60 = vld [vmem:[#allocation2 + $0x54] sm:$0xff]   ;;  %v117_v45 = vpack.c.bf16 %v8011_v53, %v8011_v53 }
  0x56   :  { %6242 = vmatprep.mubr.msk.bf16.mxu0 %vm7612_vm0, %v7611_v0  ;;  %6276 = vmatprep.subr.bf16.mxu1 %v7611_v0  ;;  %v1315_v59 = vsel %vm195_vm1, %v7150_v58, 0  ;;  %v7148_v61 = vld [vmem:[#allocation2 + $0x5c] ss:$0 sps:$4 sm:$0x77]  }
  0x57   :  { %6315 = vmatpush3.bf16.msra.mxu0 %v7137_v11  ;;  %v1176_v62 = vsel %vm195_vm1, %v7148_v61, 0 }
  0x58   :  { %6316 = vmatprep.subr.bf16.mxu0 %v7611_v0 }
  0x59   :  { %6277 = vmatpush3.bf16.msra.mxu1 %v338_v15 }
  0x5a   :  { %6354 = vmatprep.subr.bf16.mxu1 %v7611_v0 }
  0x5b   :  { %6317 = vmatpush3.bf16.msra.mxu0 %v465_v17 }
  0x5c   :  { %6259 = vmatmul.mubr.msk.bf16.gmra.mrb[4].mxu1 %vm170_vm2, %v7763_v16  ;;  %6243 = vmatmul.mubr.msk.bf16.gmra.mrb[4].mxu0 %vm170_vm2, %v7737_v8 }
  0x5d   :  { %6262 = vmatprep.mubr.msk.bf16.mxu1 %vm7612_vm0, %v7611_v0  ;;  %6246 = vmatprep.mubr.msk.bf16.mxu0 %vm7612_vm0, %v7611_v0 }
  0x5e   :  { %6394 = vmatprep.subr.bf16.mxu0 %v7611_v0 }
  0x64   :  { %6263 = vmatmul.mubr.msk.bf16.gmra.mrb[8].mxu1 %vm170_vm2, %v7792_v22  ;;  %6247 = vmatmul.mubr.msk.bf16.gmra.mrb[8].mxu0 %vm170_vm2, %v7795_v23 }
  0x65   :  { %6266 = vmatprep.mubr.msk.bf16.mxu1 %vm7612_vm0, %v7611_v0  ;;  %6250 = vmatprep.mubr.msk.bf16.mxu0 %vm7612_vm0, %v7611_v0 }
  0x6c   :  { %6267 = vmatmul.mubr.msk.bf16.gmra.mrb[12].mxu1 %vm170_vm2, %v7818_v30  ;;  %6251 = vmatmul.mubr.msk.bf16.gmra.mrb[12].mxu0 %vm170_vm2, %v7820_v31 }
  0x6d   :  { %6270 = vmatprep.mubr.msk.bf16.mxu1 %vm7612_vm0, %v7611_v0  ;;  %6318 = vmatprep.mubr.msk.bf16.mxu0 %vm7612_vm0, %v7611_v0 }
  0x74   :  { %6271 = vmatmul.mubr.msk.bf16.gmra.mrb[16].mxu1 %vm170_vm2, %v7836_v34  ;;  %6319 = vmatmul.mubr.msk.bf16.vlgmr.msra.gmra.mrb[16].mxu0 %vm170_vm2, %v7737_v8 }
  0x75   :  { %6278 = vmatprep.mubr.msk.bf16.mxu1 %vm7612_vm0, %v7611_v0  ;;  %6322 = vmatprep.mubr.msk.bf16.mxu0 %vm7612_vm0, %v7611_v0 }
  0x76   :  { %6395 = vmatpush3.bf16.msra.mxu0 %v7141_v35 }
  0x77   :  { %6396 = vmatprep.subr.bf16.mxu0 %v7611_v0 }
  0x7a   :  { %6397 = vmatpush3.bf16.msra.mxu0 %v755_v29 }
  0x7b   :  { %6474 = vmatprep.subr.bf16.mxu0 %v7611_v0 }
  0x7c   :  { %6279 = vmatmul.mubr.msk.bf16.vlgmr.msra.gmra.mrb[20].mxu1 %vm170_vm2, %v7737_v8  ;;  %6323 = vmatmul.mubr.msk.bf16.gmra.mrb[20].mxu0 %vm170_vm2, %v7737_v8 }
  0x7d   :  { %6355 = vmatpush3.bf16.msra.mxu1 %v7139_v36  ;;  %6282 = vmatprep.mubr.msk.bf16.mxu1 %vm7612_vm0, %v7611_v0 }
  0x7e   :  { %6326 = vmatprep.mubr.msk.bf16.mxu0 %vm7612_vm0, %v7611_v0  ;;  %6356 = vmatprep.subr.bf16.mxu1 %v7611_v0 }
  0x81   :  { %6357 = vmatpush3.bf16.msra.mxu1 %v610_v38 }
  0x82   :  { %6434 = vmatprep.subr.bf16.mxu1 %v7611_v0 }
  0x84   :  { %6283 = vmatmul.mubr.msk.bf16.gmra.mrb[24].mxu1 %vm170_vm2, %v7737_v8  ;;  %6327 = vmatmul.mubr.msk.bf16.gmra.mrb[24].mxu0 %vm170_vm2, %v7858_v39 }
  0x85   :  { %6286 = vmatprep.mubr.msk.bf16.mxu1 %vm7612_vm0, %v7611_v0  ;;  %6330 = vmatprep.mubr.msk.bf16.mxu0 %vm7612_vm0, %v7611_v0 }
  0x8c   :  { %6287 = vmatmul.mubr.msk.bf16.gmra.mrb[28].mxu1 %vm170_vm2, %v7737_v8  ;;  %6331 = vmatmul.mubr.msk.bf16.gmra.mrb[28].mxu0 %vm170_vm2, %v7870_v40 }
  0x8d   :  { %6290 = vmatprep.mubr.msk.bf16.mxu1 %vm7612_vm0, %v7611_v0  ;;  %6334 = vmatprep.mubr.msk.bf16.mxu0 %vm7612_vm0, %v7611_v0 }
  0x94   :  { %6291 = vmatmul.mubr.msk.bf16.gmra.mrb[32].mxu1 %vm170_vm2, %v7858_v39  ;;  %6335 = vmatmul.mubr.msk.bf16.gmra.mrb[32].mxu0 %vm170_vm2, %v7882_v41 }
  0x95   :  { %6294 = vmatprep.mubr.msk.bf16.mxu1 %vm7612_vm0, %v7611_v0  ;;  %6338 = vmatprep.mubr.msk.bf16.mxu0 %vm7612_vm0, %v7611_v0 }
  0x9c   :  { %6295 = vmatmul.mubr.msk.bf16.gmra.mrb[36].mxu1 %vm170_vm2, %v7870_v40  ;;  %6339 = vmatmul.mubr.msk.bf16.gmra.mrb[36].mxu0 %vm170_vm2, %v7894_v42 }
  0x9d   :  { %6298 = vmatprep.mubr.msk.bf16.mxu1 %vm7612_vm0, %v7611_v0  ;;  %6342 = vmatprep.mubr.msk.bf16.mxu0 %vm7612_vm0, %v7611_v0 }
  0xa4   :  { %6299 = vmatmul.mubr.msk.bf16.gmra.mrb[40].mxu1 %vm170_vm2, %v7882_v41  ;;  %6343 = vmatmul.mubr.msk.bf16.gmra.mrb[40].mxu0 %vm170_vm2, %v7905_v43 }
  0xa5   :  { %6302 = vmatprep.mubr.msk.bf16.mxu1 %vm7612_vm0, %v7611_v0  ;;  %6346 = vmatprep.mubr.msk.bf16.mxu0 %vm7612_vm0, %v7611_v0 }
  0xac   :  { %6303 = vmatmul.mubr.msk.bf16.gmra.mrb[44].mxu1 %vm170_vm2, %v7894_v42  ;;  %6347 = vmatmul.mubr.msk.bf16.gmra.mrb[44].mxu0 %vm170_vm2, %v7915_v44 }
  0xad   :  { %6306 = vmatprep.mubr.msk.bf16.mxu1 %vm7612_vm0, %v7611_v0  ;;  %6350 = vmatprep.mubr.msk.bf16.mxu0 %vm7612_vm0, %v7611_v0 }
  0xb4   :  { %6307 = vmatmul.mubr.msk.bf16.gmra.mrb[48].mxu1 %vm170_vm2, %v7905_v43  ;;  %6351 = vmatmul.mubr.msk.bf16.gmra.mrb[48].mxu0 %vm170_vm2, %v7928_v46 }
  0xb5   :  { %6310 = vmatprep.mubr.msk.bf16.mxu1 %vm7612_vm0, %v7611_v0  ;;  %6398 = vmatprep.mubr.msk.bf16.mxu0 %vm7612_vm0, %v7611_v0 }
  0xbc   :  { %6311 = vmatmul.mubr.msk.bf16.gmra.mrb[52].mxu1 %vm170_vm2, %v7915_v44  ;;  %6399 = vmatmul.mubr.msk.bf16.vlgmr.msra.gmra.mrb[52].mxu0 %vm170_vm2, %v7737_v8 }
  0xbd   :  { %6358 = vmatprep.mubr.msk.bf16.mxu1 %vm7612_vm0, %v7611_v0  ;;  %6402 = vmatprep.mubr.msk.bf16.mxu0 %vm7612_vm0, %v7611_v0 }
  0xbe   :  { %6475 = vmatpush3.bf16.msra.mxu0 %v7145_v47 }
  0xbf   :  { %6476 = vmatprep.subr.bf16.mxu0 %v7611_v0 }
  0xc2   :  { %6477 = vmatpush3.bf16.msra.mxu0 %v1037_v49 }
  0xc3   :  { %6554 = vmatprep.subr.bf16.mxu0 %v7611_v0 }
  0xc4   :  { %6359 = vmatmul.mubr.msk.bf16.vlgmr.msra.gmra.mrb[56].mxu1 %vm170_vm2, %v7737_v8  ;;  %6403 = vmatmul.mubr.msk.bf16.gmra.mrb[56].mxu0 %vm170_vm2, %v7858_v39 }
  0xc5   :  { %6435 = vmatpush3.bf16.msra.mxu1 %v7143_v50  ;;  %6362 = vmatprep.mubr.msk.bf16.mxu1 %vm7612_vm0, %v7611_v0  ;;  %v8144_v50 = vcombine.low %v117_v45, %v7613_v7 }
  0xc6   :  { %6406 = vmatprep.mubr.msk.bf16.mxu0 %vm7612_vm0, %v7611_v0  ;;  %6436 = vmatprep.subr.bf16.mxu1 %v7611_v0 }
  0xc9   :  { %6437 = vmatpush3.bf16.msra.mxu1 %v898_v52 }
  0xca   :  { %6514 = vmatprep.subr.bf16.mxu1 %v7611_v0 }
  0xcc   :  { %6363 = vmatmul.mubr.msk.bf16.gmra.mrb[60].mxu1 %vm170_vm2, %v7795_v23  ;;  %6407 = vmatmul.mubr.msk.bf16.gmra.mrb[60].mxu0 %vm170_vm2, %v7870_v40 }
  0xcd   :  { %6366 = vmatprep.mubr.msk.bf16.mxu1 %vm7612_vm0, %v7611_v0  ;;  %6410 = vmatprep.mubr.msk.bf16.mxu0 %vm7612_vm0, %v7611_v0 }
  0xd4   :  { %6367 = vmatmul.mubr.msk.bf16.gmra.mrb[64].mxu1 %vm170_vm2, %v7820_v31  ;;  %6411 = vmatmul.mubr.msk.bf16.gmra.mrb[64].mxu0 %vm170_vm2, %v7882_v41 }
  0xd5   :  { %6370 = vmatprep.mubr.msk.bf16.mxu1 %vm7612_vm0, %v7611_v0  ;;  %6414 = vmatprep.mubr.msk.bf16.mxu0 %vm7612_vm0, %v7611_v0 }
  0xdc   :  { %6371 = vmatmul.mubr.msk.bf16.gmra.mrb[68].mxu1 %vm170_vm2, %v7733_v6  ;;  %6415 = vmatmul.mubr.msk.bf16.gmra.mrb[68].mxu0 %vm170_vm2, %v7894_v42 }
  0xdd   :  { %6374 = vmatprep.mubr.msk.bf16.mxu1 %vm7612_vm0, %v7611_v0  ;;  %6418 = vmatprep.mubr.msk.bf16.mxu0 %vm7612_vm0, %v7611_v0 }
  0xe4   :  { %6375 = vmatmul.mubr.msk.bf16.gmra.mrb[72].mxu1 %vm170_vm2, %v7763_v16  ;;  %6419 = vmatmul.mubr.msk.bf16.gmra.mrb[72].mxu0 %vm170_vm2, %v7905_v43 }
  0xe5   :  { %6378 = vmatprep.mubr.msk.bf16.mxu1 %vm7612_vm0, %v7611_v0  ;;  %6422 = vmatprep.mubr.msk.bf16.mxu0 %vm7612_vm0, %v7611_v0 }
  0xec   :  { %6379 = vmatmul.mubr.msk.bf16.gmra.mrb[76].mxu1 %vm170_vm2, %v7792_v22  ;;  %6423 = vmatmul.mubr.msk.bf16.gmra.mrb[76].mxu0 %vm170_vm2, %v7915_v44 }
  0xed   :  { %6382 = vmatprep.mubr.msk.bf16.mxu1 %vm7612_vm0, %v7611_v0  ;;  %6426 = vmatprep.mubr.msk.bf16.mxu0 %vm7612_vm0, %v7611_v0 }
  0xf4   :  { %6383 = vmatmul.mubr.msk.bf16.gmra.mrb[80].mxu1 %vm170_vm2, %v7818_v30  ;;  %6427 = vmatmul.mubr.msk.bf16.gmra.mrb[80].mxu0 %vm170_vm2, %v7928_v46 }
  0xf5   :  { %6386 = vmatprep.mubr.msk.bf16.mxu1 %vm7612_vm0, %v7611_v0  ;;  %6430 = vmatprep.mubr.msk.bf16.mxu0 %vm7612_vm0, %v7611_v0 }
  0xfc   :  { %6387 = vmatmul.mubr.msk.bf16.gmra.mrb[84].mxu1 %vm170_vm2, %v7836_v34  ;;  %6431 = vmatmul.mubr.msk.bf16.gmra.mrb[84].mxu0 %vm170_vm2, %v8017_v55 }
  0xfd   :  { %6390 = vmatprep.mubr.msk.bf16.mxu1 %vm7612_vm0, %v7611_v0  ;;  %6478 = vmatprep.mubr.msk.bf16.mxu0 %vm7612_vm0, %v7611_v0 }
 0x104   :  { %6391 = vmatmul.mubr.msk.bf16.gmra.mrb[88].mxu1 %vm170_vm2, %v8027_v56  ;;  %6479 = vmatmul.mubr.msk.bf16.vlgmr.msra.gmra.mrb[88].mxu0 %vm170_vm2, %v7858_v39 }
 0x105   :  { %6438 = vmatprep.mubr.msk.bf16.mxu1 %vm7612_vm0, %v7611_v0  ;;  %6482 = vmatprep.mubr.msk.bf16.mxu0 %vm7612_vm0, %v7611_v0 }
 0x106   :  { %6555 = vmatpush3.bf16.msra.mxu0 %v7149_v57 }
 0x107   :  { %6556 = vmatprep.subr.bf16.mxu0 %v7611_v0 }
 0x10a   :  { %6557 = vmatpush3.bf16.msra.mxu0 %v1315_v59 }
 0x10b   :  { %6634 = vmatprep.subr.bf16.mxu0 %v7611_v0 }
 0x10c   :  { %6439 = vmatmul.mubr.msk.bf16.vlgmr.msra.gmra.mrb[92].mxu1 %vm170_vm2, %v7795_v23  ;;  %6483 = vmatmul.mubr.msk.bf16.gmra.mrb[92].mxu0 %vm170_vm2, %v7870_v40 }
 0x10d   :  { %6515 = vmatpush3.bf16.msra.mxu1 %v7147_v60  ;;  %6442 = vmatprep.mubr.msk.bf16.mxu1 %vm7612_vm0, %v7611_v0 }
 0x10e   :  { %6486 = vmatprep.mubr.msk.bf16.mxu0 %vm7612_vm0, %v7611_v0  ;;  %6516 = vmatprep.subr.bf16.mxu1 %v7611_v0 }
 0x111   :  { %6517 = vmatpush3.bf16.msra.mxu1 %v1176_v62 }
 0x112   :  { %6594 = vmatprep.subr.bf16.mxu1 %v7611_v0 }
 0x114   :  { %6443 = vmatmul.mubr.msk.bf16.gmra.mrb[96].mxu1 %vm170_vm2, %v7820_v31  ;;  %6487 = vmatmul.mubr.msk.bf16.gmra.mrb[96].mxu0 %vm170_vm2, %v7882_v41 }
 0x115   :  { %6446 = vmatprep.mubr.msk.bf16.mxu1 %vm7612_vm0, %v7611_v0  ;;  %6490 = vmatprep.mubr.msk.bf16.mxu0 %vm7612_vm0, %v7611_v0 }
 0x11c   :  { %6447 = vmatmul.mubr.msk.bf16.gmra.mrb[100].mxu1 %vm170_vm2, %v7733_v6  ;;  %6491 = vmatmul.mubr.msk.bf16.gmra.mrb[100].mxu0 %vm170_vm2, %v7894_v42 }
 0x11d   :  { %6450 = vmatprep.mubr.msk.bf16.mxu1 %vm7612_vm0, %v7611_v0  ;;  %6494 = vmatprep.mubr.msk.bf16.mxu0 %vm7612_vm0, %v7611_v0 }
 0x124   :  { %6451 = vmatmul.mubr.msk.bf16.gmra.mrb[104].mxu1 %vm170_vm2, %v7763_v16  ;;  %6495 = vmatmul.mubr.msk.bf16.gmra.mrb[104].mxu0 %vm170_vm2, %v7905_v43 }
 0x125   :  { %6454 = vmatprep.mubr.msk.bf16.mxu1 %vm7612_vm0, %v7611_v0  ;;  %6498 = vmatprep.mubr.msk.bf16.mxu0 %vm7612_vm0, %v7611_v0 }
 0x127   :  { %v8075_v63 = vpop.f32.mrb[0].mxu1  ;;  %v8077_v1 = vpop.f32.mrb[0].mxu0 }
 0x128   :  { %v6256_v2 = vpop.f32.mrb[1].mxu1  ;;  %v6240_v3 = vpop.f32.mrb[1].mxu0 }
 0x129   :  { %v8079_v4 = vpop.f32.mrb[2].mxu1  ;;  %v8081_v5 = vpop.f32.mrb[2].mxu0  ;;  %v7151_v3 = vld [vmem:[#allocation2 + $0x6c] sm:$0xff]  }
 0x12a   :  { %v6257_v9 = vpop.f32.mrb[3].mxu1  ;;  %v6241_v10 = vpop.f32.mrb[3].mxu0 }
 0x12c   :  { %6455 = vmatmul.mubr.msk.bf16.gmra.mrb[108].mxu1 %vm170_vm2, %v7792_v22  ;;  %6499 = vmatmul.mubr.msk.bf16.gmra.mrb[108].mxu0 %vm170_vm2, %v7915_v44 }
 0x12d   :  { %6458 = vmatprep.mubr.msk.bf16.mxu1 %vm7612_vm0, %v7611_v0  ;;  %6502 = vmatprep.mubr.msk.bf16.mxu0 %vm7612_vm0, %v7611_v0 }
 0x12f   :  { %v8091_v11 = vpop.f32.mrb[4].mxu1  ;;  %v8093_v12 = vpop.f32.mrb[4].mxu0 }
 0x130   :  { %v6260_v13 = vpop.f32.mrb[5].mxu1  ;;  %v6244_v14 = vpop.f32.mrb[5].mxu0 }
 0x131   :  { %v8095_v15 = vpop.f32.mrb[6].mxu1  ;;  %v8097_v17 = vpop.f32.mrb[6].mxu0 }
 0x132   :  { %v6261_v18 = vpop.f32.mrb[7].mxu1  ;;  %v6245_v19 = vpop.f32.mrb[7].mxu0 }
 0x134   :  { %6459 = vmatmul.mubr.msk.bf16.gmra.mrb[112].mxu1 %vm170_vm2, %v7818_v30  ;;  %6503 = vmatmul.mubr.msk.bf16.gmra.mrb[112].mxu0 %vm170_vm2, %v7928_v46 }
 0x135   :  { %6462 = vmatprep.mubr.msk.bf16.mxu1 %vm7612_vm0, %v7611_v0  ;;  %6506 = vmatprep.mubr.msk.bf16.mxu0 %vm7612_vm0, %v7611_v0 }
 0x137   :  { %v8107_v20 = vpop.f32.mrb[8].mxu1  ;;  %v8109_v21 = vpop.f32.mrb[8].mxu0 }
 0x138   :  { %v6264_v23 = vpop.f32.mrb[9].mxu1  ;;  %v6248_v24 = vpop.f32.mrb[9].mxu0 }
 0x139   :  { %v8111_v25 = vpop.f32.mrb[10].mxu1  ;;  %v8113_v26 = vpop.f32.mrb[10].mxu0 }
 0x13a   :  { %v6265_v27 = vpop.f32.mrb[11].mxu1  ;;  %v6249_v28 = vpop.f32.mrb[11].mxu0 }
 0x13c   :  { %6463 = vmatmul.mubr.msk.bf16.gmra.mrb[116].mxu1 %vm170_vm2, %v7836_v34  ;;  %6507 = vmatmul.mubr.msk.bf16.gmra.mrb[116].mxu0 %vm170_vm2, %v8017_v55 }
 0x13d   :  { %6466 = vmatprep.mubr.msk.bf16.mxu1 %vm7612_vm0, %v7611_v0  ;;  %6510 = vmatprep.mubr.msk.bf16.mxu0 %vm7612_vm0, %v7611_v0 }
 0x13f   :  { %v8123_v29 = vpop.f32.mrb[12].mxu1  ;;  %v8125_v32 = vpop.f32.mrb[12].mxu0 }
 0x140   :  { %v6268_v33 = vpop.f32.mrb[13].mxu1  ;;  %v6252_v35 = vpop.f32.mrb[13].mxu0 }
 0x141   :  { %v8127_v36 = vpop.f32.mrb[14].mxu1  ;;  %v8129_v37 = vpop.f32.mrb[14].mxu0 }
 0x142   :  { %v6269_v38 = vpop.f32.mrb[15].mxu1  ;;  %v6253_v39 = vpop.f32.mrb[15].mxu0 }
 0x144   :  { %6467 = vmatmul.mubr.msk.bf16.gmra.mrb[120].mxu1 %vm170_vm2, %v8027_v56  ;;  %6511 = vmatmul.mubr.msk.bf16.gmra.mrb[120].mxu0 %vm170_vm2, %v7737_v8 }
 0x145   :  { %6470 = vmatprep.mubr.msk.bf16.mxu1 %vm7612_vm0, %v7611_v0  ;;  %6558 = vmatprep.mubr.msk.bf16.mxu0 %vm7612_vm0, %v7611_v0 }
 0x147   :  { %v8141_v47 = vpop.f32.mrb[16].mxu1  ;;  %v501_v48 = vpop.f32.mrb[16].mxu0 }
 0x148   :  { %v6272_v49 = vpop.f32.mrb[17].mxu1  ;;  %v6320_v51 = vpop.f32.mrb[17].mxu0 }
 0x149   :  { %v8146_v52 = vpop.f32.mrb[18].mxu1  ;;  %v504_v53 = vpop.f32.mrb[18].mxu0 }
 0x14a   :  { %v6273_v54 = vpop.f32.mrb[19].mxu1  ;;  %v6321_v57 = vpop.f32.mrb[19].mxu0 }
 0x14c   :  { %6471 = vmatmul.mubr.msk.bf16.gmra.mrb[124].mxu1 %vm170_vm2, %v8144_v50  ;;  %6559 = vmatmul.mubr.msk.bf16.vlgmr.msra.gmra.mrb[124].mxu0 %vm170_vm2, %v7870_v40  ;;  %v7152_v40 = vld [vmem:[#allocation2 + $0x74] ss:$0 sps:$4 sm:$0x77]  }
 0x14d   :  { %6518 = vmatprep.mubr.msk.bf16.mxu1 %vm7612_vm0, %v7611_v0  ;;  %6562 = vmatprep.mubr.msk.bf16.mxu0 %vm7612_vm0, %v7611_v0 }
 0x14f   :  { %v374_v58 = vpop.f32.mrb[20].mxu1  ;;  %v509_v59 = vpop.f32.mrb[20].mxu0 }
 0x150   :  { %v375_v60 = vadd.f32 %v374_v58, %v8077_v1  ;;  %v6280_v61 = vpop.f32.mrb[21].mxu1  ;;  %v6324_v62 = vpop.f32.mrb[21].mxu0  ;;  %v1454_v1 = vsel %vm195_vm1, %v7152_v40, 0 }
 0x151   :  { %v377_v2 = vpop.f32.mrb[22].mxu1  ;;  %v512_v9 = vpop.f32.mrb[22].mxu0 }
 0x152   :  { %v378_v10 = vadd.f32 %v377_v2, %v8081_v5  ;;  %v6281_v13 = vpop.f32.mrb[23].mxu1  ;;  %v6325_v14 = vpop.f32.mrb[23].mxu0  ;;  %v8158_v18 = vadd.f32 %v501_v48, %v375_v60 }
 0x154   :  { %6519 = vmatmul.mubr.msk.bf16.vlgmr.msra.gmra.mrb[128].mxu1 %vm170_vm2, %v7820_v31  ;;  %6563 = vmatmul.mubr.msk.bf16.gmra.mrb[128].mxu0 %vm170_vm2, %v7882_v41  ;;  %v8164_v19 = vadd.f32 %v504_v53, %v378_v10 }
 0x155   :  { %6595 = vmatpush3.bf16.msra.mxu1 %v7151_v3  ;;  %6522 = vmatprep.mubr.msk.bf16.mxu1 %vm7612_vm0, %v7611_v0 }
 0x156   :  { %6566 = vmatprep.mubr.msk.bf16.mxu0 %vm7612_vm0, %v7611_v0  ;;  %6596 = vmatprep.subr.bf16.mxu1 %v7611_v0 }
 0x157   :  { %v382_v5 = vpop.f32.mrb[24].mxu1  ;;  %v517_v23 = vpop.f32.mrb[24].mxu0 }
 0x158   :  { %v383_v31 = vadd.f32 %v382_v5, %v8093_v12  ;;  %v6284_v24 = vpop.f32.mrb[25].mxu1  ;;  %v6328_v27 = vpop.f32.mrb[25].mxu0 }
 0x159   :  { %v385_v41 = vpop.f32.mrb[26].mxu1  ;;  %v520_v28 = vpop.f32.mrb[26].mxu0  ;;  %6597 = vmatpush3.bf16.msra.mxu1 %v1454_v1 }
 0x15a   :  { %v386_v33 = vadd.f32 %v385_v41, %v8097_v17  ;;  %v6285_v35 = vpop.f32.mrb[27].mxu1  ;;  %v6329_v38 = vpop.f32.mrb[27].mxu0  ;;  %v8174_v39 = vadd.f32 %v509_v59, %v383_v31  ;;  %6650 = vmatprep.subr.bf16.mxu1 %v7611_v0 }
 0x15c   :  { %6523 = vmatmul.mubr.msk.bf16.gmra.mrb[132].mxu1 %vm170_vm2, %v7733_v6  ;;  %6567 = vmatmul.mubr.msk.bf16.gmra.mrb[132].mxu0 %vm170_vm2, %v7894_v42  ;;  %v8181_v12 = vadd.f32 %v512_v9, %v386_v33 }
 0x15d   :  { %6526 = vmatprep.mubr.msk.bf16.mxu1 %vm7612_vm0, %v7611_v0  ;;  %6570 = vmatprep.mubr.msk.bf16.mxu0 %vm7612_vm0, %v7611_v0 }
 0x15f   :  { %v390_v17 = vpop.f32.mrb[28].mxu1  ;;  %v525_v45 = vpop.f32.mrb[28].mxu0 }
 0x160   :  { %v6288_v48 = vpop.f32.mrb[29].mxu1  ;;  %v391_v49 = vadd.f32 %v390_v17, %v8109_v21  ;;  %v6332_v51 = vpop.f32.mrb[29].mxu0 }
 0x161   :  { %v393_v53 = vpop.f32.mrb[30].mxu1  ;;  %v528_v54 = vpop.f32.mrb[30].mxu0 }
 0x162   :  { %v394_v57 = vadd.f32 %v393_v53, %v8113_v26  ;;  %v8189_v58 = vadd.f32 %v517_v23, %v391_v49  ;;  %v6289_v42 = vpop.f32.mrb[31].mxu1  ;;  %v6333_v59 = vpop.f32.mrb[31].mxu0 }
 0x164   :  { %v8191_v60 = vadd.f32 %v520_v28, %v394_v57  ;;  %6527 = vmatmul.mubr.msk.bf16.gmra.mrb[136].mxu1 %vm170_vm2, %v7763_v16  ;;  %6571 = vmatmul.mubr.msk.bf16.gmra.mrb[136].mxu0 %vm170_vm2, %v7905_v43 }
 0x165   :  { %6530 = vmatprep.mubr.msk.bf16.mxu1 %vm7612_vm0, %v7611_v0  ;;  %6574 = vmatprep.mubr.msk.bf16.mxu0 %vm7612_vm0, %v7611_v0 }
 0x167   :  { %v398_v21 = vpop.f32.mrb[32].mxu1  ;;  %v533_v26 = vpop.f32.mrb[32].mxu0 }
 0x168   :  { %v399_v61 = vadd.f32 %v398_v21, %v8125_v32  ;;  %v6292_v62 = vpop.f32.mrb[33].mxu1  ;;  %v6336_v2 = vpop.f32.mrb[33].mxu0 }
 0x169   :  { %v401_v3 = vpop.f32.mrb[34].mxu1  ;;  %v536_v9 = vpop.f32.mrb[34].mxu0 }
 0x16a   :  { %v402_v10 = vadd.f32 %v401_v3, %v8129_v37  ;;  %v8203_v13 = vadd.f32 %v525_v45, %v399_v61  ;;  %v6293_v14 = vpop.f32.mrb[35].mxu1  ;;  %v6337_v43 = vpop.f32.mrb[35].mxu0 }
 0x16c   :  { %v8205_v40 = vadd.f32 %v528_v54, %v402_v10  ;;  %6531 = vmatmul.mubr.msk.bf16.gmra.mrb[140].mxu1 %vm170_vm2, %v7792_v22  ;;  %6575 = vmatmul.mubr.msk.bf16.gmra.mrb[140].mxu0 %vm170_vm2, %v7915_v44 }
 0x16d   :  { %6534 = vmatprep.mubr.msk.bf16.mxu1 %vm7612_vm0, %v7611_v0  ;;  %6578 = vmatprep.mubr.msk.bf16.mxu0 %vm7612_vm0, %v7611_v0 }
 0x16f   :  { %v406_v32 = vpop.f32.mrb[36].mxu1  ;;  %v541_v37 = vpop.f32.mrb[36].mxu0 }
 0x170   :  { %v407_v1 = vadd.f32 %v406_v32, %v8075_v63  ;;  %v6296_v5 = vpop.f32.mrb[37].mxu1  ;;  %v6340_v23 = vpop.f32.mrb[37].mxu0 }
 0x171   :  { %v409_v31 = vpop.f32.mrb[38].mxu1  ;;  %v544_v24 = vpop.f32.mrb[38].mxu0 }
 0x172   :  { %v410_v27 = vadd.f32 %v409_v31, %v8079_v4  ;;  %v8217_v41 = vadd.f32 %v533_v26, %v407_v1  ;;  %v6297_v28 = vpop.f32.mrb[39].mxu1  ;;  %v6341_v44 = vpop.f32.mrb[39].mxu0 }
 0x174   :  { %v8219_v33 = vadd.f32 %v536_v9, %v410_v27  ;;  %6535 = vmatmul.mubr.msk.bf16.gmra.mrb[144].mxu1 %vm170_vm2, %v7818_v30  ;;  %6579 = vmatmul.mubr.msk.bf16.gmra.mrb[144].mxu0 %vm170_vm2, %v7928_v46 }
 0x175   :  { %6538 = vmatprep.mubr.msk.bf16.mxu1 %vm7612_vm0, %v7611_v0  ;;  %6582 = vmatprep.mubr.msk.bf16.mxu0 %vm7612_vm0, %v7611_v0 }
 0x177   :  { %v414_v63 = vpop.f32.mrb[40].mxu1  ;;  %v549_v4 = vpop.f32.mrb[40].mxu0 }
 0x178   :  { %v415_v35 = vadd.f32 %v414_v63, %v8091_v11  ;;  %v6300_v38 = vpop.f32.mrb[41].mxu1  ;;  %v6344_v17 = vpop.f32.mrb[41].mxu0 }
 0x179   :  { %v417_v45 = vpop.f32.mrb[42].mxu1  ;;  %v552_v48 = vpop.f32.mrb[42].mxu0 }
 0x17a   :  { %v418_v49 = vadd.f32 %v417_v45, %v8095_v15  ;;  %v8231_v51 = vadd.f32 %v541_v37, %v415_v35  ;;  %v6301_v53 = vpop.f32.mrb[43].mxu1  ;;  %v6345_v46 = vpop.f32.mrb[43].mxu0 }
 0x17c   :  { %v8233_v54 = vadd.f32 %v544_v24, %v418_v49  ;;  %6539 = vmatmul.mubr.msk.bf16.gmra.mrb[148].mxu1 %vm170_vm2, %v7836_v34  ;;  %6583 = vmatmul.mubr.msk.bf16.gmra.mrb[148].mxu0 %vm170_vm2, %v8017_v55 }
 0x17d   :  { %6542 = vmatprep.mubr.msk.bf16.mxu1 %vm7612_vm0, %v7611_v0  ;;  %6586 = vmatprep.mubr.msk.bf16.mxu0 %vm7612_vm0, %v7611_v0 }
 0x17f   :  { %v422_v11 = vpop.f32.mrb[44].mxu1  ;;  %v557_v15 = vpop.f32.mrb[44].mxu0 }
 0x180   :  { %v423_v57 = vadd.f32 %v422_v11, %v8107_v20  ;;  %v6304_v42 = vpop.f32.mrb[45].mxu1  ;;  %v6348_v59 = vpop.f32.mrb[45].mxu0 }
 0x181   :  { %v425_v21 = vpop.f32.mrb[46].mxu1  ;;  %v560_v26 = vpop.f32.mrb[46].mxu0 }
 0x182   :  { %v426_v61 = vadd.f32 %v425_v21, %v8111_v25  ;;  %v8245_v62 = vadd.f32 %v549_v4, %v423_v57  ;;  %v6305_v2 = vpop.f32.mrb[47].mxu1  ;;  %v6349_v55 = vpop.f32.mrb[47].mxu0 }
 0x184   :  { %v8247_v3 = vadd.f32 %v552_v48, %v426_v61  ;;  %6543 = vmatmul.mubr.msk.bf16.gmra.mrb[152].mxu1 %vm170_vm2, %v8027_v56  ;;  %6587 = vmatmul.mubr.msk.bf16.gmra.mrb[152].mxu0 %vm170_vm2, %v7737_v8 }
 0x185   :  { %6546 = vmatprep.mubr.msk.bf16.mxu1 %vm7612_vm0, %v7611_v0  ;;  %6590 = vmatprep.mubr.msk.bf16.mxu0 %vm7612_vm0, %v7611_v0 }
 0x187   :  { %v430_v20 = vpop.f32.mrb[48].mxu1  ;;  %v565_v25 = vpop.f32.mrb[48].mxu0 }
 0x188   :  { %v431_v9 = vadd.f32 %v430_v20, %v8123_v29  ;;  %v6308_v10 = vpop.f32.mrb[49].mxu1  ;;  %v6352_v14 = vpop.f32.mrb[49].mxu0 }
 0x189   :  { %v433_v43 = vpop.f32.mrb[50].mxu1  ;;  %v568_v32 = vpop.f32.mrb[50].mxu0 }
 0x18a   :  { %v434_v37 = vadd.f32 %v433_v43, %v8127_v36  ;;  %v8259_v1 = vadd.f32 %v557_v15, %v431_v9  ;;  %v6309_v5 = vpop.f32.mrb[51].mxu1  ;;  %v6353_v23 = vpop.f32.mrb[51].mxu0 }
 0x18c   :  { %v8261_v31 = vadd.f32 %v560_v26, %v434_v37  ;;  %6547 = vmatmul.mubr.msk.bf16.gmra.mrb[156].mxu1 %vm170_vm2, %v8144_v50  ;;  %6591 = vmatmul.mubr.msk.bf16.gmra.mrb[156].mxu0 %vm170_vm2, %v7737_v8 }
 0x18d   :  { %6550 = vmatprep.mubr.msk.bf16.mxu1 %vm7612_vm0, %v7611_v0  ;;  %6638 = vmatprep.mubr.msk.bf16.mxu0 %vm7612_vm0, %v7611_v0 }
 0x18f   :  { %v438_v29 = vpop.f32.mrb[52].mxu1  ;;  %v791_v36 = vpop.f32.mrb[52].mxu0 }
 0x190   :  { %v439_v24 = vadd.f32 %v438_v29, %v8141_v47  ;;  %v6312_v27 = vpop.f32.mrb[53].mxu1  ;;  %v6400_v28 = vpop.f32.mrb[53].mxu0 }
 0x191   :  { %v441_v44 = vpop.f32.mrb[54].mxu1  ;;  %v794_v63 = vpop.f32.mrb[54].mxu0 }
 0x192   :  { %v442_v4 = vadd.f32 %v441_v44, %v8146_v52  ;;  %v8273_v35 = vadd.f32 %v565_v25, %v439_v24  ;;  %v6313_v38 = vpop.f32.mrb[55].mxu1  ;;  %v6401_v17 = vpop.f32.mrb[55].mxu0 }
 0x194   :  { %v8275_v45 = vadd.f32 %v568_v32, %v442_v4  ;;  %6551 = vmatmul.mubr.msk.bf16.gmra.mrb[160].mxu1 %vm170_vm2, %v7737_v8 }
 0x195   :  { %6598 = vmatprep.mubr.msk.bf16.mxu1 %vm7612_vm0, %v7611_v0 }
 0x197   :  { %v646_v48 = vpop.f32.mrb[56].mxu1  ;;  %v799_v47 = vpop.f32.mrb[56].mxu0 }
 0x198   :  { %v717_v49 = vadd.f32 %v646_v48, %v8158_v18  ;;  %v6360_v53 = vpop.f32.mrb[57].mxu1  ;;  %v6404_v46 = vpop.f32.mrb[57].mxu0 }
 0x199   :  { %v649_v11 = vpop.f32.mrb[58].mxu1  ;;  %v802_v52 = vpop.f32.mrb[58].mxu0 }
 0x19a   :  { %v718_v15 = vadd.f32 %v649_v11, %v8164_v19  ;;  %v8283_v57 = vadd.f32 %v791_v36, %v717_v49  ;;  %v6361_v42 = vpop.f32.mrb[59].mxu1  ;;  %v6405_v59 = vpop.f32.mrb[59].mxu0 }
 0x19c   :  { %v8285_v21 = vadd.f32 %v794_v63, %v718_v15  ;;  %6599 = vmatmul.mubr.msk.bf16.vlgmr.msra.gmra.mrb[164].mxu1 %vm170_vm2, %v7733_v6 }
 0x19d   :  { %6602 = vmatprep.mubr.msk.bf16.mxu1 %vm7612_vm0, %v7611_v0 }
 0x19f   :  { %v654_v26 = vpop.f32.mrb[60].mxu1  ;;  %v807_v18 = vpop.f32.mrb[60].mxu0 }
 0x1a0   :  { %v719_v61 = vadd.f32 %v654_v26, %v8174_v39  ;;  %v6364_v2 = vpop.f32.mrb[61].mxu1  ;;  %v6408_v55 = vpop.f32.mrb[61].mxu0 }
 0x1a1   :  { %v657_v20 = vpop.f32.mrb[62].mxu1  ;;  %v810_v19 = vpop.f32.mrb[62].mxu0 }
 0x1a2   :  { %v720_v25 = vadd.f32 %v657_v20, %v8181_v12  ;;  %v8293_v9 = vadd.f32 %v799_v47, %v719_v61  ;;  %v6365_v10 = vpop.f32.mrb[63].mxu1  ;;  %v6409_v14 = vpop.f32.mrb[63].mxu0 }
 0x1a4   :  { %v8295_v43 = vadd.f32 %v802_v52, %v720_v25  ;;  %6603 = vmatmul.mubr.msk.bf16.gmra.mrb[168].mxu1 %vm170_vm2, %v7763_v16 }
 0x1a5   :  { %6606 = vmatprep.mubr.msk.bf16.mxu1 %vm7612_vm0, %v7611_v0 }
 0x1a7   :  { %v662_v6 = vpop.f32.mrb[64].mxu1  ;;  %v815_v39 = vpop.f32.mrb[64].mxu0 }
 0x1a8   :  { %v721_v32 = vadd.f32 %v662_v6, %v8189_v58  ;;  %v6368_v37 = vpop.f32.mrb[65].mxu1  ;;  %v6412_v5 = vpop.f32.mrb[65].mxu0 }
 0x1a9   :  { %v665_v23 = vpop.f32.mrb[66].mxu1  ;;  %v818_v12 = vpop.f32.mrb[66].mxu0 }
 0x1aa   :  { %v722_v29 = vadd.f32 %v665_v23, %v8191_v60  ;;  %v8303_v36 = vadd.f32 %v807_v18, %v721_v32  ;;  %v6369_v24 = vpop.f32.mrb[67].mxu1  ;;  %v6413_v27 = vpop.f32.mrb[67].mxu0 }
 0x1ac   :  { %v8305_v28 = vadd.f32 %v810_v19, %v722_v29  ;;  %6607 = vmatmul.mubr.msk.bf16.gmra.mrb[172].mxu1 %vm170_vm2, %v7792_v22 }
 0x1ad   :  { %6610 = vmatprep.mubr.msk.bf16.mxu1 %vm7612_vm0, %v7611_v0 }
 0x1af   :  { %v670_v16 = vpop.f32.mrb[68].mxu1  ;;  %v823_v58 = vpop.f32.mrb[68].mxu0 }
 0x1b0   :  { %v723_v44 = vadd.f32 %v670_v16, %v8203_v13  ;;  %v6372_v63 = vpop.f32.mrb[69].mxu1  ;;  %v6416_v4 = vpop.f32.mrb[69].mxu0 }
 0x1b1   :  { %v673_v38 = vpop.f32.mrb[70].mxu1  ;;  %v826_v60 = vpop.f32.mrb[70].mxu0 }
 0x1b2   :  { %v724_v17 = vadd.f32 %v673_v38, %v8205_v40  ;;  %v8313_v48 = vadd.f32 %v815_v39, %v723_v44  ;;  %v6373_v47 = vpop.f32.mrb[71].mxu1  ;;  %v6417_v49 = vpop.f32.mrb[71].mxu0 }
 0x1b4   :  { %v8315_v53 = vadd.f32 %v818_v12, %v724_v17  ;;  %6611 = vmatmul.mubr.msk.bf16.gmra.mrb[176].mxu1 %vm170_vm2, %v7818_v30 }
 0x1b5   :  { %6614 = vmatprep.mubr.msk.bf16.mxu1 %vm7612_vm0, %v7611_v0 }
 0x1b7   :  { %v678_v22 = vpop.f32.mrb[72].mxu1  ;;  %v831_v13 = vpop.f32.mrb[72].mxu0 }
 0x1b8   :  { %v725_v46 = vadd.f32 %v678_v22, %v8217_v41  ;;  %v6376_v11 = vpop.f32.mrb[73].mxu1  ;;  %v6420_v52 = vpop.f32.mrb[73].mxu0 }
 0x1b9   :  { %v681_v15 = vpop.f32.mrb[74].mxu1  ;;  %v834_v40 = vpop.f32.mrb[74].mxu0 }
 0x1ba   :  { %v726_v42 = vadd.f32 %v681_v15, %v8219_v33  ;;  %v8323_v59 = vadd.f32 %v823_v58, %v725_v46  ;;  %v6377_v26 = vpop.f32.mrb[75].mxu1  ;;  %v6421_v18 = vpop.f32.mrb[75].mxu0 }
 0x1bc   :  { %v8325_v61 = vadd.f32 %v826_v60, %v726_v42  ;;  %6615 = vmatmul.mubr.msk.bf16.gmra.mrb[180].mxu1 %vm170_vm2, %v7836_v34 }
 0x1bd   :  { %6618 = vmatprep.mubr.msk.bf16.mxu1 %vm7612_vm0, %v7611_v0 }
 0x1bf   :  { %v686_v30 = vpop.f32.mrb[76].mxu1  ;;  %v839_v41 = vpop.f32.mrb[76].mxu0 }
 0x1c0   :  { %v727_v2 = vadd.f32 %v686_v30, %v8231_v51  ;;  %v6380_v55 = vpop.f32.mrb[77].mxu1  ;;  %v6424_v20 = vpop.f32.mrb[77].mxu0 }
 0x1c1   :  { %v689_v19 = vpop.f32.mrb[78].mxu1  ;;  %v842_v33 = vpop.f32.mrb[78].mxu0 }
 0x1c2   :  { %v728_v25 = vadd.f32 %v689_v19, %v8233_v54  ;;  %v8333_v10 = vadd.f32 %v831_v13, %v727_v2  ;;  %v6381_v14 = vpop.f32.mrb[79].mxu1  ;;  %v6425_v6 = vpop.f32.mrb[79].mxu0 }
 0x1c4   :  { %v8335_v39 = vadd.f32 %v834_v40, %v728_v25  ;;  %6619 = vmatmul.mubr.msk.bf16.gmra.mrb[184].mxu1 %vm170_vm2, %v8027_v56  ;;  %v7153_v56 = vld [vmem:[%s9144_s2] sm:$0xff]  }
 0x1c5   :  { %6622 = vmatprep.mubr.msk.bf16.mxu1 %vm7612_vm0, %v7611_v0  ;;  %6651 = vmatpush3.bf16.msra.mxu1 %v7153_v56 }
 0x1c6   :  { %6652 = vmatprep.subr.bf16.mxu1 %v7611_v0 }
 0x1c7   :  { %v694_v34 = vpop.f32.mrb[80].mxu1  ;;  %v847_v51 = vpop.f32.mrb[80].mxu0 }
 0x1c8   :  { %v729_v32 = vadd.f32 %v694_v34, %v8245_v62  ;;  %v6384_v37 = vpop.f32.mrb[81].mxu1  ;;  %v6428_v5 = vpop.f32.mrb[81].mxu0 }
 0x1c9   :  { %v697_v23 = vpop.f32.mrb[82].mxu1  ;;  %v850_v54 = vpop.f32.mrb[82].mxu0 }
 0x1ca   :  { %v730_v12 = vadd.f32 %v697_v23, %v8247_v3  ;;  %v8343_v29 = vadd.f32 %v839_v41, %v729_v32  ;;  %v6385_v24 = vpop.f32.mrb[83].mxu1  ;;  %v6429_v27 = vpop.f32.mrb[83].mxu0 }
 0x1cc   :  { %v8345_v16 = vadd.f32 %v842_v33, %v730_v12  ;;  %6623 = vmatmul.mubr.msk.bf16.gmra.mrb[188].mxu1 %vm170_vm2, %v8144_v50 }
 0x1cd   :  { %6626 = vmatprep.mubr.msk.bf16.mxu1 %vm7612_vm0, %v7611_v0 }
 0x1cf   :  { %v702_v62 = vpop.f32.mrb[84].mxu1  ;;  %v855_v58 = vpop.f32.mrb[84].mxu0 }
 0x1d0   :  { %v731_v3 = vadd.f32 %v702_v62, %v8259_v1  ;;  %v6388_v44 = vpop.f32.mrb[85].mxu1  ;;  %v6432_v63 = vpop.f32.mrb[85].mxu0 }
 0x1d1   :  { %v705_v4 = vpop.f32.mrb[86].mxu1  ;;  %v858_v38 = vpop.f32.mrb[86].mxu0 }
 0x1d2   :  { %v732_v50 = vadd.f32 %v705_v4, %v8261_v31  ;;  %v8357_v60 = vadd.f32 %v847_v51, %v731_v3  ;;  %v6389_v17 = vpop.f32.mrb[87].mxu1  ;;  %v6433_v47 = vpop.f32.mrb[87].mxu0  ;;  %v7154_v31 = vld [vmem:[%s9144_s2 + $0x10] sm:$0xff]  }
 0x1d3   :  { %6635 = vmatpush3.bf16.msra.mxu0 %v7154_v31 }
 0x1d4   :  { %v8359_v49 = vadd.f32 %v850_v54, %v732_v50  ;;  %6627 = vmatmul.mubr.msk.bf16.gmra.mrb[192].mxu1 %vm170_vm2, %v7737_v8  ;;  %6636 = vmatprep.subr.bf16.mxu0 %v7611_v0 }
 0x1d5   :  { %6630 = vmatprep.mubr.msk.bf16.mxu1 %vm7612_vm0, %v7611_v0 }
 0x1d7   :  { %v710_v22 = vpop.f32.mrb[88].mxu1  ;;  %v1073_v1 = vpop.f32.mrb[88].mxu0 }
 0x1d8   :  { %v733_v13 = vadd.f32 %v710_v22, %v8273_v35  ;;  %v6392_v46 = vpop.f32.mrb[89].mxu1  ;;  %v6480_v11 = vpop.f32.mrb[89].mxu0 }
 0x1d9   :  { %v713_v52 = vpop.f32.mrb[90].mxu1  ;;  %v1076_v15 = vpop.f32.mrb[90].mxu0 }
 0x1da   :  { %v734_v40 = vadd.f32 %v713_v52, %v8275_v45  ;;  %v8370_v42 = vadd.f32 %v855_v58, %v733_v13  ;;  %v6393_v26 = vpop.f32.mrb[91].mxu1  ;;  %v6481_v18 = vpop.f32.mrb[91].mxu0 }
 0x1dc   :  { %v8373_v30 = vadd.f32 %v858_v38, %v734_v40  ;;  %6631 = vmatmul.mubr.msk.bf16.gmra.mrb[196].mxu1 %vm170_vm2, %v7737_v8 }
 0x1dd   :  { %6654 = vmatprep.mubr.msk.bf16.mxu1 %vm7612_vm0, %v7611_v0 }
 0x1df   :  { %v934_v35 = vpop.f32.mrb[92].mxu1  ;;  %v1081_v41 = vpop.f32.mrb[92].mxu0 }
 0x1e0   :  { %v1005_v2 = vadd.f32 %v934_v35, %v8283_v57  ;;  %v6440_v45 = vpop.f32.mrb[93].mxu1  ;;  %v6484_v55 = vpop.f32.mrb[93].mxu0 }
 0x1e1   :  { %v937_v20 = vpop.f32.mrb[94].mxu1  ;;  %v1084_v19 = vpop.f32.mrb[94].mxu0 }
 0x1e2   :  { %v1006_v33 = vadd.f32 %v937_v20, %v8285_v21  ;;  %v8381_v25 = vadd.f32 %v1073_v1, %v1005_v2  ;;  %v6441_v14 = vpop.f32.mrb[95].mxu1  ;;  %v6485_v6 = vpop.f32.mrb[95].mxu0 }
 0x1e3   :  { %v7614_v14 = vmov 65535  }
 0x1e4   :  { %v8383_v34 = vadd.f32 %v1076_v15, %v1006_v33  ;;  %v1780_v6 = vsel %vm1778_vm3, 4294967295, %v7614_v14 }
 0x1e7   :  { %v942_v51 = vpop.f32.mrb[96].mxu1  ;;  %v1089_v32 = vpop.f32.mrb[96].mxu0 }
 0x1e8   :  { %v1007_v37 = vadd.f32 %v942_v51, %v8293_v9  ;;  %v6444_v5 = vpop.f32.mrb[97].mxu1  ;;  %v6488_v23 = vpop.f32.mrb[97].mxu0  ;;  %v7155_v51 = vld [vmem:[%s9144_s2 + $0x8] sm:$0x1f]  }
 0x1e9   :  { %v945_v54 = vpop.f32.mrb[98].mxu1  ;;  %v1092_v57 = vpop.f32.mrb[98].mxu0 }
 0x1ea   :  { %v1008_v12 = vadd.f32 %v945_v54, %v8295_v43  ;;  %v8387_v24 = vadd.f32 %v1081_v41, %v1007_v37  ;;  %v6445_v27 = vpop.f32.mrb[99].mxu1  ;;  %v6489_v21 = vpop.f32.mrb[99].mxu0 }
 0x1eb   :  { %v7156_v21 = vld [vmem:[%s9144_s2 + $0x18] sm:$0x1f]  }
 0x1ec   :  { %v8389_v56 = vadd.f32 %v1084_v19, %v1008_v12 }
 0x1ef   :  { %v950_v62 = vpop.f32.mrb[100].mxu1  ;;  %v1097_v58 = vpop.f32.mrb[100].mxu0 }
 0x1f0   :  { %v1009_v3 = vadd.f32 %v950_v62, %v8303_v36  ;;  %v6448_v44 = vpop.f32.mrb[101].mxu1  ;;  %v6492_v63 = vpop.f32.mrb[101].mxu0 }
 0x1f1   :  { %v953_v4 = vpop.f32.mrb[102].mxu1  ;;  %v1100_v9 = vpop.f32.mrb[102].mxu0 }
 0x1f2   :  { %v1010_v38 = vadd.f32 %v953_v4, %v8305_v28  ;;  %v8393_v50 = vadd.f32 %v1089_v32, %v1009_v3  ;;  %v6449_v17 = vpop.f32.mrb[103].mxu1  ;;  %v6493_v43 = vpop.f32.mrb[103].mxu0 }
 0x1f4   :  { %v8395_v47 = vadd.f32 %v1092_v57, %v1010_v38 }
 0x1f7   :  { %v958_v22 = vpop.f32.mrb[104].mxu1  ;;  %v1105_v1 = vpop.f32.mrb[104].mxu0 }
 0x1f8   :  { %v1011_v13 = vadd.f32 %v958_v22, %v8313_v48  ;;  %v6452_v46 = vpop.f32.mrb[105].mxu1  ;;  %v6496_v11 = vpop.f32.mrb[105].mxu0 }
 0x1f9   :  { %v961_v31 = vpop.f32.mrb[106].mxu1  ;;  %v1108_v36 = vpop.f32.mrb[106].mxu0 }
 0x1fa   :  { %v1012_v52 = vadd.f32 %v961_v31, %v8315_v53  ;;  %v8399_v15 = vadd.f32 %v1097_v58, %v1011_v13  ;;  %v6453_v40 = vpop.f32.mrb[107].mxu1  ;;  %v6497_v28 = vpop.f32.mrb[107].mxu0 }
 0x1fc   :  { %v8401_v26 = vadd.f32 %v1100_v9, %v1012_v52 }
 0x1ff   :  { %v966_v18 = vpop.f32.mrb[108].mxu1  ;;  %v1113_v35 = vpop.f32.mrb[108].mxu0 }
 0x200   :  { %v1013_v41 = vadd.f32 %v966_v18, %v8323_v59  ;;  %v6456_v2 = vpop.f32.mrb[109].mxu1  ;;  %v6500_v45 = vpop.f32.mrb[109].mxu0  ;;  %v8412_v59 = vsel %vm1779_vm4, %v1780_v6, 0 }
 0x201   :  { %v969_v55 = vpop.f32.mrb[110].mxu1  ;;  %v1116_v48 = vpop.f32.mrb[110].mxu0  ;;  %v1858_v37 = vand.u32 %v7155_v51, %v8412_v59 }
 0x202   :  { %v1014_v20 = vadd.f32 %v969_v55, %v8325_v61  ;;  %v8405_v19 = vadd.f32 %v1105_v1, %v1013_v41  ;;  %v6457_v33 = vpop.f32.mrb[111].mxu1  ;;  %v6501_v53 = vpop.f32.mrb[111].mxu0 }
 0x203   :  { %6653 = vmatpush3.bf16.msra.mxu1 %v1858_v37 }
 0x204   :  { %v8410_v32 = vadd.f32 %v1108_v36, %v1014_v20  ;;  %6682 = vmatprep.subr.bf16.mxu1 %v7611_v0 }
 0x206   :  { %6655 = vmatmul.mubr.msk.bf16.vlgmr.msra.gmra.mrb[200].mxu1 %vm1772_vm5, %v7737_v8 }
 0x207   :  { %v974_v5 = vpop.f32.mrb[112].mxu1  ;;  %v1121_v61 = vpop.f32.mrb[112].mxu0  ;;  %6658 = vmatprep.mubr.msk.bf16.mxu1 %vm7612_vm0, %v7611_v0 }
 0x208   :  { %v1015_v23 = vadd.f32 %v974_v5, %v8333_v10  ;;  %v6460_v54 = vpop.f32.mrb[113].mxu1  ;;  %v6504_v57 = vpop.f32.mrb[113].mxu0  ;;  %v1783_v10 = vand.u32 %v7156_v21, %v8412_v59 }
 0x209   :  { %v977_v12 = vpop.f32.mrb[114].mxu1  ;;  %v1124_v27 = vpop.f32.mrb[114].mxu0  ;;  %v7159_v57 = vld [vmem:[%s9144_s2 + $0x20] sm:$0xff]  }
 0x20a   :  { %v1016_v62 = vadd.f32 %v977_v12, %v8335_v39  ;;  %v8421_v58 = vadd.f32 %v1113_v35, %v1015_v23  ;;  %v6461_v3 = vpop.f32.mrb[115].mxu1  ;;  %v6505_v44 = vpop.f32.mrb[115].mxu0  ;;  %6637 = vmatpush3.bf16.msra.mxu0 %v1783_v10  ;;  %v7157_v35 = vld [vmem:[%s9144_s2 + $0x30] sm:$0xff]  }
 0x20b   :  { %6666 = vmatprep.subr.bf16.mxu0 %v7611_v0  ;;  %6683 = vmatpush3.bf16.msra.mxu1 %v7157_v35 }
 0x20c   :  { %v8428_v63 = vadd.f32 %v1116_v48, %v1016_v62  ;;  %6684 = vmatprep.subr.bf16.mxu1 %v7611_v0  ;;  %v7158_v48 = vld [vmem:[%s9144_s2 + $0x38] sm:$0x1f]  }
 0x20d   :  { %6639 = vmatmul.mubr.msk.bf16.vlgmr.msra.gmra.mrb[160].mxu0 %vm1772_vm5, %v7737_v8  ;;  %v2028_v20 = vand.u32 %v7158_v48, %v8412_v59 }
 0x20e   :  { %6642 = vmatprep.mubr.msk.bf16.mxu0 %vm7612_vm0, %v7611_v0  ;;  %6659 = vmatmul.mubr.msk.bf16.gmra.mrb[204].mxu1 %vm1772_vm5, %v7737_v8 }
 0x20f   :  { %v982_v4 = vpop.f32.mrb[116].mxu1  ;;  %v1129_v9 = vpop.f32.mrb[116].mxu0  ;;  %6662 = vmatprep.mubr.msk.bf16.mxu1 %vm7612_vm0, %v7611_v0  ;;  %6685 = vmatpush3.bf16.msra.mxu1 %v2028_v20 }
 0x210   :  { %v1017_v39 = vadd.f32 %v982_v4, %v8343_v29  ;;  %v6464_v38 = vpop.f32.mrb[117].mxu1  ;;  %v6508_v17 = vpop.f32.mrb[117].mxu0  ;;  %6714 = vmatprep.subr.bf16.mxu1 %v7611_v0  ;;  %6667 = vmatpush3.bf16.msra.mxu0 %v7159_v57 }
 0x211   :  { %v985_v43 = vpop.f32.mrb[118].mxu1  ;;  %v1132_v22 = vpop.f32.mrb[118].mxu0  ;;  %6668 = vmatprep.subr.bf16.mxu0 %v7611_v0 }
 0x212   :  { %v1018_v1 = vadd.f32 %v985_v43, %v8345_v16  ;;  %v8437_v13 = vadd.f32 %v1121_v61, %v1017_v39  ;;  %v6465_v46 = vpop.f32.mrb[119].mxu1  ;;  %v6509_v11 = vpop.f32.mrb[119].mxu0 }
 0x214   :  { %v8443_v29 = vadd.f32 %v1124_v27, %v1018_v1 }
 0x215   :  { %6643 = vmatmul.mubr.msk.bf16.gmra.mrb[164].mxu0 %vm1772_vm5, %v7737_v8 }
 0x216   :  { %6646 = vmatprep.mubr.msk.bf16.mxu0 %vm7612_vm0, %v7611_v0 }
 0x217   :  { %v990_v31 = vpop.f32.mrb[120].mxu1  ;;  %v1137_v36 = vpop.f32.mrb[120].mxu0 }
 0x218   :  { %v1019_v52 = vadd.f32 %v990_v31, %v8357_v60  ;;  %v6468_v40 = vpop.f32.mrb[121].mxu1  ;;  %v6512_v28 = vpop.f32.mrb[121].mxu0 }
 0x219   :  { %v993_v16 = vpop.f32.mrb[122].mxu1  ;;  %v1140_v18 = vpop.f32.mrb[122].mxu0 }
 0x21a   :  { %v1020_v41 = vadd.f32 %v993_v16, %v8359_v49  ;;  %v8454_v2 = vadd.f32 %v1129_v9, %v1019_v52  ;;  %v6469_v45 = vpop.f32.mrb[123].mxu1  ;;  %v6513_v60 = vpop.f32.mrb[123].mxu0 }
 0x21c   :  { %v8456_v55 = vadd.f32 %v1132_v22, %v1020_v41 }
 0x21f   :  { %v998_v33 = vpop.f32.mrb[124].mxu1  ;;  %v1351_v53 = vpop.f32.mrb[124].mxu0 }
 0x220   :  { %v1021_v14 = vadd.f32 %v998_v33, %v8370_v42  ;;  %v6472_v49 = vpop.f32.mrb[125].mxu1  ;;  %v6560_v6 = vpop.f32.mrb[125].mxu0  ;;  %v7160_v42 = vld [vmem:[%s9144_s2 + $0x28] sm:$0x1f]  }
 0x221   :  { %v1001_v51 = vpop.f32.mrb[126].mxu1  ;;  %v1354_v37 = vpop.f32.mrb[126].mxu0  ;;  %v1940_v27 = vand.u32 %v7160_v42, %v8412_v59 }
 0x222   :  { %v1022_v5 = vadd.f32 %v1001_v51, %v8373_v30  ;;  %v8466_v61 = vadd.f32 %v1137_v36, %v1021_v14  ;;  %v6473_v23 = vpop.f32.mrb[127].mxu1  ;;  %v6561_v54 = vpop.f32.mrb[127].mxu0 }
 0x223   :  { %6669 = vmatpush3.bf16.msra.mxu0 %v1940_v27 }
 0x224   :  { %v8471_v12 = vadd.f32 %v1140_v18, %v1022_v5  ;;  %6698 = vmatprep.subr.bf16.mxu0 %v7611_v0 }
 0x227   :  { %v1212_v30 = vpop.f32.mrb[128].mxu1  ;;  %v1359_v21 = vpop.f32.mrb[128].mxu0 }
 0x228   :  { %v1283_v62 = vadd.f32 %v1212_v30, %v8381_v25  ;;  %v6520_v3 = vpop.f32.mrb[129].mxu1  ;;  %v6564_v44 = vpop.f32.mrb[129].mxu0 }
 0x229   :  { %v1215_v10 = vpop.f32.mrb[130].mxu1  ;;  %v1362_v4 = vpop.f32.mrb[130].mxu0 }
 0x22a   :  { %v1284_v9 = vadd.f32 %v1215_v10, %v8383_v34  ;;  %v8481_v39 = vadd.f32 %v1351_v53, %v1283_v62  ;;  %v6521_v38 = vpop.f32.mrb[131].mxu1  ;;  %v6565_v17 = vpop.f32.mrb[131].mxu0 }
 0x22c   :  { %v8483_v43 = vadd.f32 %v1354_v37, %v1284_v9 }
 0x22f   :  { %v1220_v22 = vpop.f32.mrb[132].mxu1  ;;  %v1367_v1 = vpop.f32.mrb[132].mxu0 }
 0x230   :  { %v1285_v46 = vadd.f32 %v1220_v22, %v8387_v24  ;;  %v6524_v25 = vpop.f32.mrb[133].mxu1  ;;  %v6568_v11 = vpop.f32.mrb[133].mxu0 }
 0x231   :  { %v1223_v31 = vpop.f32.mrb[134].mxu1  ;;  %v1370_v36 = vpop.f32.mrb[134].mxu0 }
 0x232   :  { %v1286_v52 = vadd.f32 %v1223_v31, %v8389_v56  ;;  %v8487_v40 = vadd.f32 %v1359_v21, %v1285_v46  ;;  %v6525_v28 = vpop.f32.mrb[135].mxu1  ;;  %v6569_v34 = vpop.f32.mrb[135].mxu0 }
 0x234   :  { %v8489_v16 = vadd.f32 %v1362_v4, %v1286_v52 }
 0x237   :  { %v1228_v18 = vpop.f32.mrb[136].mxu1  ;;  %v1375_v35 = vpop.f32.mrb[136].mxu0 }
 0x238   :  { %v1287_v41 = vadd.f32 %v1228_v18, %v8393_v50  ;;  %v6528_v45 = vpop.f32.mrb[137].mxu1  ;;  %v6572_v60 = vpop.f32.mrb[137].mxu0 }
 0x239   :  { %v1231_v48 = vpop.f32.mrb[138].mxu1  ;;  %v1378_v24 = vpop.f32.mrb[138].mxu0 }
 0x23a   :  { %v1288_v20 = vadd.f32 %v1231_v48, %v8395_v47  ;;  %v8493_v33 = vadd.f32 %v1367_v1, %v1287_v41  ;;  %v6529_v53 = vpop.f32.mrb[139].mxu1  ;;  %v6573_v56 = vpop.f32.mrb[139].mxu0 }
 0x23c   :  { %v8495_v14 = vadd.f32 %v1370_v36, %v1288_v20 }
 0x23f   :  { %v1236_v49 = vpop.f32.mrb[140].mxu1  ;;  %v1383_v6 = vpop.f32.mrb[140].mxu0 }
 0x240   :  { %v1289_v51 = vadd.f32 %v1236_v49, %v8399_v15  ;;  %v6532_v37 = vpop.f32.mrb[141].mxu1  ;;  %v6576_v5 = vpop.f32.mrb[141].mxu0 }
 0x241   :  { %v1239_v23 = vpop.f32.mrb[142].mxu1  ;;  %v1386_v50 = vpop.f32.mrb[142].mxu0 }
 0x242   :  { %v1290_v54 = vadd.f32 %v1239_v23, %v8401_v26  ;;  %v8499_v57 = vadd.f32 %v1375_v35, %v1289_v51  ;;  %v6533_v42 = vpop.f32.mrb[143].mxu1  ;;  %v6577_v47 = vpop.f32.mrb[143].mxu0 }
 0x244   :  { %v8501_v27 = vadd.f32 %v1378_v24, %v1290_v54 }
 0x247   :  { %v1244_v30 = vpop.f32.mrb[144].mxu1  ;;  %v1391_v21 = vpop.f32.mrb[144].mxu0 }
 0x248   :  { %v1291_v62 = vadd.f32 %v1244_v30, %v8405_v19  ;;  %v6536_v3 = vpop.f32.mrb[145].mxu1  ;;  %v6580_v44 = vpop.f32.mrb[145].mxu0 }
 0x249   :  { %v1247_v10 = vpop.f32.mrb[146].mxu1  ;;  %v1394_v15 = vpop.f32.mrb[146].mxu0 }
 0x24a   :  { %v1292_v4 = vadd.f32 %v1247_v10, %v8410_v32  ;;  %v8505_v9 = vadd.f32 %v1383_v6, %v1291_v62  ;;  %v6537_v38 = vpop.f32.mrb[147].mxu1  ;;  %v6581_v26 = vpop.f32.mrb[147].mxu0 }
 0x24b   :  { %v8537_v38 = vld [vmem:[%s9147_s5] sm:$0xff] }
 0x24c   :  { %v8507_v17 = vadd.f32 %v1386_v50, %v1292_v4 }
 0x24f   :  { %v1252_v22 = vpop.f32.mrb[148].mxu1  ;;  %v1399_v1 = vpop.f32.mrb[148].mxu0 }
 0x250   :  { %v1293_v46 = vadd.f32 %v1252_v22, %v8421_v58  ;;  %v6540_v25 = vpop.f32.mrb[149].mxu1  ;;  %v6584_v11 = vpop.f32.mrb[149].mxu0 }
 0x251   :  { %v1255_v31 = vpop.f32.mrb[150].mxu1  ;;  %v1402_v19 = vpop.f32.mrb[150].mxu0 }
 0x252   :  { %v1294_v36 = vadd.f32 %v1255_v31, %v8428_v63  ;;  %v8511_v52 = vadd.f32 %v1391_v21, %v1293_v46  ;;  %v6541_v28 = vpop.f32.mrb[151].mxu1  ;;  %v6585_v32 = vpop.f32.mrb[151].mxu0 }
 0x254   :  { %v8513_v34 = vadd.f32 %v1394_v15, %v1294_v36 }
 0x257   :  { %v1260_v18 = vpop.f32.mrb[152].mxu1  ;;  %v1407_v35 = vpop.f32.mrb[152].mxu0 }
 0x258   :  { %v1295_v41 = vadd.f32 %v1260_v18, %v8437_v13  ;;  %v6544_v45 = vpop.f32.mrb[153].mxu1  ;;  %v6588_v60 = vpop.f32.mrb[153].mxu0 }
 0x259   :  { %v1263_v48 = vpop.f32.mrb[154].mxu1  ;;  %v1410_v58 = vpop.f32.mrb[154].mxu0 }
 0x25a   :  { %v1296_v24 = vadd.f32 %v1263_v48, %v8443_v29  ;;  %v8517_v20 = vadd.f32 %v1399_v1, %v1295_v41  ;;  %v6545_v53 = vpop.f32.mrb[155].mxu1  ;;  %v6589_v63 = vpop.f32.mrb[155].mxu0  ;;  %v1579_v29 = vlaneseq }
 0x25c   :  { %v8519_v56 = vadd.f32 %v1402_v19, %v1296_v24  ;;  %v8527_v21 = vshrl.u32 %v1579_v29, 7 }
 0x25f   :  { %v1268_v49 = vpop.f32.mrb[156].mxu1  ;;  %v1415_v6 = vpop.f32.mrb[156].mxu0 }
 0x260   :  { %v1297_v51 = vadd.f32 %v1268_v49, %v8454_v2  ;;  %v6548_v37 = vpop.f32.mrb[157].mxu1  ;;  %v6592_v5 = vpop.f32.mrb[157].mxu0 }
 0x261   :  { %v1271_v23 = vpop.f32.mrb[158].mxu1  ;;  %v1418_v13 = vpop.f32.mrb[158].mxu0 }
 0x262   :  { %v1298_v50 = vadd.f32 %v1271_v23, %v8456_v55  ;;  %v8523_v54 = vadd.f32 %v1407_v35, %v1297_v51  ;;  %v6549_v42 = vpop.f32.mrb[159].mxu1  ;;  %v6593_v47 = vpop.f32.mrb[159].mxu0  ;;  %v1581_v55 = vsub.s32 0, %v8527_v21 }
 0x264   :  { %v8525_v30 = vadd.f32 %v1410_v58, %v1298_v50 }
 0x267   :  { %v1276_v62 = vpop.f32.mrb[160].mxu1 }
 0x268   :  { %v1299_v3 = vadd.f32 %v1276_v62, %v8466_v61  ;;  %v6552_v44 = vpop.f32.mrb[161].mxu1  ;;  %v8544_v61 = vrot.slane %v8537_v38, %v1581_v55 }
 0x269   :  { %v1279_v2 = vpop.f32.mrb[162].mxu1 }
 0x26a   :  { %v1300_v10 = vadd.f32 %v1279_v2, %v8471_v12  ;;  %v8531_v15 = vadd.f32 %v1415_v6, %v1299_v3  ;;  %v6553_v4 = vpop.f32.mrb[163].mxu1 }
 0x26c   :  { %v8539_v26 = vadd.f32 %v1418_v13, %v1300_v10 }
 0x26f   :  { %v1490_v22 = vpop.f32.mrb[164].mxu1 }
 0x270   :  { %v1561_v12 = vadd.f32 %v1490_v22, %v8481_v39  ;;  %v6600_v1 = vpop.f32.mrb[165].mxu1 }
 0x271   :  { %v1493_v46 = vpop.f32.mrb[166].mxu1 }
 0x272   :  { %v8548_v25 = vadd.f32 %v8544_v61, %v1561_v12  ;;  %v1562_v11 = vadd.f32 %v1493_v46, %v8483_v43  ;;  %v6601_v31 = vpop.f32.mrb[167].mxu1 }
 0x274   :  { %v1584_v19 = vadd.f32 %v8544_v61, %v1562_v11  ;;  %v1619_v36 = vmin.f32 %v8548_v25, 0.0  ;;  %vm1601_vm8 = vcmp.gt.f32.partialorder %v8548_v25, 0.0 }
 0x276   :  { %v1620_v28 = vmin.f32 %v1584_v19, 0.0  ;;  %v1637_v39 = vmul.f32 1.442695, %v1619_v36  ;;  %vm1602_vm6 = vcmp.gt.f32.partialorder %v1584_v19, 0.0  ;;  %v8579_v36 = vsub.s32 2, %v8527_v21 }
 0x277   :  { %v1498_v32 = vpop.f32.mrb[168].mxu1 }
 0x278   :  { %v1639_v18 = vmul.f32 1.442695, %v1620_v28  ;;  %v1563_v35 = vadd.f32 %v1498_v32, %v8487_v40  ;;  %v6604_v41 = vpop.f32.mrb[169].mxu1 }
 0x279   :  { %v1501_v45 = vpop.f32.mrb[170].mxu1 }
 0x27a   :  { %v1585_v60 = vadd.f32 %v8544_v61, %v1563_v35  ;;  %v1564_v48 = vadd.f32 %v1501_v45, %v8489_v16  ;;  %v6605_v58 = vpop.f32.mrb[171].mxu1  ;;  %7413 = vpow2.f32 %v1639_v18 }
 0x27b   :  { %7415 = vpow2.f32 %v1637_v39 }
 0x27c   :  { %v1621_v43 = vmin.f32 %v1585_v60, 0.0  ;;  %v8557_v24 = vadd.f32 %v8544_v61, %v1564_v48  ;;  %vm1603_vm7 = vcmp.gt.f32.partialorder %v1585_v60, 0.0 }
 0x27e   :  { %v1641_v53 = vmul.f32 1.442695, %v1621_v43  ;;  %v1622_v63 = vmin.f32 %v8557_v24, 0.0  ;;  %vm1604_vm11 = vcmp.gt.f32.partialorder %v8557_v24, 0.0 }
 0x27f   :  { %v1506_v49 = vpop.f32.mrb[172].mxu1 }
 0x280   :  { %7417 = vpow2.f32 %v1641_v53  ;;  %v1565_v40 = vadd.f32 %v1506_v49, %v8493_v33  ;;  %v6608_v6 = vpop.f32.mrb[173].mxu1  ;;  %v1643_v23 = vmul.f32 1.442695, %v1622_v63 }
 0x281   :  { %v1509_v51 = vpop.f32.mrb[174].mxu1 }
 0x282   :  { %v8562_v37 = vadd.f32 %v8544_v61, %v1565_v40  ;;  %v1566_v16 = vadd.f32 %v1509_v51, %v8495_v14  ;;  %v6609_v5 = vpop.f32.mrb[175].mxu1  ;;  %7419 = vpow2.f32 %v1643_v23  ;;  %v8569_v14 = vsub.s32 1, %v8527_v21 }
 0x284   :  { %v1623_v13 = vmin.f32 %v8562_v37, 0.0  ;;  %v1588_v50 = vadd.f32 %v8544_v61, %v1566_v16  ;;  %v7414_v42 = vpop.eup %7413  ;;  %v8583_v18 = vrot.slane %v8537_v38, %v8569_v14  ;;  %vm1605_vm9 = vcmp.gt.f32.partialorder %v8562_v37, 0.0 }
 0x285   :  { %v7416_v3 = vpop.eup %7415  ;;  %v5623_v10 = vadd.f32 -1.0, %v7414_v42 }
 0x286   :  { %v1645_v29 = vmul.f32 1.442695, %v1623_v13  ;;  %v1624_v47 = vmin.f32 %v1588_v50, 0.0  ;;  %v5622_v11 = vadd.f32 -1.0, %v7416_v3  ;;  %vm1606_vm10 = vcmp.gt.f32.partialorder %v1588_v50, 0.0 }
 0x287   :  { %v1514_v62 = vpop.f32.mrb[176].mxu1  ;;  %v1692_v28 = vsel %vm1602_vm6, %v1584_v19, %v5623_v10 }
 0x288   :  { %7421 = vpow2.f32 %v1645_v29  ;;  %v1647_v33 = vmul.f32 1.442695, %v1624_v47  ;;  %v1567_v44 = vadd.f32 %v1514_v62, %v8499_v57  ;;  %v6612_v2 = vpop.f32.mrb[177].mxu1  ;;  %v1691_v45 = vsel %vm1601_vm8, %v8548_v25, %v5622_v11 }
 0x289   :  { %v1517_v4 = vpop.f32.mrb[178].mxu1 }
 0x28a   :  { %v7418_v22 = vpop.eup %7417  ;;  %7423 = vpow2.f32 %v1647_v33  ;;  %v8572_v12 = vadd.f32 %v8544_v61, %v1567_v44  ;;  %v1568_v1 = vadd.f32 %v1517_v4, %v8501_v27  ;;  %v6613_v46 = vpop.f32.mrb[179].mxu1 }
 0x28b   :  { %v5624_v31 = vadd.f32 -1.0, %v7418_v22 }
 0x28c   :  { %v8576_v57 = vadd.f32 %v8544_v61, %v1568_v1  ;;  %v1625_v35 = vmin.f32 %v8572_v12, 0.0  ;;  %v7420_v53 = vpop.eup %7419  ;;  %vm1607_vm14 = vcmp.gt.f32.partialorder %v8572_v12, 0.0 }
 0x28d   :  { %v1693_v32 = vsel %vm1603_vm7, %v1585_v60, %v5624_v31  ;;  %v8592_v60 = vrot.slane %v8537_v38, %v8579_v36  ;;  %v5625_v42 = vadd.f32 -1.0, %v7420_v53  ;;  %v7161_v53 = vld [vmem:[%s9144_s2 + $0x50] sm:$0xff]  }
 0x28e   :  { %v1709_v27 = vmax.f32 %v1692_v28, %v1693_v32  ;;  %v1626_v41 = vmin.f32 %v8576_v57, 0.0  ;;  %v1649_v6 = vmul.f32 1.442695, %v1625_v35  ;;  %vm1608_vm12 = vcmp.gt.f32.partialorder %v8576_v57, 0.0 }
 0x28f   :  { %v1522_v39 = vpop.f32.mrb[180].mxu1  ;;  %v1694_v22 = vsel %vm1604_vm11, %v8557_v24, %v5625_v42 }
 0x290   :  { %v1710_v48 = vmax.f32 %v1691_v45, %v1709_v27  ;;  %v1651_v58 = vmul.f32 1.442695, %v1626_v41  ;;  %v1569_v43 = vadd.f32 %v1522_v39, %v8505_v9  ;;  %v6616_v19 = vpop.f32.mrb[181].mxu1 }
 0x291   :  { %v1525_v63 = vpop.f32.mrb[182].mxu1 }
 0x292   :  { %v7422_v49 = vpop.eup %7421  ;;  %v1725_v40 = vmul.f32 %v8583_v18, %v1710_v48  ;;  %v8596_v51 = vadd.f32 %v8544_v61, %v1569_v43  ;;  %v1570_v25 = vadd.f32 %v1525_v63, %v8507_v17  ;;  %v6617_v16 = vpop.f32.mrb[183].mxu1  ;;  %7425 = vpow2.f32 %v1651_v58  ;;  %v7162_v63 = vld [vmem:[%s9144_s2 + $0x58] sm:$0x1f]  }
 0x293   :  { %v5626_v5 = vadd.f32 -1.0, %v7422_v49  ;;  %7427 = vpow2.f32 %v1649_v6 }
 0x294   :  { %v7424_v23 = vpop.eup %7423  ;;  %v1627_v9 = vmin.f32 %v8596_v51, 0.0  ;;  %v8601_v38 = vadd.f32 %v8544_v61, %v1570_v25  ;;  %v1735_v13 = vadd.f32 %v8592_v60, %v1725_v40  ;;  %vm1609_vm13 = vcmp.gt.f32.partialorder %v8596_v51, 0.0 }
 0x295   :  { %v5627_v29 = vadd.f32 -1.0, %v7424_v23  ;;  %v1695_v17 = vsel %vm1605_vm9, %v8562_v37, %v5626_v5 }
 0x296   :  { %v1653_v47 = vmul.f32 1.442695, %v1627_v9  ;;  %v1741_v62 = vpack.c.bf16 %v1735_v13, %v1735_v13  ;;  %v1628_v33 = vmin.f32 %v8601_v38, 0.0  ;;  %vm1610_vm2 = vcmp.gt.f32.partialorder %v8601_v38, 0.0 }
 0x297   :  { %v1696_v3 = vsel %vm1606_vm10, %v1588_v50, %v5627_v29  ;;  %v1530_v44 = vpop.f32.mrb[184].mxu1 }
 0x298   :  { %v1711_v2 = vmax.f32 %v1695_v17, %v1696_v3  ;;  %7429 = vpow2.f32 %v1653_v47  ;;  %v1571_v10 = vadd.f32 %v1530_v44, %v8511_v52  ;;  %v6620_v4 = vpop.f32.mrb[185].mxu1  ;;  %v8611_v46 = vcombine.low %v7613_v7, %v1741_v62 }
 0x299   :  { %v1533_v1 = vpop.f32.mrb[186].mxu1  ;;  %v1655_v28 = vmul.f32 1.442695, %v1628_v33  ;;  %v7164_v33 = vld [vmem:[%s9144_s2 + $0x48] sm:$0x1f]  }
 0x29a   :  { %v1712_v11 = vmax.f32 %v1694_v22, %v1711_v2  ;;  %v8614_v37 = vadd.f32 %v8544_v61, %v1571_v10  ;;  %v1572_v50 = vadd.f32 %v1533_v1, %v8513_v34  ;;  %v6621_v31 = vpop.f32.mrb[187].mxu1  ;;  %6663 = vmatmul.mubr.msk.bf16.gmra.mrb[208].mxu1 %vm1772_vm5, %v8611_v46  ;;  %v7163_v10 = vld [vmem:[%s9144_s2 + $0x40] sm:$0xff]  }
 0x29b   :  { %6686 = vmatprep.mubr.msk.bf16.mxu1 %vm7612_vm0, %v7611_v0  ;;  %7431 = vpow2.f32 %v1655_v28 }
 0x29c   :  { %v1629_v52 = vmin.f32 %v8614_v37, 0.0  ;;  %v8621_v32 = vadd.f32 %v8544_v61, %v1572_v50  ;;  %v1726_v24 = vmul.f32 %v8583_v18, %v1712_v11  ;;  %v7426_v27 = vpop.eup %7425  ;;  %vm1611_vm15 = vcmp.gt.f32.partialorder %v8614_v37, 0.0 }
 0x29d   :  { %v7428_v39 = vpop.eup %7427  ;;  %v5629_v49 = vadd.f32 -1.0, %v7426_v27 }
 0x29e   :  { %v1657_v35 = vmul.f32 1.442695, %v1629_v52  ;;  %v1630_v41 = vmin.f32 %v8621_v32, 0.0  ;;  %v8628_v34 = vadd.f32 %v8592_v60, %v1726_v24  ;;  %v5628_v5 = vadd.f32 -1.0, %v7428_v39 }
 0x29f   :  { %v1538_v45 = vpop.f32.mrb[188].mxu1  ;;  %v2116_v52 = vand.u32 %v7164_v33, %v8412_v59  ;;  %vm1612_vm1 = vcmp.gt.f32.partialorder %v8621_v32, 0.0 }
 0x2a0   :  { %7433 = vpow2.f32 %v1657_v35  ;;  %v1659_v48 = vmul.f32 1.442695, %v1630_v41  ;;  %v1573_v58 = vadd.f32 %v1538_v45, %v8517_v20  ;;  %v6624_v43 = vpop.f32.mrb[189].mxu1  ;;  %v8632_v19 = vpack.c.bf16 %v8628_v34, %v1735_v13 }
 0x2a1   :  { %v1541_v40 = vpop.f32.mrb[190].mxu1  ;;  %v1698_v13 = vsel %vm1608_vm12, %v8576_v57, %v5629_v49  ;;  %v1697_v17 = vsel %vm1607_vm14, %v8572_v12, %v5628_v5 }
 0x2a2   :  { %v7430_v6 = vpop.eup %7429  ;;  %7435 = vpow2.f32 %v1659_v48  ;;  %v8641_v25 = vadd.f32 %v8544_v61, %v1573_v58  ;;  %v1574_v20 = vadd.f32 %v1541_v40, %v8519_v56  ;;  %v6625_v16 = vpop.f32.mrb[191].mxu1  ;;  %6647 = vmatmul.mubr.msk.bf16.gmra.mrb[168].mxu0 %vm1772_vm5, %v8632_v19  ;;  %6687 = vmatmul.mubr.msk.bf16.vlgmr.msra.gmra.mrb[212].mxu1 %vm1772_vm5, %v7737_v8  ;;  %v2204_v56 = vand.u32 %v7162_v63, %v8412_v59 }
 0x2a3   :  { %v5630_v23 = vadd.f32 -1.0, %v7430_v6  ;;  %6670 = vmatprep.mubr.msk.bf16.mxu0 %vm7612_vm0, %v7611_v0  ;;  %6690 = vmatprep.mubr.msk.bf16.mxu1 %vm7612_vm0, %v7611_v0 }
 0x2a4   :  { %v8653_v9 = vadd.f32 %v8544_v61, %v1574_v20  ;;  %6715 = vmatpush3.bf16.msra.mxu1 %v7161_v53  ;;  %v1631_v47 = vmin.f32 %v8641_v25, 0.0  ;;  %vm1613_vm6 = vcmp.gt.f32.partialorder %v8641_v25, 0.0 }
 0x2a5   :  { %v1699_v42 = vsel %vm1609_vm13, %v8596_v51, %v5630_v23  ;;  %6716 = vmatprep.subr.bf16.mxu1 %v7611_v0  ;;  %v7432_v4 = vpop.eup %7431 }
 0x2a6   :  { %v1713_v29 = vmax.f32 %v1698_v13, %v1699_v42  ;;  %v1632_v62 = vmin.f32 %v8653_v9, 0.0  ;;  %v1661_v1 = vmul.f32 1.442695, %v1631_v47  ;;  %v5631_v41 = vadd.f32 -1.0, %v7432_v4  ;;  %v7165_v4 = vld [vmem:[%s9144_s2 + $0x70] sm:$0xff]  }
 0x2a7   :  { %v1546_v3 = vpop.f32.mrb[192].mxu1  ;;  %vm1614_vm3 = vcmp.gt.f32.partialorder %v8653_v9, 0.0 }
 0x2a8   :  { %v1714_v44 = vmax.f32 %v1697_v17, %v1713_v29  ;;  %v1663_v57 = vmul.f32 1.442695, %v1632_v62  ;;  %v1575_v51 = vadd.f32 %v1546_v3, %v8523_v54  ;;  %v6628_v2 = vpop.f32.mrb[193].mxu1  ;;  %6717 = vmatpush3.bf16.msra.mxu1 %v2204_v56  ;;  %v1700_v20 = vsel %vm1610_vm2, %v8601_v38, %v5631_v41 }
 0x2a9   :  { %v1549_v22 = vpop.f32.mrb[194].mxu1  ;;  %6746 = vmatprep.subr.bf16.mxu1 %v7611_v0  ;;  %vm3646_vm2 = vcmask 818176  }
 0x2aa   :  { %v7434_v12 = vpop.eup %7433  ;;  %v8674_v11 = vadd.f32 %v8544_v61, %v1575_v51  ;;  %v1576_v50 = vadd.f32 %v1549_v22, %v8525_v30  ;;  %v6629_v31 = vpop.f32.mrb[195].mxu1  ;;  %6671 = vmatmul.mubr.msk.bf16.vlgmr.msra.gmra.mrb[172].mxu0 %vm1772_vm5, %v7737_v8  ;;  %v1727_v54 = vmul.f32 %v8583_v18, %v1714_v44  ;;  %6691 = vmatmul.mubr.msk.bf16.gmra.mrb[216].mxu1 %vm1772_vm5, %v8632_v19  ;;  %7437 = vpow2.f32 %v1663_v57  ;;  %v7166_v22 = vld [vmem:[%s9144_s2 + $0x78] sm:$0x1f]  }
 0x2ab   :  { %v5632_v28 = vadd.f32 -1.0, %v7434_v12  ;;  %6674 = vmatprep.mubr.msk.bf16.mxu0 %vm7612_vm0, %v7611_v0  ;;  %6699 = vmatpush3.bf16.msra.mxu0 %v7163_v10  ;;  %7439 = vpow2.f32 %v1661_v1 }
 0x2ac   :  { %v7436_v24 = vpop.eup %7435  ;;  %v1633_v27 = vmin.f32 %v8674_v11, 0.0  ;;  %v8687_v30 = vadd.f32 %v8544_v61, %v1576_v50  ;;  %6694 = vmatprep.mubr.msk.bf16.mxu1 %vm7612_vm0, %v7611_v0  ;;  %v1737_v35 = vadd.f32 %v8592_v60, %v1727_v54  ;;  %6700 = vmatprep.subr.bf16.mxu0 %v7611_v0  ;;  %vm1615_vm4 = vcmp.gt.f32.partialorder %v8674_v11, 0.0 }
 0x2ad   :  { %v5633_v45 = vadd.f32 -1.0, %v7436_v24  ;;  %v1701_v58 = vsel %vm1611_vm15, %v8614_v37, %v5632_v28  ;;  %v2372_v54 = vand.u32 %v7166_v22, %v8412_v59  ;;  %v7179_v22 = vld [vmem:[#allocation5 + $0x34] ss:$0 sps:$4 sm:$0x11]  }
 0x2ae   :  { %v1665_v39 = vmul.f32 1.442695, %v1633_v27  ;;  %v8696_v48 = vpack.c.bf16 %v1737_v35, %v8628_v34  ;;  %v1634_v53 = vmin.f32 %v8687_v30, 0.0  ;;  %vm1616_vm9 = vcmp.gt.f32.partialorder %v8687_v30, 0.0 }
 0x2af   :  { %v1702_v43 = vsel %vm1612_vm1, %v8621_v32, %v5633_v45  ;;  %v1554_v63 = vpop.f32.mrb[196].mxu1  ;;  %6701 = vmatpush3.bf16.msra.mxu0 %v2116_v52  ;;  %vm3649_vm1 = vcmask 1041408  }
 0x2b0   :  { %v1715_v49 = vmax.f32 %v1701_v58, %v1702_v43  ;;  %7441 = vpow2.f32 %v1665_v39  ;;  %v1577_v40 = vadd.f32 %v1554_v63, %v8531_v15  ;;  %v6632_v6 = vpop.f32.mrb[197].mxu1  ;;  %6730 = vmatprep.subr.bf16.mxu0 %v7611_v0  ;;  %v1667_v23 = vmul.f32 1.442695, %v1634_v53 }
 0x2b1   :  { %v1557_v16 = vpop.f32.mrb[198].mxu1 }
 0x2b2   :  { %v1716_v34 = vmax.f32 %v1700_v20, %v1715_v49  ;;  %v1599_v37 = vadd.f32 %v8544_v61, %v1577_v40  ;;  %v1578_v32 = vadd.f32 %v1557_v16, %v8539_v26  ;;  %v6633_v5 = vpop.f32.mrb[199].mxu1  ;;  %6675 = vmatmul.mubr.msk.bf16.gmra.mrb[176].mxu0 %vm1772_vm5, %v8611_v46  ;;  %7443 = vpow2.f32 %v1667_v23 }
 0x2b3   :  { %6678 = vmatprep.mubr.msk.bf16.mxu0 %vm7612_vm0, %v7611_v0 }
 0x2b4   :  { %v1635_v15 = vmin.f32 %v1599_v37, 0.0  ;;  %v1600_v56 = vadd.f32 %v8544_v61, %v1578_v32  ;;  %v1728_v38 = vmul.f32 %v8583_v18, %v1716_v34  ;;  %v7438_v13 = vpop.eup %7437  ;;  %vm1617_vm7 = vcmp.gt.f32.partialorder %v1599_v37, 0.0 }
 0x2b5   :  { %v7440_v26 = vpop.eup %7439  ;;  %v5635_v3 = vadd.f32 -1.0, %v7438_v13 }
 0x2b6   :  { %v1669_v42 = vmul.f32 1.442695, %v1635_v15  ;;  %v1636_v29 = vmin.f32 %v1600_v56, 0.0  ;;  %v1738_v47 = vadd.f32 %v8592_v60, %v1728_v38  ;;  %v5634_v61 = vadd.f32 -1.0, %v7440_v26 }
 0x2b7   :  { %v1704_v57 = vsel %vm1614_vm3, %v8653_v9, %v5635_v3  ;;  %v7167_v9 = vld [vmem:[%s9144_s2 + $0x60] sm:$0xff]   ;;  %vm1618_vm8 = vcmp.gt.f32.partialorder %v1600_v56, 0.0  ;;  %v7172_v3 = vld [vmem:[%s9144_s2 + $0x98] sm:$0x1f]  }
 0x2b8   :  { %7445 = vpow2.f32 %v1669_v42  ;;  %v1671_v62 = vmul.f32 1.442695, %v1636_v29  ;;  %v8714_v17 = vpack.c.bf16 %v1738_v47, %v1737_v35  ;;  %v1703_v10 = vsel %vm1613_vm6, %v8641_v25, %v5634_v61 }
 0x2ba   :  { %v7442_v33 = vpop.eup %7441  ;;  %7447 = vpow2.f32 %v1671_v62  ;;  %6679 = vmatmul.mubr.msk.bf16.gmra.mrb[180].mxu0 %vm1772_vm5, %v8696_v48  ;;  %6695 = vmatmul.mubr.msk.bf16.gmra.mrb[220].mxu1 %vm1772_vm5, %v8714_v17 }
 0x2bb   :  { %v5636_v44 = vadd.f32 -1.0, %v7442_v33  ;;  %6702 = vmatprep.mubr.msk.bf16.mxu0 %vm7612_vm0, %v7611_v0  ;;  %6718 = vmatprep.mubr.msk.bf16.mxu1 %vm7612_vm0, %v7611_v0 }
 0x2bc   :  { %v7444_v1 = vpop.eup %7443 }
 0x2bd   :  { %v1705_v51 = vsel %vm1615_vm4, %v8674_v11, %v5636_v44  ;;  %v7168_v11 = vld [vmem:[%s9144_s2 + $0x68] sm:$0x1f]   ;;  %v5637_v52 = vadd.f32 -1.0, %v7444_v1  ;;  %v2536_v44 = vand.u32 %v7172_v3, %v8412_v59 }
 0x2be   :  { %v1717_v2 = vmax.f32 %v1704_v57, %v1705_v51  ;;  %v7174_v57 = vld [vmem:[#allocation5] sm:$0xff]  }
 0x2bf   :  { %v1706_v39 = vsel %vm1616_vm9, %v8687_v30, %v5637_v52  ;;  %v7175_v51 = vld [vmem:[#allocation5 + $0x24] sm:$0xff]  }
 0x2c0   :  { %v1718_v12 = vmax.f32 %v1703_v10, %v1717_v2  ;;  %v7176_v2 = vld [vmem:[#allocation5 + $0x8] sm:$0xff]  }
 0x2c1   :  { %v7177_v10 = vld [vmem:[#allocation5 + $0x2c] sm:$0xff]  }
 0x2c2   :  { %v7446_v50 = vpop.eup %7445  ;;  %6703 = vmatmul.mubr.msk.bf16.vlgmr.msra.gmra.mrb[184].mxu0 %vm1772_vm5, %v8611_v46  ;;  %6719 = vmatmul.mubr.msk.bf16.vlgmr.msra.gmra.mrb[224].mxu1 %vm1772_vm5, %v8632_v19  ;;  %v1729_v25 = vmul.f32 %v8583_v18, %v1718_v12  ;;  %v2290_v19 = vand.u32 %v7168_v11, %v8412_v59  ;;  %v7180_v12 = vld [vmem:[#allocation5 + $0x18] ss:$0 sps:$4 sm:$0x11]  }
 0x2c3   :  { %v5638_v31 = vadd.f32 -1.0, %v7446_v50  ;;  %6747 = vmatpush3.bf16.msra.mxu1 %v7165_v4  ;;  %6706 = vmatprep.mubr.msk.bf16.mxu0 %vm7612_vm0, %v7611_v0  ;;  %v7178_v4 = vld [vmem:[#allocation5 + $0x10] sm:$0xff]   ;;  %v7181_v11 = vld [vmem:[#allocation5 + $0x38] sm:$0xff]  }
 0x2c4   :  { %v7448_v28 = vpop.eup %7447  ;;  %6722 = vmatprep.mubr.msk.bf16.mxu1 %vm7612_vm0, %v7611_v0  ;;  %6748 = vmatprep.subr.bf16.mxu1 %v7611_v0  ;;  %v1739_v46 = vadd.f32 %v8592_v60, %v1729_v25  ;;  %v7182_v50 = vld [vmem:[#allocation5 + $0x54] sm:$0xff]   ;;  %v7183_v25 = vld [vmem:[#allocation5 + $0x40] sm:$0xff]  }
 0x2c5   :  { %v5639_v24 = vadd.f32 -1.0, %v7448_v28  ;;  %6731 = vmatpush3.bf16.msra.mxu0 %v7167_v9  ;;  %v1707_v35 = vsel %vm1617_vm7, %v1599_v37, %v5638_v31  ;;  %v7184_v31 = vld [vmem:[#allocation5 + $0x5c] sm:$0xff]   ;;  %v7186_v28 = vld [vmem:[#allocation5 + $0x64] sm:$0xff]  }
 0x2c6   :  { %v8755_v27 = vpack.c.bf16 %v1739_v46, %v1738_v47  ;;  %6732 = vmatprep.subr.bf16.mxu0 %v7611_v0 }
 0x2c7   :  { %v1708_v41 = vsel %vm1618_vm8, %v1600_v56, %v5639_v24  ;;  %6749 = vmatpush3.bf16.msra.mxu1 %v2372_v54  ;;  %v7185_v54 = vld [vmem:[#allocation5 + $0x48] sm:$0xff]  }
 0x2c8   :  { %v1719_v45 = vmax.f32 %v1707_v35, %v1708_v41  ;;  %7062 = vmatprep.subr.bf16.mxu1 %v7611_v0  ;;  %v7188_v24 = vld [vmem:[#allocation5 + $0x6c] ss:$0 sps:$4 sm:$0x11]   ;;  %v7190_v35 = vld [vmem:[#allocation5 + $0x78] sm:$0xff]   ;;  %v7191_v41 = vld [vmem:[#allocation5 + $0x80] sm:$0xff]  }
 0x2c9   :  { %6733 = vmatpush3.bf16.msra.mxu0 %v2290_v19 }
 0x2ca   :  { %v1720_v58 = vmax.f32 %v1706_v39, %v1719_v45  ;;  %6707 = vmatmul.mubr.msk.bf16.gmra.mrb[188].mxu0 %vm1772_vm5, %v8696_v48  ;;  %6723 = vmatmul.mubr.msk.bf16.gmra.mrb[228].mxu1 %vm1772_vm5, %v8714_v17  ;;  %v7192_v39 = vld [vmem:[#allocation5 + $0x8c] sm:$0xff]  }
 0x2cb   :  { %6710 = vmatprep.mubr.msk.bf16.mxu0 %vm7612_vm0, %v7611_v0  ;;  %6726 = vmatprep.mubr.msk.bf16.mxu1 %vm7612_vm0, %v7611_v0 }
 0x2cc   :  { %v1730_v43 = vmul.f32 %v8583_v18, %v1720_v58  ;;  %6762 = vmatprep.subr.bf16.mxu0 %v7611_v0  ;;  %v7169_v18 = vld [vmem:[%s9144_s2 + $0x80] sm:$0xff]  }
 0x2ce   :  { %v1740_v30 = vadd.f32 %v8592_v60, %v1730_v43  ;;  %v7170_v60 = vld [vmem:[%s9144_s2 + $0x88] sm:$0x1f]  }
 0x2cf   :  { %v2454_v63 = vand.u32 %v7170_v60, %v8412_v59  ;;  %v7173_v59 = vld [vmem:[#allocation5 + $0x1c] sm:$0xff]   ;;  %v7194_v60 = vld [vmem:[#allocation5 + $0x94] sm:$0xff]  }
 0x2d0   :  { %v6009_v53 = vpack.c.bf16 %v1740_v30, %v1739_v46  ;;  %v1746_v16 = vpack.c.bf16 %v1740_v30, %v1740_v30  ;;  %v7187_v46 = vld [vmem:[#allocation5 + $0x50] ss:$0 sps:$4 sm:$0x11]   ;;  %v7193_v30 = vld [vmem:[#allocation5 + $0x88] ss:$0 sps:$4 sm:$0x11]  }
 0x2d2   :  { %6711 = vmatmul.mubr.msk.bf16.gmra.mrb[192].mxu0 %vm1772_vm5, %v8755_v27  ;;  %6727 = vmatmul.mubr.msk.bf16.gmra.mrb[232].mxu1 %vm1772_vm5, %v6009_v53  ;;  %v5700_v13 = vcombine.low %v1746_v16, %v7613_v7 }
 0x2d3   :  { %6734 = vmatprep.mubr.msk.bf16.mxu0 %vm7612_vm0, %v7611_v0  ;;  %6750 = vmatprep.mubr.msk.bf16.mxu1 %vm7612_vm0, %v7611_v0 }
 0x2d9   :  { %v1894_v49 = vpop.f32.mrb[200].mxu1 }
 0x2da   :  { %6735 = vmatmul.mubr.msk.bf16.vlgmr.msra.gmra.mrb[196].mxu0 %vm1772_vm5, %v8696_v48  ;;  %6751 = vmatmul.mubr.msk.bf16.vlgmr.msra.gmra.mrb[236].mxu1 %vm1772_vm5, %v8714_v17  ;;  %v6656_v40 = vpop.f32.mrb[201].mxu1  ;;  %v7171_v17 = vld [vmem:[%s9144_s2 + $0x90] sm:$0xff]  }
 0x2db   :  { %7064 = vmatpush3.bf16.msra.mxu1 %v7169_v18  ;;  %6738 = vmatprep.mubr.msk.bf16.mxu0 %vm7612_vm0, %v7611_v0  ;;  %v1897_v48 = vpop.f32.mrb[202].mxu1 }
 0x2dc   :  { %6754 = vmatprep.mubr.msk.bf16.mxu1 %vm7612_vm0, %v7611_v0  ;;  %7063 = vmatprep.subr.bf16.mxu1 %v7611_v0  ;;  %v6657_v6 = vpop.f32.mrb[203].mxu1 }
 0x2dd   :  { %6763 = vmatpush3.bf16.msra.mxu0 %v7169_v18 }
 0x2de   :  { %6764 = vmatprep.subr.bf16.mxu0 %v7611_v0 }
 0x2df   :  { %7065 = vmatpush3.bf16.msra.mxu1 %v2454_v63 }
 0x2e0   :  { %6778 = vmatprep.subr.bf16.mxu1 %v7611_v0  ;;  %v1819_v20 = vpop.f32.mrb[160].mxu0 }
 0x2e1   :  { %6765 = vmatpush3.bf16.msra.mxu0 %v2454_v63  ;;  %v8804_v34 = vadd.f32 %v1894_v49, %v1819_v20  ;;  %v6640_v37 = vpop.f32.mrb[161].mxu0  ;;  %v1902_v5 = vpop.f32.mrb[204].mxu1  ;;  %v8874_v63 = vld [vmem:[#allocation5 + $0xa8] sm:$0xff]   ;;  %v7196_v20 = vld [vmem:[#allocation5 + $0x9c] sm:$0xff]  }
 0x2e2   :  { %6739 = vmatmul.mubr.msk.bf16.gmra.mrb[200].mxu0 %vm1772_vm5, %v8755_v27  ;;  %6755 = vmatmul.mubr.msk.bf16.gmra.mrb[240].mxu1 %vm1772_vm5, %v6009_v53  ;;  %v1822_v32 = vpop.f32.mrb[162].mxu0  ;;  %v6660_v15 = vpop.f32.mrb[205].mxu1 }
 0x2e3   :  { %6742 = vmatprep.mubr.msk.bf16.mxu0 %vm7612_vm0, %v7611_v0  ;;  %6758 = vmatprep.mubr.msk.bf16.mxu1 %vm7612_vm0, %v7611_v0  ;;  %v8806_v23 = vadd.f32 %v1897_v48, %v1822_v32  ;;  %v6641_v56 = vpop.f32.mrb[163].mxu0  ;;  %v1905_v38 = vpop.f32.mrb[206].mxu1 }
 0x2e4   :  { %v6661_v42 = vpop.f32.mrb[207].mxu1  ;;  %6794 = vmatprep.subr.bf16.mxu0 %v7173_v59 }
 0x2e8   :  { %v1827_v29 = vpop.f32.mrb[164].mxu0 }
 0x2e9   :  { %v8816_v47 = vadd.f32 %v1902_v5, %v1827_v29  ;;  %v6644_v26 = vpop.f32.mrb[165].mxu0 }
 0x2ea   :  { %6743 = vmatmul.mubr.msk.bf16.gmra.mrb[204].mxu0 %vm1772_vm5, %v5700_v13  ;;  %6759 = vmatmul.mubr.msk.bf16.gmra.mrb[244].mxu1 %vm1772_vm5, %v7737_v8  ;;  %v1830_v62 = vpop.f32.mrb[166].mxu0 }
 0x2eb   :  { %6766 = vmatprep.mubr.msk.bf16.mxu0 %vm7612_vm0, %v7611_v0  ;;  %6774 = vmatprep.mubr.msk.bf16.mxu1 %vm7612_vm0, %v7611_v0  ;;  %v8824_v33 = vadd.f32 %v1905_v38, %v1830_v62  ;;  %v6645_v61 = vpop.f32.mrb[167].mxu0  ;;  %v7198_v38 = vld [vmem:[#allocation5 + $0xa4] ss:$0 sps:$4 sm:$0x11]  }
 0x2f2   :  { %6767 = vmatmul.mubr.msk.bf16.vlgmr.msra.gmra.mrb[208].mxu0 %vm1772_vm5, %v8755_v27  ;;  %6775 = vmatmul.mubr.msk.bf16.vlgmr.msra.gmra.mrb[248].mxu1 %vm1772_vm5, %v7737_v8  ;;  %v7189_v27 = vld [vmem:[#allocation5 + $0x70] sm:$0xff]  }
 0x2f3   :  { %6779 = vmatpush3.bf16.msra.mxu1 %v7171_v17  ;;  %6770 = vmatprep.mubr.msk.bf16.mxu0 %vm7612_vm0, %v7611_v0  ;;  %v8880_v17 = vld [vmem:[#allocation5 + $0xc4] sm:$0xff]  }
 0x2f4   :  { %6780 = vmatprep.subr.bf16.mxu1 %v7611_v0  ;;  %6782 = vmatprep.mubr.msk.bf16.mxu1 %vm7612_vm0, %v7611_v0 }
 0x2f5   :  { %6795 = vmatpush3.bf16.msra.mxu0 %v7173_v59 }
 0x2f6   :  { %6796 = vmatprep.subr.bf16.mxu0 %v7175_v51 }
 0x2f7   :  { %6781 = vmatpush3.bf16.msra.mxu1 %v2536_v44 }
 0x2f8   :  { %6806 = vmatprep.subr.bf16.mxu1 %v7174_v57 }
 0x2f9   :  { %6797 = vmatpush3.bf16.msra.mxu0 %v7175_v51 }
 0x2fa   :  { %6771 = vmatmul.mubr.msk.bf16.gmra.mrb[212].mxu0 %vm1772_vm5, %v5700_v13  ;;  %6783 = vmatmul.mubr.msk.bf16.vlgmr.msra.gmra.mrb[252].mxu1 %vm1772_vm5, %v6009_v53 }
 0x2fb   :  { %6786 = vmatprep.mubr.msk.bf16.mxu1 %vm7612_vm0, %v7611_v0  ;;  %6807 = vmatpush3.bf16.msra.mxu1 %v7174_v57 }
 0x2fc   :  { %6808 = vmatprep.subr.bf16.mxu1 %v7176_v2  ;;  %6798 = vmatprep.subr.bf16.mxu0 %v7177_v10 }
 0x2fd   :  { %6799 = vmatpush3.bf16.msra.mxu0 %v7177_v10 }
 0x2ff   :  { %6809 = vmatpush3.bf16.msra.mxu1 %v7176_v2 }
 0x300   :  { %6810 = vmatprep.subr.bf16.mxu1 %v7178_v4 }
 0x302   :  { %6787 = vmatmul.mubr.msk.bf16.gmra.mrb[0].mxu1 %vm1772_vm5, %v7737_v8 }
 0x303   :  { %6790 = vmatprep.mubr.msk.bf16.mxu1 %vm7612_vm0, %v7611_v0  ;;  %vm2704_vm0 = vcmask 1040384   ;;  %6811 = vmatpush3.bf16.msra.mxu1 %v7178_v4 }
 0x304   :  { %7109 = vmatprep.subr.msk.bf16.mxu0 %vm2704_vm0, %v7179_v22  ;;  %v2706_v1 = vsel %vm2704_vm0, %v7179_v22, 0  ;;  %7110 = vmatprep.subr.msk.bf16.mxu1 %vm2704_vm0, %v7180_v12  ;;  %v2778_v9 = vsel %vm2704_vm0, %v7180_v12, 0  ;;  %v2858_v52 = vsel %vm2704_vm0, %v7187_v46, 0  ;;  %v2941_v19 = vsel %vm2704_vm0, %v7188_v24, 0 }
 0x305   :  { %6801 = vmatpush3.bf16.msra.mxu0 %v2706_v1  ;;  %v3030_v18 = vsel %vm2704_vm0, %v7193_v30, 0  ;;  %v3123_v13 = vsel %vm2704_vm0, %v7198_v38, 0 }
 0x306   :  { %6818 = vmatprep.subr.bf16.mxu0 %v7181_v11 }
 0x307   :  { %6813 = vmatpush3.bf16.msra.mxu1 %v2778_v9 }
 0x308   :  { %6830 = vmatprep.subr.bf16.mxu1 %v7182_v50 }
 0x30a   :  { %6791 = vmatmul.mubr.msk.bf16.gmra.mrb[4].mxu1 %vm1772_vm5, %v7737_v8  ;;  %vm2701_vm5 = vcmask 408576  }
 0x30b   :  { %6802 = vmatprep.mubr.msk.bf16.mxu0 %vm2701_vm5, %v7737_v8  ;;  %6814 = vmatprep.mubr.msk.bf16.mxu1 %vm2701_vm5, %v7737_v8 }
 0x30c   :  { %6803 = vmatmul.mubr.msk.bf16.vlgmr.msra.gmra.mrb[216].mxu0 %vm2701_vm5, %v7737_v8 }
 0x30d   :  { %6819 = vmatpush3.bf16.msra.mxu0 %v7181_v11  ;;  %6826 = vmatprep.mubr.msk.bf16.mxu0 %vm2701_vm5, %v7737_v8 }
 0x30e   :  { %6820 = vmatprep.subr.bf16.mxu0 %v7183_v25 }
 0x311   :  { %6821 = vmatpush3.bf16.msra.mxu0 %v7183_v25 }
 0x312   :  { %6815 = vmatmul.mubr.msk.bf16.vlgmr.msra.gmra.mrb[8].mxu1 %vm2701_vm5, %v7737_v8  ;;  %6822 = vmatprep.subr.bf16.mxu0 %v7185_v54 }
 0x313   :  { %6831 = vmatpush3.bf16.msra.mxu1 %v7182_v50  ;;  %6838 = vmatprep.mubr.msk.bf16.mxu1 %vm2701_vm5, %v7737_v8 }
 0x314   :  { %6832 = vmatprep.subr.bf16.mxu1 %v7184_v31 }
 0x315   :  { %6823 = vmatpush3.bf16.msra.mxu0 %v7185_v54 }
 0x316   :  { %7111 = vmatprep.subr.msk.bf16.mxu0 %vm2704_vm0, %v7187_v46 }
 0x317   :  { %6833 = vmatpush3.bf16.msra.mxu1 %v7184_v31 }
 0x318   :  { %6834 = vmatprep.subr.bf16.mxu1 %v7186_v28 }
 0x319   :  { %6825 = vmatpush3.bf16.msra.mxu0 %v2858_v52 }
 0x31a   :  { %6842 = vmatprep.subr.bf16.mxu0 %v7189_v27 }
 0x31b   :  { %6835 = vmatpush3.bf16.msra.mxu1 %v7186_v28 }
 0x31c   :  { %7112 = vmatprep.subr.msk.bf16.mxu1 %vm2704_vm0, %v7188_v24  ;;  %6827 = vmatmul.mubr.msk.bf16.vlgmr.msra.gmra.mrb[220].mxu0 %vm2701_vm5, %v7737_v8 }
 0x31d   :  { %6850 = vmatprep.mubr.msk.bf16.mxu0 %vm2701_vm5, %v7737_v8  ;;  %6843 = vmatpush3.bf16.msra.mxu0 %v7189_v27 }
 0x31e   :  { %6844 = vmatprep.subr.bf16.mxu0 %v7190_v35 }
 0x31f   :  { %6837 = vmatpush3.bf16.msra.mxu1 %v2941_v19 }
 0x320   :  { %6854 = vmatprep.subr.bf16.mxu1 %v7192_v39 }
 0x321   :  { %6845 = vmatpush3.bf16.msra.mxu0 %v7190_v35 }
 0x322   :  { %6839 = vmatmul.mubr.msk.bf16.vlgmr.msra.gmra.mrb[12].mxu1 %vm2701_vm5, %v7737_v8  ;;  %6846 = vmatprep.subr.bf16.mxu0 %v7191_v41 }
 0x323   :  { %6855 = vmatpush3.bf16.msra.mxu1 %v7192_v39 }
 0x324   :  { %6856 = vmatprep.subr.bf16.mxu1 %v7194_v60 }
 0x325   :  { %6847 = vmatpush3.bf16.msra.mxu0 %v7191_v41 }
 0x326   :  { %7113 = vmatprep.subr.msk.bf16.mxu0 %vm2704_vm0, %v7193_v30 }
 0x327   :  { %6857 = vmatpush3.bf16.msra.mxu1 %v7194_v60 }
 0x328   :  { %6858 = vmatprep.subr.bf16.mxu1 %v7196_v20 }
 0x329   :  { %6849 = vmatpush3.bf16.msra.mxu0 %v3030_v18 }
 0x32a   :  { %6866 = vmatprep.subr.bf16.mxu0 %v8874_v63 }
 0x32b   :  { %6859 = vmatpush3.bf16.msra.mxu1 %v7196_v20 }
 0x32c   :  { %7114 = vmatprep.subr.msk.bf16.mxu1 %vm2704_vm0, %v7198_v38 }
 0x32f   :  { %6861 = vmatpush3.bf16.msra.mxu1 %v3123_v13 }
 0x330   :  { %6878 = vmatprep.subr.bf16.mxu1 %v8880_v17 }
 0x36d   :  { %v1910_v45 = vpop.f32.mrb[208].mxu1 }
 0x36e   :  { %v6664_v58 = vpop.f32.mrb[209].mxu1 }
 0x36f   :  { %v1913_v43 = vpop.f32.mrb[210].mxu1 }
 0x370   :  { %v6665_v53 = vpop.f32.mrb[211].mxu1 }
 0x375   :  { %v1835_v49 = vpop.f32.mrb[168].mxu0  ;;  %v2064_v6 = vpop.f32.mrb[212].mxu1 }
 0x376   :  { %v1911_v40 = vadd.f32 %v1910_v45, %v1835_v49  ;;  %v6648_v48 = vpop.f32.mrb[169].mxu0  ;;  %v6688_v37 = vpop.f32.mrb[213].mxu1 }
 0x377   :  { %v1838_v16 = vpop.f32.mrb[170].mxu0  ;;  %v2067_v15 = vpop.f32.mrb[214].mxu1 }
 0x378   :  { %v1914_v32 = vadd.f32 %v1913_v43, %v1838_v16  ;;  %v6649_v5 = vpop.f32.mrb[171].mxu0  ;;  %v6689_v56 = vpop.f32.mrb[215].mxu1 }
 0x37d   :  { %v1976_v42 = vpop.f32.mrb[172].mxu0  ;;  %v2072_v26 = vpop.f32.mrb[216].mxu1 }
 0x37e   :  { %v1999_v29 = vadd.f32 %v1976_v42, %v8804_v34  ;;  %v6672_v62 = vpop.f32.mrb[173].mxu0  ;;  %v6692_v3 = vpop.f32.mrb[217].mxu1 }
 0x37f   :  { %v1979_v61 = vpop.f32.mrb[174].mxu0  ;;  %v2075_v59 = vpop.f32.mrb[218].mxu1 }
 0x380   :  { %v2000_v44 = vadd.f32 %v1979_v61, %v8806_v23  ;;  %v6673_v57 = vpop.f32.mrb[175].mxu0  ;;  %v2087_v51 = vadd.f32 %v2064_v6, %v1999_v29  ;;  %v6693_v2 = vpop.f32.mrb[219].mxu1 }
 0x382   :  { %v2088_v10 = vadd.f32 %v2067_v15, %v2000_v44 }
 0x385   :  { %v1984_v4 = vpop.f32.mrb[176].mxu0 }
 0x386   :  { %v2001_v22 = vadd.f32 %v1984_v4, %v8816_v47  ;;  %v6676_v12 = vpop.f32.mrb[177].mxu0 }
 0x387   :  { %v1987_v34 = vpop.f32.mrb[178].mxu0 }
 0x388   :  { %v2002_v1 = vadd.f32 %v1987_v34, %v8824_v33  ;;  %v6677_v9 = vpop.f32.mrb[179].mxu0  ;;  %v2089_v11 = vadd.f32 %v2072_v26, %v2001_v22 }
 0x38a   :  { %v2090_v50 = vadd.f32 %v2075_v59, %v2002_v1 }
 0x38d   :  { %v1992_v25 = vpop.f32.mrb[180].mxu0  ;;  %v2080_v31 = vpop.f32.mrb[220].mxu1 }
 0x38e   :  { %v2003_v23 = vadd.f32 %v1992_v25, %v1911_v40  ;;  %v6680_v54 = vpop.f32.mrb[181].mxu0  ;;  %v6696_v28 = vpop.f32.mrb[221].mxu1 }
 0x38f   :  { %v1995_v46 = vpop.f32.mrb[182].mxu0  ;;  %v2083_v52 = vpop.f32.mrb[222].mxu1 }
 0x390   :  { %v2091_v24 = vadd.f32 %v2080_v31, %v2003_v23  ;;  %v2004_v19 = vadd.f32 %v1995_v46, %v1914_v32  ;;  %v6681_v27 = vpop.f32.mrb[183].mxu0  ;;  %v6697_v35 = vpop.f32.mrb[223].mxu1 }
 0x392   :  { %v2092_v41 = vadd.f32 %v2083_v52, %v2004_v19 }
 0x395   :  { %v2152_v47 = vpop.f32.mrb[184].mxu0  ;;  %v2240_v45 = vpop.f32.mrb[224].mxu1 }
 0x396   :  { %v2175_v39 = vadd.f32 %v2152_v47, %v2087_v51  ;;  %v6704_v58 = vpop.f32.mrb[185].mxu0  ;;  %v6720_v33 = vpop.f32.mrb[225].mxu1 }
 0x397   :  { %v2155_v43 = vpop.f32.mrb[186].mxu0  ;;  %v2243_v30 = vpop.f32.mrb[226].mxu1 }
 0x398   :  { %v2263_v53 = vadd.f32 %v2240_v45, %v2175_v39  ;;  %v2176_v18 = vadd.f32 %v2155_v43, %v2088_v10  ;;  %v6705_v60 = vpop.f32.mrb[187].mxu0  ;;  %v6721_v49 = vpop.f32.mrb[227].mxu1 }
 0x39a   :  { %v2264_v40 = vadd.f32 %v2243_v30, %v2176_v18 }
 0x39d   :  { %v2160_v48 = vpop.f32.mrb[188].mxu0  ;;  %v2248_v6 = vpop.f32.mrb[228].mxu1 }
 0x39e   :  { %v2177_v20 = vadd.f32 %v2160_v48, %v2089_v11  ;;  %v6708_v16 = vpop.f32.mrb[189].mxu0  ;;  %v6724_v37 = vpop.f32.mrb[229].mxu1 }
 0x39f   :  { %v2163_v32 = vpop.f32.mrb[190].mxu0  ;;  %v2251_v5 = vpop.f32.mrb[230].mxu1 }
 0x3a0   :  { %v2265_v15 = vadd.f32 %v2248_v6, %v2177_v20  ;;  %v2178_v56 = vadd.f32 %v2163_v32, %v2090_v50  ;;  %v6709_v38 = vpop.f32.mrb[191].mxu0  ;;  %v6725_v13 = vpop.f32.mrb[231].mxu1 }
 0x3a2   :  { %v2266_v42 = vadd.f32 %v2251_v5, %v2178_v56 }
 0x3a5   :  { %v2168_v29 = vpop.f32.mrb[192].mxu0  ;;  %v2256_v26 = vpop.f32.mrb[232].mxu1 }
 0x3a6   :  { %v2179_v62 = vadd.f32 %v2168_v29, %v2091_v24  ;;  %v6712_v3 = vpop.f32.mrb[193].mxu0  ;;  %v6728_v61 = vpop.f32.mrb[233].mxu1 }
 0x3a7   :  { %v2171_v44 = vpop.f32.mrb[194].mxu0  ;;  %v2259_v59 = vpop.f32.mrb[234].mxu1 }
 0x3a8   :  { %v2267_v57 = vadd.f32 %v2256_v26, %v2179_v62  ;;  %v2180_v51 = vadd.f32 %v2171_v44, %v2092_v41  ;;  %v6713_v2 = vpop.f32.mrb[195].mxu0  ;;  %v6729_v10 = vpop.f32.mrb[235].mxu1  ;;  %v8887_v44 = vsub.s32 3, %v8527_v21 }
 0x3aa   :  { %v2268_v4 = vadd.f32 %v2259_v59, %v2180_v51  ;;  %v8892_v59 = vld [vmem:[%s9147_s5] sm:$0xff] }
 0x3ad   :  { %v2326_v22 = vpop.f32.mrb[196].mxu0  ;;  %v2408_v12 = vpop.f32.mrb[236].mxu1 }
 0x3ae   :  { %v2349_v34 = vadd.f32 %v2326_v22, %v2263_v53  ;;  %v6736_v1 = vpop.f32.mrb[197].mxu0  ;;  %v6752_v9 = vpop.f32.mrb[237].mxu1 }
 0x3af   :  { %v2329_v11 = vpop.f32.mrb[198].mxu0  ;;  %v2411_v50 = vpop.f32.mrb[238].mxu1 }
 0x3b0   :  { %v2431_v25 = vadd.f32 %v2408_v12, %v2349_v34  ;;  %v2350_v31 = vadd.f32 %v2329_v11, %v2264_v40  ;;  %v6737_v23 = vpop.f32.mrb[199].mxu0  ;;  %v6753_v54 = vpop.f32.mrb[239].mxu1 }
 0x3b2   :  { %v2432_v28 = vadd.f32 %v2411_v50, %v2350_v31 }
 0x3b5   :  { %v2334_v46 = vpop.f32.mrb[200].mxu0  ;;  %v2416_v52 = vpop.f32.mrb[240].mxu1 }
 0x3b6   :  { %v2351_v24 = vadd.f32 %v2334_v46, %v2265_v15  ;;  %v6740_v19 = vpop.f32.mrb[201].mxu0  ;;  %v6756_v27 = vpop.f32.mrb[241].mxu1 }
 0x3b7   :  { %v2337_v35 = vpop.f32.mrb[202].mxu0  ;;  %v2419_v41 = vpop.f32.mrb[242].mxu1 }
 0x3b8   :  { %v2433_v47 = vadd.f32 %v2416_v52, %v2351_v24  ;;  %v2352_v45 = vadd.f32 %v2337_v35, %v2266_v42  ;;  %v6741_v39 = vpop.f32.mrb[203].mxu0  ;;  %v6757_v58 = vpop.f32.mrb[243].mxu1 }
 0x3ba   :  { %v2434_v33 = vadd.f32 %v2419_v41, %v2352_v45 }
 0x3bd   :  { %v2342_v43 = vpop.f32.mrb[204].mxu0  ;;  %v2424_v30 = vpop.f32.mrb[244].mxu1 }
 0x3be   :  { %v2353_v53 = vadd.f32 %v2342_v43, %v2267_v57  ;;  %v6744_v18 = vpop.f32.mrb[205].mxu0  ;;  %v6760_v60 = vpop.f32.mrb[245].mxu1  ;;  %v2604_v57 = vrot.slane %v8892_v59, %v8887_v44 }
 0x3bf   :  { %v2345_v49 = vpop.f32.mrb[206].mxu0  ;;  %v2427_v40 = vpop.f32.mrb[246].mxu1 }
 0x3c0   :  { %v2435_v48 = vadd.f32 %v2424_v30, %v2353_v53  ;;  %v2354_v6 = vadd.f32 %v2345_v49, %v2268_v4  ;;  %v6745_v20 = vpop.f32.mrb[207].mxu0  ;;  %v6761_v16 = vpop.f32.mrb[247].mxu1 }
 0x3c2   :  { %v2436_v37 = vadd.f32 %v2427_v40, %v2354_v6 }
 0x3c5   :  { %v2490_v32 = vpop.f32.mrb[208].mxu0  ;;  %v2506_v5 = vpop.f32.mrb[248].mxu1 }
 0x3c6   :  { %v2513_v15 = vadd.f32 %v2490_v32, %v2431_v25  ;;  %v2517_v56 = vadd.f32 %v2506_v5, %v2435_v48  ;;  %v6768_v38 = vpop.f32.mrb[209].mxu0  ;;  %v6776_v13 = vpop.f32.mrb[249].mxu1 }
 0x3c7   :  { %v2493_v42 = vpop.f32.mrb[210].mxu0  ;;  %v2509_v29 = vpop.f32.mrb[250].mxu1 }
 0x3c8   :  { %v2514_v26 = vadd.f32 %v2493_v42, %v2432_v28  ;;  %v2518_v62 = vadd.f32 %v2509_v29, %v2436_v37  ;;  %v6769_v3 = vpop.f32.mrb[211].mxu0  ;;  %v6777_v61 = vpop.f32.mrb[251].mxu1  ;;  %v2653_v29 = vsub.s32 4, %v8527_v21 }
 0x3cd   :  { %v2498_v51 = vpop.f32.mrb[212].mxu0  ;;  %v2572_v2 = vpop.f32.mrb[252].mxu1 }
 0x3ce   :  { %v2515_v10 = vadd.f32 %v2498_v51, %v2433_v47  ;;  %v2595_v4 = vadd.f32 %v2572_v2, %v2513_v15  ;;  %v6772_v22 = vpop.f32.mrb[213].mxu0  ;;  %v6784_v12 = vpop.f32.mrb[253].mxu1  ;;  %v2654_v51 = vrot.slane %v8892_v59, %v2653_v29 }
 0x3cf   :  { %v2501_v34 = vpop.f32.mrb[214].mxu0  ;;  %v2575_v1 = vpop.f32.mrb[254].mxu1 }
 0x3d0   :  { %v2605_v9 = vadd.f32 %v2604_v57, %v2595_v4  ;;  %v2516_v11 = vadd.f32 %v2501_v34, %v2434_v33  ;;  %v2596_v50 = vadd.f32 %v2575_v1, %v2514_v26  ;;  %v6773_v25 = vpop.f32.mrb[215].mxu0  ;;  %v6785_v31 = vpop.f32.mrb[255].mxu1 }
 0x3d2   :  { %v2606_v23 = vadd.f32 %v2604_v57, %v2596_v50  ;;  %v2617_v54 = vmin.f32 %v2605_v9, 0.0  ;;  %vm2611_vm12 = vcmp.gt.f32.partialorder %v2605_v9, 0.0 }
 0x3d4   :  { %v2618_v28 = vmin.f32 %v2606_v23, 0.0  ;;  %v2623_v35 = vmul.f32 1.442695, %v2617_v54  ;;  %vm2612_vm10 = vcmp.gt.f32.partialorder %v2606_v23, 0.0  ;;  %v7197_v54 = vld [vmem:[#allocation5 + $0xb0] sm:$0xff]  }
 0x3d5   :  { %v2580_v46 = vpop.f32.mrb[0].mxu1 }
 0x3d6   :  { %v2625_v52 = vmul.f32 1.442695, %v2618_v28  ;;  %v2597_v24 = vadd.f32 %v2580_v46, %v2515_v10  ;;  %v6788_v19 = vpop.f32.mrb[1].mxu1 }
 0x3d7   :  { %v2583_v27 = vpop.f32.mrb[2].mxu1 }
 0x3d8   :  { %v2607_v41 = vadd.f32 %v2604_v57, %v2597_v24  ;;  %v2598_v47 = vadd.f32 %v2583_v27, %v2516_v11  ;;  %v6789_v45 = vpop.f32.mrb[3].mxu1  ;;  %7449 = vpow2.f32 %v2625_v52  ;;  %v7199_v27 = vld [vmem:[#allocation5 + $0xb8] sm:$0xff]  }
 0x3d9   :  { %7451 = vpow2.f32 %v2623_v35 }
 0x3da   :  { %v2619_v39 = vmin.f32 %v2607_v41, 0.0  ;;  %v2608_v58 = vadd.f32 %v2604_v57, %v2598_v47  ;;  %vm2613_vm11 = vcmp.gt.f32.partialorder %v2607_v41, 0.0  ;;  %v7201_v47 = vld [vmem:[#allocation5 + $0xc0] ss:$0 sps:$4 sm:$0x11]  }
 0x3dc   :  { %v2627_v33 = vmul.f32 1.442695, %v2619_v39  ;;  %v2620_v43 = vmin.f32 %v2608_v58, 0.0  ;;  %vm2614_vm15 = vcmp.gt.f32.partialorder %v2608_v58, 0.0 }
 0x3dd   :  { %v2588_v30 = vpop.f32.mrb[4].mxu1 }
 0x3de   :  { %7453 = vpow2.f32 %v2627_v33  ;;  %v2599_v53 = vadd.f32 %v2588_v30, %v2517_v56  ;;  %v6792_v18 = vpop.f32.mrb[5].mxu1  ;;  %v2629_v6 = vmul.f32 1.442695, %v2620_v43  ;;  %v7202_v33 = vld [vmem:[#allocation5 + $0xcc] sm:$0xff]   ;;  %v7203_v43 = vld [vmem:[#allocation5 + $0xe0] sm:$0xff]   ;;  %v7204_v30 = vld [vmem:[#allocation5 + $0xd4] sm:$0xff]  }
 0x3df   :  { %v2591_v60 = vpop.f32.mrb[6].mxu1  ;;  %v7206_v18 = vld [vmem:[#allocation5 + $0xdc] ss:$0 sps:$4 sm:$0x11]  }
 0x3e0   :  { %v2609_v49 = vadd.f32 %v2604_v57, %v2599_v53  ;;  %v2600_v40 = vadd.f32 %v2591_v60, %v2518_v62  ;;  %v6793_v48 = vpop.f32.mrb[7].mxu1  ;;  %7455 = vpow2.f32 %v2629_v6  ;;  %v2659_v62 = vsub.s32 5, %v8527_v21  ;;  %v7205_v53 = vld [vmem:[#allocation5 + $0xe8] sm:$0xff]  }
 0x3e1   :  { %v3297_v60 = vsel %vm2704_vm0, %v7206_v18, 0  ;;  %v7210_v48 = vld [vmem:[#allocation5 + $0x104] sm:$0xff]  }
 0x3e2   :  { %v2621_v20 = vmin.f32 %v2609_v49, 0.0  ;;  %v2610_v16 = vadd.f32 %v2604_v57, %v2600_v40  ;;  %v7450_v37 = vpop.eup %7449  ;;  %v2660_v4 = vrot.slane %v8892_v59, %v2659_v62  ;;  %vm2615_vm13 = vcmp.gt.f32.partialorder %v2609_v49, 0.0  ;;  %v7209_v40 = vld [vmem:[#allocation5 + $0xf8] ss:$0 sps:$4 sm:$0x11]  }
 0x3e3   :  { %v7452_v15 = vpop.eup %7451  ;;  %v5734_v13 = vadd.f32 -1.0, %v7450_v37  ;;  %v3380_v6 = vsel %vm2704_vm0, %v7209_v40, 0  ;;  %v7213_v37 = vld [vmem:[#allocation7 + $0x68] ss:$8 sps:$4 sm:$0xff]   ;;  %v7227_v62 = vld [vmem:[#allocation7 + $0xac] ss:$8 sps:$4 sm:$0xff]  }
 0x3e4   :  { %v2631_v32 = vmul.f32 1.442695, %v2621_v20  ;;  %v2622_v5 = vmin.f32 %v2610_v16, 0.0  ;;  %v5733_v56 = vadd.f32 -1.0, %v7452_v15  ;;  %vm2616_vm14 = vcmp.gt.f32.partialorder %v2610_v16, 0.0 }
 0x3e5   :  { %v2642_v3 = vsel %vm2612_vm10, %v2606_v23, %v5734_v13  ;;  %v7215_v20 = vld [vmem:[#allocation7 + $0x6c] ss:$8 sps:$4 sm:$0xff]   ;;  %v7216_v15 = vld [vmem:[#allocation7 + $0x78] ss:$8 sps:$4 sm:$0xff]  }
 0x3e6   :  { %7457 = vpow2.f32 %v2631_v32  ;;  %v2633_v38 = vmul.f32 1.442695, %v2622_v5  ;;  %v2641_v2 = vsel %vm2611_vm12, %v2605_v9, %v5733_v56  ;;  %v7218_v32 = vld [vmem:[#allocation7 + $0x7c] ss:$8 sps:$4 sm:$0xff]   ;;  %vm5464_vm12 = vcmask 25600  }
 0x3e7   :  { %v7212_v5 = vld [vmem:[#allocation5 + $0x114] ss:$0 sps:$4 sm:$0x11]  }
 0x3e8   :  { %v7454_v42 = vpop.eup %7453  ;;  %7459 = vpow2.f32 %v2633_v38  ;;  %v7221_v38 = vld [vmem:[#allocation7 + $0x8c] ss:$8 sps:$4 sm:$0xff]   ;;  %v3463_v13 = vsel %vm2704_vm0, %v7212_v5, 0  ;;  %v7224_v56 = vld [vmem:[#allocation7 + $0x9c] ss:$8 sps:$4 sm:$0xff]  }
 0x3e9   :  { %v5735_v26 = vadd.f32 -1.0, %v7454_v42  ;;  %v7219_v42 = vld [vmem:[#allocation7 + $0x88] ss:$8 sps:$4 sm:$0xff]  }
 0x3ea   :  { %v7456_v22 = vpop.eup %7455 }
 0x3eb   :  { %v2643_v61 = vsel %vm2613_vm11, %v2607_v41, %v5735_v26  ;;  %v5736_v25 = vadd.f32 -1.0, %v7456_v22  ;;  %v7222_v26 = vld [vmem:[#allocation7 + $0x98] ss:$8 sps:$4 sm:$0xff]   ;;  %vm5078_vm11 = vcmask 588800  }
 0x3ec   :  { %v2647_v57 = vmax.f32 %v2642_v3, %v2643_v61  ;;  %v6804_v3 = vpop.f32.mrb[216].mxu0  ;;  %v7225_v61 = vld [vmem:[#allocation7 + $0xa8] ss:$8 sps:$4 sm:$0xff]  }
 0x3ed   :  { %v2644_v24 = vsel %vm2614_vm15, %v2608_v58, %v5736_v25 }
 0x3ee   :  { %v2648_v10 = vmax.f32 %v2641_v2, %v2647_v57  ;;  %v2742_v57 = vpop.f32.mrb[217].mxu0 }
 0x3ef   :  { %v6805_v2 = vpop.f32.mrb[218].mxu0 }
 0x3f0   :  { %v7458_v12 = vpop.eup %7457  ;;  %v2655_v34 = vmul.f32 %v2654_v51, %v2648_v10  ;;  %v6816_v10 = vpop.f32.mrb[8].mxu1  ;;  %v7270_v2 = vld [vmem:[#allocation7 + $0x124] ss:$8 sps:$4 sm:$0xff]  }
 0x3f1   :  { %v5737_v1 = vadd.f32 -1.0, %v7458_v12  ;;  %v2823_v22 = vadd.f32 %v6816_v10, %v6804_v3  ;;  %v2745_v12 = vpop.f32.mrb[219].mxu0  ;;  %v7264_v3 = vld [vmem:[#allocation7 + $0x104] ss:$8 sps:$4 sm:$0xff]   ;;  %v3842_v10 = vld [vmem:[#allocation7 + $0x130] sm:$0x33] }
 0x3f2   :  { %v7460_v11 = vpop.eup %7459  ;;  %v2661_v50 = vadd.f32 %v2660_v4, %v2655_v34  ;;  %v2814_v34 = vpop.f32.mrb[9].mxu1 }
 0x3f3   :  { %v5738_v31 = vadd.f32 -1.0, %v7460_v11  ;;  %v2645_v28 = vsel %vm2615_vm13, %v2609_v49, %v5737_v1  ;;  %v7208_v49 = vld [vmem:[#allocation5 + $0xfc] sm:$0xff]   ;;  %v2815_v1 = vadd.f32 %v2814_v34, %v2742_v57  ;;  %v6817_v11 = vpop.f32.mrb[10].mxu1  ;;  %v7267_v57 = vld [vmem:[#allocation7 + $0x114] ss:$8 sps:$4 sm:$0xff]  }
 0x3f4   :  { %v2663_v23 = vpack.c.bf16 %v2661_v50, %v2661_v50  ;;  %v2817_v25 = vpop.f32.mrb[11].mxu1  ;;  %v7273_v11 = vld [vmem:[#allocation7 + $0x138] ss:$8 sps:$4 sm:$0xff]  }
 0x3f5   :  { %v2646_v46 = vsel %vm2616_vm14, %v2610_v16, %v5738_v31  ;;  %v7211_v16 = vld [vmem:[#allocation5 + $0x10c] sm:$0xff]  }
 0x3f6   :  { %v2649_v52 = vmax.f32 %v2645_v28, %v2646_v46  ;;  %6851 = vmatmul.mubr.msk.bf16.vlgmr.msra.gmra.mrb[224].mxu0 %vm2701_vm5, %v2663_v23  ;;  %v5770_v9 = vcombine.low %v7613_v7, %v2663_v23  ;;  %v7235_v46 = vld [vmem:[#allocation7 + $0x4] ss:$8 sps:$4 sm:$0xff]  }
 0x3f7   :  { %6867 = vmatpush3.bf16.msra.mxu0 %v8874_v63  ;;  %v3210_v63 = vsel %vm2704_vm0, %v7201_v47, 0 }
 0x3f8   :  { %v2650_v19 = vmax.f32 %v2644_v24, %v2649_v52  ;;  %6862 = vmatprep.mubr.msk.bf16.mxu1 %vm2701_vm5, %v5770_v9  ;;  %6868 = vmatprep.subr.bf16.mxu0 %v7197_v54  ;;  %v7233_v52 = vld [vmem:[#allocation7] ss:$8 sps:$4 sm:$0xff]   ;;  %v7238_v9 = vld [vmem:[#allocation7 + $0x14] ss:$8 sps:$4 sm:$0xff]   ;;  %v6828_v24 = vpop.f32.mrb[220].mxu0 }
 0x3fa   :  { %v2656_v35 = vmul.f32 %v2654_v51, %v2650_v19  ;;  %v7230_v51 = vld [vmem:[#allocation7 + $0xbc] ss:$8 sps:$4 sm:$0xff]   ;;  %v7236_v19 = vld [vmem:[#allocation7 + $0x10] ss:$8 sps:$4 sm:$0xff]  }
 0x3fb   :  { %6869 = vmatpush3.bf16.msra.mxu0 %v7197_v54  ;;  %v2818_v54 = vadd.f32 %v2817_v25, %v2745_v12  ;;  %v5853_v12 = vcombine.low %v3842_v10, %v3842_v10  ;;  %v7276_v25 = vld [vmem:[#allocation7 + $0x148] ss:$8 sps:$4 sm:$0xff]  }
 0x3fc   :  { %v2662_v41 = vadd.f32 %v2660_v4, %v2656_v35  ;;  %6870 = vmatprep.subr.bf16.mxu0 %v7199_v27  ;;  %v3580_v4 = vld [vmem:[#allocation7 + $0xc8] sm:$0x33]  ;;  %v2894_v35 = vpop.f32.mrb[221].mxu0 }
 0x3fd   :  { %v5820_v31 = vcombine.high %v3580_v4, %v3580_v4  ;;  %v5819_v23 = vcombine.low %v3580_v4, %v3580_v4  ;;  %v7268_v4 = vld [vmem:[#allocation7 + $0x120] ss:$8 sps:$4 sm:$0xff]   ;;  %v3909_v34 = vsel %vm3649_vm1, %v5853_v12, 0 }
 0x3fe   :  { %v2664_v45 = vpack.c.bf16 %v2662_v41, %v2662_v41  ;;  %v6012_v39 = vpack.c.bf16 %v2662_v41, %v2661_v50  ;;  %v7228_v50 = vld [vmem:[#allocation7 + $0xb8] ss:$8 sps:$4 sm:$0xff]   ;;  %v7241_v41 = vld [vmem:[#allocation7 + $0x24] ss:$8 sps:$4 sm:$0xff]  }
 0x3ff   :  { %6871 = vmatpush3.bf16.msra.mxu0 %v7199_v27  ;;  %v3651_v28 = vsel %vm3649_vm1, %v5819_v23, 0  ;;  %v2910_v27 = vadd.f32 %v6828_v24, %v2823_v22  ;;  %v5854_v22 = vcombine.high %v3842_v10, %v3842_v10  ;;  %v7279_v23 = vld [vmem:[#allocation7 + $0x158] ss:$8 sps:$4 sm:$0xff]  }
 0x400   :  { %6863 = vmatmul.mubr.msk.bf16.vlgmr.msra.gmra.mrb[16].mxu1 %vm2701_vm5, %v2664_v45  ;;  %6874 = vmatprep.mubr.msk.bf16.mxu0 %vm2701_vm5, %v6012_v39  ;;  %v5785_v58 = vcombine.low %v2664_v45, %v7613_v7  ;;  %v6829_v45 = vpop.f32.mrb[222].mxu0  ;;  %v6840_v39 = vpop.f32.mrb[12].mxu1  ;;  %v3984_v24 = vld [vmem:[#allocation7 + $0x198] sm:$0x33] }
 0x401   :  { %6879 = vmatpush3.bf16.msra.mxu1 %v8880_v17  ;;  %7115 = vmatprep.subr.msk.bf16.mxu0 %vm2704_vm0, %v7201_v47  ;;  %v7207_v17 = vld [vmem:[#allocation5 + $0xf0] sm:$0xff]   ;;  %v2908_v47 = vadd.f32 %v2894_v35, %v2815_v1  ;;  %v5870_v35 = vcombine.low %v3984_v24, %v3984_v24  ;;  %v7293_v45 = vld [vmem:[#allocation7 + $0x1a0] ss:$8 sps:$4 sm:$0xff]  }
 0x402   :  { %6886 = vmatprep.mubr.msk.bf16.mxu1 %vm2701_vm5, %v5785_v58  ;;  %6880 = vmatprep.subr.bf16.mxu1 %v7202_v33  ;;  %v2977_v58 = vpop.f32.mrb[13].mxu1  ;;  %v7275_v1 = vld [vmem:[#allocation7 + $0x13c] ss:$8 sps:$4 sm:$0xff]  }
 0x403   :  { %6873 = vmatpush3.bf16.msra.mxu0 %v3210_v63  ;;  %v2897_v63 = vpop.f32.mrb[223].mxu0 }
 0x404   :  { %6890 = vmatprep.subr.bf16.mxu0 %v7203_v43 }
 0x405   :  { %6881 = vmatpush3.bf16.msra.mxu1 %v7202_v33  ;;  %v8937_v33 = vadd.f32 %v6840_v39, %v2910_v27  ;;  %v5871_v27 = vcombine.high %v3984_v24, %v3984_v24  ;;  %v7298_v39 = vld [vmem:[#allocation7 + $0x1b4] ss:$8 sps:$4 sm:$0xff]  }
 0x406   :  { %6875 = vmatmul.mubr.msk.bf16.vlgmr.msra.gmra.mrb[228].mxu0 %vm2701_vm5, %v7737_v8  ;;  %6882 = vmatprep.subr.bf16.mxu1 %v7204_v30 }
 0x407   :  { %6891 = vmatpush3.bf16.msra.mxu0 %v7203_v43  ;;  %6898 = vmatprep.mubr.msk.bf16.mxu0 %vm2701_vm5, %v7737_v8  ;;  %v2909_v43 = vadd.f32 %v2897_v63, %v2818_v54  ;;  %v7284_v54 = vld [vmem:[#allocation7 + $0x16c] ss:$8 sps:$4 sm:$0xff]   ;;  %v7296_v63 = vld [vmem:[#allocation7 + $0x1b0] ss:$8 sps:$4 sm:$0xff]  }
 0x408   :  { %6892 = vmatprep.subr.bf16.mxu0 %v7205_v53 }
 0x409   :  { %6883 = vmatpush3.bf16.msra.mxu1 %v7204_v30  ;;  %v8939_v30 = vadd.f32 %v2977_v58, %v2908_v47  ;;  %v7295_v47 = vld [vmem:[#allocation7 + $0x1a4] ss:$8 sps:$4 sm:$0xff]  }
 0x40a   :  { %7116 = vmatprep.subr.msk.bf16.mxu1 %vm2704_vm0, %v7206_v18  ;;  %v7239_v18 = vld [vmem:[#allocation7 + $0x20] ss:$8 sps:$4 sm:$0xff]   ;;  %v7301_v58 = vld [vmem:[#allocation7 + $0x1c4] ss:$8 sps:$4 sm:$0xff]  }
 0x40b   :  { %6893 = vmatpush3.bf16.msra.mxu0 %v7205_v53  ;;  %v6841_v53 = vpop.f32.mrb[14].mxu1 }
 0x40c   :  { %6894 = vmatprep.subr.bf16.mxu0 %v7207_v17  ;;  %v7304_v53 = vld [vmem:[#allocation7 + $0x1d4] ss:$8 sps:$4 sm:$0xff]  }
 0x40d   :  { %6885 = vmatpush3.bf16.msra.mxu1 %v3297_v60  ;;  %v7244_v60 = vld [vmem:[#allocation7 + $0x34] ss:$8 sps:$4 sm:$0xff]  }
 0x40e   :  { %6902 = vmatprep.subr.bf16.mxu1 %v7208_v49 }
 0x40f   :  { %6895 = vmatpush3.bf16.msra.mxu0 %v7207_v17  ;;  %v2980_v17 = vpop.f32.mrb[15].mxu1 }
 0x410   :  { %6887 = vmatmul.mubr.msk.bf16.vlgmr.msra.gmra.mrb[20].mxu1 %vm2701_vm5, %v7737_v8  ;;  %7117 = vmatprep.subr.msk.bf16.mxu0 %vm2704_vm0, %v7209_v40  ;;  %v7242_v40 = vld [vmem:[#allocation7 + $0x30] ss:$8 sps:$4 sm:$0xff]  }
 0x411   :  { %6903 = vmatpush3.bf16.msra.mxu1 %v7208_v49  ;;  %6910 = vmatprep.mubr.msk.bf16.mxu1 %vm2701_vm5, %v7737_v8  ;;  %v8941_v49 = vadd.f32 %v2980_v17, %v2909_v43  ;;  %v7299_v43 = vld [vmem:[#allocation7 + $0x1c0] ss:$8 sps:$4 sm:$0xff]   ;;  %v7307_v17 = vld [vmem:[#allocation7 + $0x1e4] ss:$8 sps:$4 sm:$0xff]  }
 0x412   :  { %6904 = vmatprep.subr.bf16.mxu1 %v7210_v48 }
 0x413   :  { %6897 = vmatpush3.bf16.msra.mxu0 %v3380_v6  ;;  %v7245_v6 = vld [vmem:[#allocation7 + $0x40] ss:$8 sps:$4 sm:$0xff]  }
 0x414   :  { %3656 = vmatprep.subr.bf16.mxu0 %v7215_v20  ;;  %v7250_v20 = vld [vmem:[#allocation7 + $0x54] ss:$8 sps:$4 sm:$0xff]  }
 0x415   :  { %6905 = vmatpush3.bf16.msra.mxu1 %v7210_v48  ;;  %v7247_v48 = vld [vmem:[#allocation7 + $0x44] ss:$8 sps:$4 sm:$0xff]  }
 0x416   :  { %6899 = vmatmul.mubr.msk.bf16.vlgmr.msra.gmra.mrb[232].mxu0 %vm2701_vm5, %v7737_v8  ;;  %6906 = vmatprep.subr.bf16.mxu1 %v7211_v16 }
 0x417   :  { %3657 = vmatpush1.bf16.msra.mxu0 %v7213_v37  ;;  %3688 = vmatprep.mubr.bf16.mxu0 %v7613_v7  ;;  %v7248_v37 = vld [vmem:[#allocation7 + $0x50] ss:$8 sps:$4 sm:$0xff]  }
 0x418   :  { %3658 = vmatprep.subr.bf16.mxu0 %v7218_v32 }
 0x419   :  { %6907 = vmatpush3.bf16.msra.mxu1 %v7211_v16  ;;  %v3566_v16 = vld [vmem:[#allocation7 + $0x60] sm:$0x33] }
 0x41a   :  { %7118 = vmatprep.subr.msk.bf16.mxu1 %vm2704_vm0, %v7212_v5  ;;  %v5837_v32 = vcombine.high %v3566_v16, %v3566_v16  ;;  %v5836_v5 = vcombine.low %v3566_v16, %v3566_v16 }
 0x41b   :  { %3659 = vmatpush1.bf16.msra.mxu0 %v7216_v15 }
 0x41c   :  { %3660 = vmatprep.subr.bf16.mxu0 %v7221_v38  ;;  %v3773_v15 = vsel %vm3649_vm1, %v5836_v5, 0  ;;  %v7255_v38 = vld [vmem:[#allocation7 + $0xd4] ss:$8 sps:$4 sm:$0xff]   ;;  %v7313_v5 = vld [vmem:[#allocation7 + $0x208] ss:$8 sps:$4 sm:$0xff]  }
 0x41d   :  { %6909 = vmatpush3.bf16.msra.mxu1 %v3463_v13  ;;  %v7253_v13 = vld [vmem:[#allocation7 + $0xd0] ss:$8 sps:$4 sm:$0xff]  }
 0x41f   :  { %3661 = vmatpush1.bf16.msra.mxu0 %v7219_v42  ;;  %v7258_v42 = vld [vmem:[#allocation7 + $0xe4] ss:$8 sps:$4 sm:$0xff]  }
 0x420   :  { %6911 = vmatmul.mubr.msk.bf16.vlgmr.msra.gmra.mrb[24].mxu1 %vm2701_vm5, %v7737_v8  ;;  %3662 = vmatprep.subr.bf16.mxu0 %v7224_v56  ;;  %v7256_v56 = vld [vmem:[#allocation7 + $0xe0] ss:$8 sps:$4 sm:$0xff]  }
 0x423   :  { %3663 = vmatpush1.bf16.msra.mxu0 %v7222_v26  ;;  %v7261_v26 = vld [vmem:[#allocation7 + $0xf4] ss:$8 sps:$4 sm:$0xff]  }
 0x424   :  { %3664 = vmatprep.subr.bf16.mxu0 %v7227_v62  ;;  %v7259_v62 = vld [vmem:[#allocation7 + $0xf0] ss:$8 sps:$4 sm:$0xff]  }
 0x427   :  { %3665 = vmatpush1.bf16.msra.mxu0 %v7225_v61  ;;  %v7262_v61 = vld [vmem:[#allocation7 + $0x100] ss:$8 sps:$4 sm:$0xff]  }
 0x428   :  { %3666 = vmatprep.subr.bf16.mxu0 %v7230_v51  ;;  %v7265_v51 = vld [vmem:[#allocation7 + $0x110] ss:$8 sps:$4 sm:$0xff]  }
 0x42b   :  { %3667 = vmatpush1.bf16.msra.mxu0 %v7228_v50  ;;  %v7278_v50 = vld [vmem:[#allocation7 + $0x14c] ss:$8 sps:$4 sm:$0xff]  }
 0x42c   :  { %5821 = vmatprep.subr.msk.bf16.mxu0 %vm3649_vm1, %v5820_v31  ;;  %v7281_v31 = vld [vmem:[#allocation7 + $0x15c] ss:$8 sps:$4 sm:$0xff]  }
 0x42f   :  { %3669 = vmatpush1.bf16.msra.mxu0 %v3651_v28  ;;  %v7282_v28 = vld [vmem:[#allocation7 + $0x168] ss:$8 sps:$4 sm:$0xff]  }
 0x430   :  { %3778 = vmatprep.subr.bf16.mxu0 %v7235_v46  ;;  %v7287_v46 = vld [vmem:[#allocation7 + $0x17c] ss:$8 sps:$4 sm:$0xff]  }
 0x432   :  { %5822 = vmatmul.mubr.msk.bf16.vlgmr.msra.gmra.mrb[236].mxu0 %vm3646_vm2, %v7737_v8 }
 0x433   :  { %3779 = vmatpush1.bf16.msra.mxu0 %v7233_v52  ;;  %3698 = vmatprep.mubr.bf16.mxu0 %v7613_v7  ;;  %v7285_v52 = vld [vmem:[#allocation7 + $0x178] ss:$8 sps:$4 sm:$0xff]  }
 0x434   :  { %3780 = vmatprep.subr.bf16.mxu0 %v7238_v9  ;;  %v7290_v9 = vld [vmem:[#allocation7 + $0x18c] ss:$8 sps:$4 sm:$0xff]  }
 0x437   :  { %3781 = vmatpush1.bf16.msra.mxu0 %v7236_v19  ;;  %v7288_v19 = vld [vmem:[#allocation7 + $0x188] ss:$8 sps:$4 sm:$0xff]  }
 0x438   :  { %3782 = vmatprep.subr.bf16.mxu0 %v7241_v41  ;;  %v4051_v41 = vsel %vm3649_vm1, %v5870_v35, 0 }
 0x43a   :  { %5823 = vmatmul.mubr.msk.bf16.gmra.mrb[240].mxu0 %vm3646_vm2, %v7737_v8 }
 0x43b   :  { %3783 = vmatpush1.bf16.msra.mxu0 %v7239_v18  ;;  %3810 = vmatprep.mubr.bf16.mxu0 %v7613_v7  ;;  %v7302_v18 = vld [vmem:[#allocation7 + $0x1d0] ss:$8 sps:$4 sm:$0xff]  }
 0x43c   :  { %3784 = vmatprep.subr.bf16.mxu0 %v7244_v60  ;;  %v7305_v60 = vld [vmem:[#allocation7 + $0x1e0] ss:$8 sps:$4 sm:$0xff]  }
 0x43f   :  { %3785 = vmatpush1.bf16.msra.mxu0 %v7242_v40  ;;  %v7310_v40 = vld [vmem:[#allocation7 + $0x1f4] ss:$8 sps:$4 sm:$0xff]  }
 0x440   :  { %3786 = vmatprep.subr.bf16.mxu0 %v7247_v48  ;;  %v4126_v48 = vld [vmem:[#allocation7 + $0x200] sm:$0x33] }
 0x441   :  { %v5888_v16 = vcombine.low %v4126_v48, %v4126_v48 }
 0x443   :  { %3787 = vmatpush1.bf16.msra.mxu0 %v7245_v6  ;;  %v7308_v6 = vld [vmem:[#allocation7 + $0x1f0] ss:$8 sps:$4 sm:$0xff]  }
 0x444   :  { %3788 = vmatprep.subr.bf16.mxu0 %v7250_v20  ;;  %v5889_v20 = vcombine.high %v4126_v48, %v4126_v48 }
 0x447   :  { %3789 = vmatpush1.bf16.msra.mxu0 %v7248_v37  ;;  %v4199_v37 = vsel %vm3649_vm1, %v5888_v16, 0  ;;  %v3518_v16 = vsub.s32 6, %v8527_v21 }
 0x448   :  { %5838 = vmatprep.subr.msk.bf16.mxu0 %vm3649_vm1, %v5837_v32  ;;  %v7315_v32 = vld [vmem:[#allocation7 + $0x20c] ss:$8 sps:$4 sm:$0xff]  }
 0x44b   :  { %3791 = vmatpush1.bf16.msra.mxu0 %v3773_v15  ;;  %v7318_v15 = vld [vmem:[#allocation7 + $0x21c] ss:$8 sps:$4 sm:$0xff]  }
 0x44c   :  { %3914 = vmatprep.subr.bf16.mxu0 %v7255_v38  ;;  %v7316_v38 = vld [vmem:[#allocation7 + $0x218] ss:$8 sps:$4 sm:$0xff]  }
 0x44e   :  { %5839 = vmatmul.mubr.msk.bf16.vlgmr.msra.gmra.mrb[236].mxu0 %vm3646_vm2, %v7737_v8 }
 0x44f   :  { %3915 = vmatpush1.bf16.msra.mxu0 %v7253_v13  ;;  %3820 = vmatprep.mubr.bf16.mxu0 %v7613_v7  ;;  %v7321_v13 = vld [vmem:[#allocation7 + $0x22c] ss:$8 sps:$4 sm:$0xff]  }
 0x450   :  { %3916 = vmatprep.subr.bf16.mxu0 %v7258_v42  ;;  %v7319_v42 = vld [vmem:[#allocation7 + $0x228] ss:$8 sps:$4 sm:$0xff]  }
 0x453   :  { %3917 = vmatpush1.bf16.msra.mxu0 %v7256_v56  ;;  %v7324_v56 = vld [vmem:[#allocation7 + $0x23c] ss:$8 sps:$4 sm:$0xff]  }
 0x454   :  { %3918 = vmatprep.subr.bf16.mxu0 %v7261_v26  ;;  %v7322_v26 = vld [vmem:[#allocation7 + $0x238] ss:$8 sps:$4 sm:$0xff]  }
 0x456   :  { %5840 = vmatmul.mubr.msk.bf16.gmra.mrb[244].mxu0 %vm3646_vm2, %v7737_v8 }
 0x457   :  { %3919 = vmatpush1.bf16.msra.mxu0 %v7259_v62  ;;  %3946 = vmatprep.mubr.bf16.mxu0 %v7613_v7  ;;  %v7327_v62 = vld [vmem:[#allocation7 + $0x24c] ss:$8 sps:$4 sm:$0xff]  }
 0x458   :  { %3920 = vmatprep.subr.bf16.mxu0 %v7264_v3  ;;  %v7325_v3 = vld [vmem:[#allocation7 + $0x248] ss:$8 sps:$4 sm:$0xff]  }
 0x45b   :  { %3921 = vmatpush1.bf16.msra.mxu0 %v7262_v61  ;;  %v7330_v61 = vld [vmem:[#allocation7 + $0x25c] ss:$8 sps:$4 sm:$0xff]  }
 0x45c   :  { %3922 = vmatprep.subr.bf16.mxu0 %v7267_v57  ;;  %v4274_v57 = vld [vmem:[#allocation7 + $0x268] sm:$0x33] }
 0x45d   :  { %v5906_v10 = vcombine.low %v4274_v57, %v4274_v57 }
 0x45f   :  { %3923 = vmatpush1.bf16.msra.mxu0 %v7265_v51  ;;  %v7328_v51 = vld [vmem:[#allocation7 + $0x258] ss:$8 sps:$4 sm:$0xff]  }
 0x460   :  { %3924 = vmatprep.subr.bf16.mxu0 %v7270_v2  ;;  %v5907_v2 = vcombine.high %v4274_v57, %v4274_v57 }
 0x463   :  { %3925 = vmatpush1.bf16.msra.mxu0 %v7268_v4  ;;  %v4345_v4 = vsel %vm3649_vm1, %v5906_v10, 0 }
 0x464   :  { %5855 = vmatprep.subr.msk.bf16.mxu0 %vm3649_vm1, %v5854_v22  ;;  %v7335_v22 = vld [vmem:[#allocation7 + $0x274] ss:$8 sps:$4 sm:$0xff]  }
 0x467   :  { %3927 = vmatpush1.bf16.msra.mxu0 %v3909_v34 }
 0x468   :  { %4056 = vmatprep.subr.bf16.mxu0 %v7275_v1 }
 0x46a   :  { %5856 = vmatmul.mubr.msk.bf16.vlgmr.msra.gmra.mrb[236].mxu0 %vm3646_vm2, %v7737_v8 }
 0x46b   :  { %4057 = vmatpush1.bf16.msra.mxu0 %v7273_v11  ;;  %3956 = vmatprep.mubr.bf16.mxu0 %v7613_v7 }
 0x46c   :  { %4058 = vmatprep.subr.bf16.mxu0 %v7278_v50 }
 0x46f   :  { %4059 = vmatpush1.bf16.msra.mxu0 %v7276_v25 }
 0x470   :  { %4060 = vmatprep.subr.bf16.mxu0 %v7281_v31 }
 0x472   :  { %5857 = vmatmul.mubr.msk.bf16.gmra.mrb[248].mxu0 %vm3646_vm2, %v7737_v8 }
 0x473   :  { %4061 = vmatpush1.bf16.msra.mxu0 %v7279_v23  ;;  %4088 = vmatprep.mubr.bf16.mxu0 %v7613_v7 }
 0x474   :  { %4062 = vmatprep.subr.bf16.mxu0 %v7284_v54 }
 0x477   :  { %4063 = vmatpush1.bf16.msra.mxu0 %v7282_v28 }
 0x478   :  { %4064 = vmatprep.subr.bf16.mxu0 %v7287_v46 }
 0x47b   :  { %4065 = vmatpush1.bf16.msra.mxu0 %v7285_v52 }
 0x47c   :  { %4066 = vmatprep.subr.bf16.mxu0 %v7290_v9 }
 0x47f   :  { %4067 = vmatpush1.bf16.msra.mxu0 %v7288_v19 }
 0x480   :  { %5872 = vmatprep.subr.msk.bf16.mxu0 %vm3649_vm1, %v5871_v27 }
 0x483   :  { %4069 = vmatpush1.bf16.msra.mxu0 %v4051_v41 }
 0x484   :  { %4204 = vmatprep.subr.bf16.mxu0 %v7295_v47 }
 0x486   :  { %5873 = vmatmul.mubr.msk.bf16.vlgmr.msra.gmra.mrb[236].mxu0 %vm3646_vm2, %v7737_v8 }
 0x487   :  { %4098 = vmatprep.mubr.bf16.mxu0 %v7613_v7  ;;  %4205 = vmatpush1.bf16.msra.mxu0 %v7293_v45 }
 0x488   :  { %4206 = vmatprep.subr.bf16.mxu0 %v7298_v39 }
 0x48b   :  { %4207 = vmatpush1.bf16.msra.mxu0 %v7296_v63 }
 0x48c   :  { %4208 = vmatprep.subr.bf16.mxu0 %v7301_v58 }
 0x48e   :  { %5874 = vmatmul.mubr.msk.bf16.gmra.mrb[252].mxu0 %vm3646_vm2, %v7737_v8 }
 0x48f   :  { %4209 = vmatpush1.bf16.msra.mxu0 %v7299_v43  ;;  %4236 = vmatprep.mubr.bf16.mxu0 %v7613_v7 }
 0x490   :  { %4210 = vmatprep.subr.bf16.mxu0 %v7304_v53 }
 0x493   :  { %4211 = vmatpush1.bf16.msra.mxu0 %v7302_v18 }
 0x494   :  { %4212 = vmatprep.subr.bf16.mxu0 %v7307_v17 }
 0x497   :  { %4213 = vmatpush1.bf16.msra.mxu0 %v7305_v60 }
 0x498   :  { %4214 = vmatprep.subr.bf16.mxu0 %v7310_v40 }
 0x49b   :  { %4215 = vmatpush1.bf16.msra.mxu0 %v7308_v6 }
 0x49c   :  { %5890 = vmatprep.subr.msk.bf16.mxu0 %vm3649_vm1, %v5889_v20 }
 0x49f   :  { %4217 = vmatpush1.bf16.msra.mxu0 %v4199_v37  ;;  %v3519_v37 = vrot.slane %v8892_v59, %v3518_v16  ;;  %v7350_v16 = vld [vmem:[#allocation7 + $0x2c4] ss:$8 sps:$4 sm:$0xff]  }
 0x4a0   :  { %4350 = vmatprep.subr.bf16.mxu0 %v7315_v32 }
 0x4a2   :  { %5891 = vmatmul.mubr.msk.bf16.vlgmr.msra.gmra.mrb[236].mxu0 %vm3646_vm2, %v7737_v8 }
 0x4a3   :  { %4351 = vmatpush1.bf16.msra.mxu0 %v7313_v5  ;;  %4246 = vmatprep.mubr.bf16.mxu0 %v7613_v7 }
 0x4a4   :  { %4352 = vmatprep.subr.bf16.mxu0 %v7318_v15 }
 0x4a7   :  { %4353 = vmatpush1.bf16.msra.mxu0 %v7316_v38 }
 0x4a8   :  { %4354 = vmatprep.subr.bf16.mxu0 %v7321_v13 }
 0x4ab   :  { %4355 = vmatpush1.bf16.msra.mxu0 %v7319_v42 }
 0x4ac   :  { %4356 = vmatprep.subr.bf16.mxu0 %v7324_v56 }
 0x4af   :  { %4357 = vmatpush1.bf16.msra.mxu0 %v7322_v26 }
 0x4b0   :  { %4358 = vmatprep.subr.bf16.mxu0 %v7327_v62 }
 0x4b3   :  { %4359 = vmatpush1.bf16.msra.mxu0 %v7325_v3 }
 0x4b4   :  { %4360 = vmatprep.subr.bf16.mxu0 %v7330_v61 }
 0x4b7   :  { %4361 = vmatpush1.bf16.msra.mxu0 %v7328_v51 }
 0x4b8   :  { %5908 = vmatprep.subr.msk.bf16.mxu0 %vm3649_vm1, %v5907_v2 }
 0x4bb   :  { %4363 = vmatpush1.bf16.msra.mxu0 %v4345_v4 }
 0x4bc   :  { %4496 = vmatprep.subr.bf16.mxu0 %v7335_v22 }
 0x4c9   :  { %v6852_v12 = vpop.f32.mrb[224].mxu0 }
 0x4ca   :  { %v3082_v34 = vadd.f32 %v6852_v12, %v8937_v33  ;;  %v3066_v1 = vpop.f32.mrb[225].mxu0 }
 0x4cb   :  { %v3080_v11 = vadd.f32 %v3066_v1, %v8939_v30  ;;  %v6853_v50 = vpop.f32.mrb[226].mxu0 }
 0x4cc   :  { %v3069_v25 = vpop.f32.mrb[227].mxu0 }
 0x4cd   :  { %v3081_v31 = vadd.f32 %v3069_v25, %v8941_v49 }
 0x4d3   :  { %v6864_v23 = vpop.f32.mrb[16].mxu1 }
 0x4d4   :  { %v3175_v54 = vadd.f32 %v6864_v23, %v3082_v34  ;;  %v3159_v28 = vpop.f32.mrb[17].mxu1  ;;  %v8986_v23 = vld [vmem:[%s9147_s5 + $0x10] sm:$0x1f] }
 0x4d5   :  { %v3173_v46 = vadd.f32 %v3159_v28, %v3080_v11  ;;  %v6865_v52 = vpop.f32.mrb[18].mxu1  ;;  %v3545_v11 = vsub.s32 7, %v8527_v21 }
 0x4d6   :  { %v3162_v9 = vpop.f32.mrb[19].mxu1 }
 0x4d7   :  { %v3174_v24 = vadd.f32 %v3162_v9, %v3081_v31 }
 0x4d9   :  { %v6876_v19 = vpop.f32.mrb[228].mxu0 }
 0x4da   :  { %v3262_v27 = vadd.f32 %v6876_v19, %v3175_v54  ;;  %v3246_v35 = vpop.f32.mrb[229].mxu0 }
 0x4db   :  { %v3260_v41 = vadd.f32 %v3246_v35, %v3173_v46  ;;  %v6877_v47 = vpop.f32.mrb[230].mxu0  ;;  %v3546_v46 = vrot.slane %v8892_v59, %v3545_v11 }
 0x4dc   :  { %v3249_v33 = vpop.f32.mrb[231].mxu0 }
 0x4dd   :  { %v3261_v45 = vadd.f32 %v3249_v33, %v3174_v24 }
 0x4e3   :  { %v6888_v39 = vpop.f32.mrb[20].mxu1 }
 0x4e4   :  { %v3349_v30 = vadd.f32 %v6888_v39, %v3262_v27  ;;  %v3333_v63 = vpop.f32.mrb[21].mxu1  ;;  %v3551_v27 = vrot.slane %v8986_v23, %v1581_v55  ;;  %v7333_v39 = vld [vmem:[#allocation7 + $0x270] ss:$8 sps:$4 sm:$0xff]   ;;  %v7341_v55 = vld [vmem:[#allocation7 + $0x294] ss:$8 sps:$4 sm:$0xff]  }
 0x4e5   :  { %v3347_v58 = vadd.f32 %v3333_v63, %v3260_v41  ;;  %v6889_v43 = vpop.f32.mrb[22].mxu1  ;;  %v7336_v63 = vld [vmem:[#allocation7 + $0x280] ss:$8 sps:$4 sm:$0xff]  }
 0x4e6   :  { %v3336_v49 = vpop.f32.mrb[23].mxu1  ;;  %v7344_v43 = vld [vmem:[#allocation7 + $0x2a4] ss:$8 sps:$4 sm:$0xff]  }
 0x4e7   :  { %v3348_v53 = vadd.f32 %v3336_v49, %v3261_v45  ;;  %v7342_v49 = vld [vmem:[#allocation7 + $0x2a0] ss:$8 sps:$4 sm:$0xff]  }
 0x4e9   :  { %v6900_v18 = vpop.f32.mrb[232].mxu0 }
 0x4ea   :  { %v3432_v17 = vadd.f32 %v6900_v18, %v3349_v30  ;;  %v3416_v60 = vpop.f32.mrb[233].mxu0  ;;  %v7338_v30 = vld [vmem:[#allocation7 + $0x284] ss:$8 sps:$4 sm:$0xff]  }
 0x4eb   :  { %v3430_v40 = vadd.f32 %v3416_v60, %v3347_v58  ;;  %v6901_v48 = vpop.f32.mrb[234].mxu0  ;;  %v7339_v58 = vld [vmem:[#allocation7 + $0x290] ss:$8 sps:$4 sm:$0xff]  }
 0x4ec   :  { %v3419_v6 = vpop.f32.mrb[235].mxu0 }
 0x4ed   :  { %v3431_v20 = vadd.f32 %v3419_v6, %v3348_v53  ;;  %v7347_v53 = vld [vmem:[#allocation7 + $0x2b4] ss:$8 sps:$4 sm:$0xff]   ;;  %v7345_v6 = vld [vmem:[#allocation7 + $0x2b0] ss:$8 sps:$4 sm:$0xff]  }
 0x4f3   :  { %v6912_v32 = vpop.f32.mrb[24].mxu1 }
 0x4f4   :  { %v3515_v5 = vadd.f32 %v6912_v32, %v3432_v17  ;;  %v3499_v15 = vpop.f32.mrb[25].mxu1  ;;  %v7348_v32 = vld [vmem:[#allocation7 + $0x2c0] ss:$8 sps:$4 sm:$0xff]  }
 0x4f5   :  { %v3513_v38 = vadd.f32 %v3499_v15, %v3430_v40  ;;  %v6913_v13 = vpop.f32.mrb[26].mxu1 }
 0x4f6   :  { %v3522_v42 = vadd.f32 %v3519_v37, %v3515_v5  ;;  %v3502_v56 = vpop.f32.mrb[27].mxu1  ;;  %v7355_v13 = vld [vmem:[#allocation7 + $0x2dc] ss:$8 sps:$4 sm:$0xff]  }
 0x4f7   :  { %v3520_v26 = vadd.f32 %v3519_v37, %v3513_v38  ;;  %v3514_v62 = vadd.f32 %v3502_v56, %v3431_v20 }
 0x4f8   :  { %v3528_v3 = vmin.f32 %v3522_v42, 0.0  ;;  %vm3525_vm3 = vcmp.gt.f32.partialorder %v3522_v42, 0.0 }
 0x4f9   :  { %v3526_v61 = vmin.f32 %v3520_v26, 0.0  ;;  %v3521_v57 = vadd.f32 %v3519_v37, %v3514_v62  ;;  %vm3523_vm6 = vcmp.gt.f32.partialorder %v3520_v26, 0.0  ;;  %v4420_v37 = vld [vmem:[#allocation7 + $0x2d0] sm:$0x33] }
 0x4fa   :  { %v3533_v51 = vmul.f32 1.442695, %v3528_v3  ;;  %v5925_v5 = vcombine.high %v4420_v37, %v4420_v37  ;;  %v5924_v15 = vcombine.low %v4420_v37, %v4420_v37  ;;  %v7356_v62 = vld [vmem:[#allocation7 + $0x2e8] ss:$8 sps:$4 sm:$0xff]   ;;  %v7361_v3 = vld [vmem:[#allocation7 + $0x2fc] ss:$8 sps:$4 sm:$0xff]  }
 0x4fb   :  { %v3529_v2 = vmul.f32 1.442695, %v3526_v61  ;;  %v3527_v10 = vmin.f32 %v3521_v57, 0.0  ;;  %vm3524_vm4 = vcmp.gt.f32.partialorder %v3521_v57, 0.0  ;;  %v7359_v61 = vld [vmem:[#allocation7 + $0x2f8] ss:$8 sps:$4 sm:$0xff]  }
 0x4fc   :  { %7461 = vpow2.f32 %v3533_v51  ;;  %v4491_v38 = vsel %vm3649_vm1, %v5924_v15, 0  ;;  %v7362_v51 = vld [vmem:[#allocation7 + $0x308] ss:$8 sps:$4 sm:$0xff]   ;;  %v7407_v15 = vld [vmem:[#allocation7 + $0x3ec] ss:$8 sps:$4 sm:$0xff]  }
 0x4fd   :  { %7463 = vpow2.f32 %v3529_v2  ;;  %v3531_v4 = vmul.f32 1.442695, %v3527_v10  ;;  %v7367_v2 = vld [vmem:[#allocation7 + $0x31c] ss:$8 sps:$4 sm:$0xff]   ;;  %v7399_v37 = vld [vmem:[#allocation7 + $0x3c8] ss:$8 sps:$4 sm:$0xff]  }
 0x4ff   :  { %7465 = vpow2.f32 %v3531_v4 }
 0x506   :  { %v7462_v22 = vpop.eup %7461 }
 0x507   :  { %v7464_v12 = vpop.eup %7463  ;;  %v5806_v34 = vadd.f32 -1.0, %v7462_v22 }
 0x508   :  { %v5804_v50 = vadd.f32 -1.0, %v7464_v12 }
 0x509   :  { %v7466_v1 = vpop.eup %7465  ;;  %v3540_v31 = vsel %vm3525_vm3, %v3522_v42, %v5806_v34  ;;  %v7353_v42 = vld [vmem:[#allocation7 + $0x2d8] ss:$8 sps:$4 sm:$0xff]  }
 0x50a   :  { %v5805_v25 = vadd.f32 -1.0, %v7466_v1  ;;  %v3538_v9 = vsel %vm3523_vm6, %v3520_v26, %v5804_v50  ;;  %v7358_v26 = vld [vmem:[#allocation7 + $0x2ec] ss:$8 sps:$4 sm:$0xff]   ;;  %v7365_v1 = vld [vmem:[#allocation7 + $0x318] ss:$8 sps:$4 sm:$0xff]  }
 0x50b   :  { %v7370_v50 = vld [vmem:[#allocation7 + $0x32c] ss:$8 sps:$4 sm:$0xff]  }
 0x50c   :  { %v3539_v54 = vsel %vm3524_vm4, %v3521_v57, %v5805_v25  ;;  %v7364_v57 = vld [vmem:[#allocation7 + $0x30c] ss:$8 sps:$4 sm:$0xff]   ;;  %v4566_v25 = vld [vmem:[#allocation7 + $0x338] sm:$0x33] }
 0x50d   :  { %v3541_v28 = vmax.f32 %v3539_v54, %v3540_v31  ;;  %v3700_v52 = vpop.f32.mrb[240].mxu0  ;;  %v7368_v31 = vld [vmem:[#allocation7 + $0x328] ss:$8 sps:$4 sm:$0xff]   ;;  %v5942_v54 = vcombine.high %v4566_v25, %v4566_v25 }
 0x50e   :  { %v3702_v24 = vpop.f32.mrb[241].mxu0 }
 0x50f   :  { %v3542_v19 = vmax.f32 %v3538_v9, %v3541_v28  ;;  %v3704_v35 = vpop.f32.mrb[242].mxu0  ;;  %v5941_v28 = vcombine.low %v4566_v25, %v4566_v25  ;;  %v7373_v9 = vld [vmem:[#allocation7 + $0x340] ss:$8 sps:$4 sm:$0xff]   ;;  %v5062_v25 = vld [vmem:[#allocation8 + $0x48] sm:$0xff] }
 0x510   :  { %v3705_v41 = vpop.f32.mrb[243].mxu0  ;;  %v7379_v35 = vld [vmem:[#allocation7 + $0x360] ss:$8 sps:$4 sm:$0xff]  }
 0x511   :  { %v3547_v47 = vmul.f32 %v3546_v46, %v3542_v19  ;;  %v4633_v46 = vsel %vm3649_vm1, %v5941_v28, 0  ;;  %v7376_v19 = vld [vmem:[#allocation7 + $0x350] ss:$8 sps:$4 sm:$0xff]   ;;  %v7384_v41 = vld [vmem:[#allocation7 + $0x374] ss:$8 sps:$4 sm:$0xff]   ;;  %v5063_v28 = vld [vmem:[#allocation8 + $0x50] sm:$0xff] }
 0x513   :  { %v3552_v33 = vadd.f32 %v3551_v27, %v3547_v47  ;;  %v7381_v27 = vld [vmem:[#allocation7 + $0x364] ss:$8 sps:$4 sm:$0xff]   ;;  %v7382_v47 = vld [vmem:[#allocation7 + $0x370] ss:$8 sps:$4 sm:$0xff]  }
 0x515   :  { %v3553_v45 = vpack.c.bf16 %v3552_v33, %v3552_v33  ;;  %v7387_v33 = vld [vmem:[#allocation7 + $0x384] ss:$8 sps:$4 sm:$0xff]  }
 0x517   :  { %5892 = vmatmul.mubr.msk.bf16.gmra.mrb[0].mxu0 %vm3646_vm2, %v3553_v45  ;;  %v5893_v59 = vcombine.low %v7613_v7, %v3553_v45  ;;  %v5911_v56 = vcombine.low %v3553_v45, %v7613_v7 }
 0x518   :  { %4382 = vmatprep.mubr.bf16.mxu0 %v7613_v7 }
 0x51f   :  { %5909 = vmatmul.mubr.msk.bf16.vlgmr.msra.gmra.mrb[236].mxu0 %vm3646_vm2, %v5893_v59 }
 0x520   :  { %4497 = vmatpush1.bf16.msra.mxu0 %v7333_v39  ;;  %4392 = vmatprep.mubr.bf16.mxu0 %v7613_v7 }
 0x521   :  { %4498 = vmatprep.subr.bf16.mxu0 %v7338_v30 }
 0x524   :  { %4499 = vmatpush1.bf16.msra.mxu0 %v7336_v63 }
 0x525   :  { %4500 = vmatprep.subr.bf16.mxu0 %v7341_v55  ;;  %v7385_v55 = vld [vmem:[#allocation7 + $0x380] ss:$8 sps:$4 sm:$0xff]  }
 0x527   :  { %5910 = vmatmul.mubr.msk.bf16.gmra.mrb[4].mxu0 %vm3646_vm2, %v7737_v8 }
 0x528   :  { %4501 = vmatpush1.bf16.msra.mxu0 %v7339_v58  ;;  %4528 = vmatprep.mubr.bf16.mxu0 %v7613_v7 }
 0x529   :  { %4502 = vmatprep.subr.bf16.mxu0 %v7344_v43  ;;  %v3822_v18 = vpop.f32.mrb[244].mxu0  ;;  %v7390_v43 = vld [vmem:[#allocation7 + $0x394] ss:$8 sps:$4 sm:$0xff]  }
 0x52a   :  { %v3823_v17 = vadd.f32 %v3822_v18, %v3700_v52  ;;  %v3824_v60 = vpop.f32.mrb[245].mxu0  ;;  %v7375_v52 = vld [vmem:[#allocation7 + $0x344] ss:$8 sps:$4 sm:$0xff]  }
 0x52b   :  { %v3825_v40 = vadd.f32 %v3824_v60, %v3702_v24  ;;  %v3826_v48 = vpop.f32.mrb[246].mxu0  ;;  %v7378_v24 = vld [vmem:[#allocation7 + $0x354] ss:$8 sps:$4 sm:$0xff]  }
 0x52c   :  { %4503 = vmatpush1.bf16.msra.mxu0 %v7342_v49  ;;  %v3827_v20 = vpop.f32.mrb[247].mxu0  ;;  %v4708_v49 = vld [vmem:[#allocation7 + $0x3a0] sm:$0x33]  ;;  %v7393_v48 = vld [vmem:[#allocation7 + $0x3a8] ss:$8 sps:$4 sm:$0xff]  }
 0x52d   :  { %4504 = vmatprep.subr.bf16.mxu0 %v7347_v53  ;;  %v7388_v53 = vld [vmem:[#allocation7 + $0x390] ss:$8 sps:$4 sm:$0xff]   ;;  %v5959_v18 = vcombine.high %v4708_v49, %v4708_v49 }
 0x52e   :  { %v7396_v20 = vld [vmem:[#allocation7 + $0x3b8] ss:$8 sps:$4 sm:$0xff]  }
 0x530   :  { %4505 = vmatpush1.bf16.msra.mxu0 %v7345_v6  ;;  %v7398_v6 = vld [vmem:[#allocation7 + $0x3bc] ss:$8 sps:$4 sm:$0xff]  }
 0x531   :  { %4506 = vmatprep.subr.bf16.mxu0 %v7350_v16  ;;  %v7401_v16 = vld [vmem:[#allocation7 + $0x3cc] ss:$8 sps:$4 sm:$0xff]  }
 0x534   :  { %4507 = vmatpush1.bf16.msra.mxu0 %v7348_v32  ;;  %v7404_v32 = vld [vmem:[#allocation7 + $0x3dc] ss:$8 sps:$4 sm:$0xff]  }
 0x535   :  { %5926 = vmatprep.subr.msk.bf16.mxu0 %vm3649_vm1, %v5925_v5  ;;  %v7402_v5 = vld [vmem:[#allocation7 + $0x3d8] ss:$8 sps:$4 sm:$0xff]  }
 0x538   :  { %4509 = vmatpush1.bf16.msra.mxu0 %v4491_v38  ;;  %v7405_v38 = vld [vmem:[#allocation7 + $0x3e8] ss:$8 sps:$4 sm:$0xff]  }
 0x539   :  { %4638 = vmatprep.subr.bf16.mxu0 %v7355_v13  ;;  %v7410_v13 = vld [vmem:[#allocation7 + $0x3fc] ss:$8 sps:$4 sm:$0xff]  }
 0x53b   :  { %5927 = vmatmul.mubr.msk.bf16.vlgmr.msra.gmra.mrb[236].mxu0 %vm3646_vm2, %v5911_v56  ;;  %v7408_v56 = vld [vmem:[#allocation7 + $0x3f8] ss:$8 sps:$4 sm:$0xff]  }
 0x53c   :  { %4639 = vmatpush1.bf16.msra.mxu0 %v7353_v42  ;;  %4538 = vmatprep.mubr.bf16.mxu0 %v7613_v7  ;;  %v4850_v42 = vld [vmem:[#allocation7 + $0x408] sm:$0x33] }
 0x53d   :  { %4640 = vmatprep.subr.bf16.mxu0 %v7358_v26  ;;  %v5976_v26 = vcombine.high %v4850_v42, %v4850_v42 }
 0x540   :  { %4641 = vmatpush1.bf16.msra.mxu0 %v7356_v62  ;;  %v5975_v62 = vcombine.low %v4850_v42, %v4850_v42 }
 0x541   :  { %4642 = vmatprep.subr.bf16.mxu0 %v7361_v3 }
 0x542   :  { %v4917_v3 = vsel %vm3649_vm1, %v5975_v62, 0 }
 0x543   :  { %5928 = vmatmul.mubr.msk.bf16.gmra.mrb[8].mxu0 %vm3646_vm2, %v7737_v8 }
 0x544   :  { %4643 = vmatpush1.bf16.msra.mxu0 %v7359_v61  ;;  %4670 = vmatprep.mubr.bf16.mxu0 %v7613_v7  ;;  %v5053_v61 = vld [vmem:[#allocation8] sm:$0xff] }
 0x545   :  { %4644 = vmatprep.subr.bf16.mxu0 %v7364_v57  ;;  %v3958_v10 = vpop.f32.mrb[248].mxu0  ;;  %v5054_v57 = vld [vmem:[#allocation8 + $0x8] sm:$0xff] }
 0x546   :  { %v3969_v4 = vadd.f32 %v3958_v10, %v3823_v17  ;;  %v3960_v22 = vpop.f32.mrb[249].mxu0  ;;  %v5958_v17 = vcombine.low %v4708_v49, %v4708_v49  ;;  %v5055_v10 = vld [vmem:[#allocation8 + $0x10] sm:$0xff]  ;;  %v5072_v49 = vld [vmem:[#allocation8 + $0x98] sm:$0xff] }
 0x547   :  { %v3970_v12 = vadd.f32 %v3960_v22, %v3825_v40  ;;  %v3962_v34 = vpop.f32.mrb[250].mxu0  ;;  %v7395_v40 = vld [vmem:[#allocation7 + $0x3ac] ss:$8 sps:$4 sm:$0xff]  }
 0x548   :  { %4645 = vmatpush1.bf16.msra.mxu0 %v7362_v51  ;;  %v3963_v11 = vpop.f32.mrb[251].mxu0  ;;  %v4775_v60 = vsel %vm3649_vm1, %v5958_v17, 0  ;;  %v7615_v51 = vmov 0.0|0.0   ;;  %v5058_v34 = vld [vmem:[#allocation8 + $0x28] sm:$0xff] }
 0x549   :  { %4646 = vmatprep.subr.bf16.mxu0 %v7367_v2  ;;  %6914 = vmatprep.subr.bf16.mxu1 %v7615_v51  ;;  %v6915_v2 = vpack.c.bf16 %v5054_v57, %v5053_v61 }
 0x54b   :  { %6916 = vmatpush1.bf16.msra.mxu1 %v6915_v2 }
 0x54c   :  { %4647 = vmatpush1.bf16.msra.mxu0 %v7365_v1  ;;  %6917 = vmatprep.subr.bf16.mxu1 %v7615_v51 }
 0x54d   :  { %4648 = vmatprep.subr.bf16.mxu0 %v7370_v50  ;;  %v5061_v50 = vld [vmem:[#allocation8 + $0x40] sm:$0xff] }
 0x550   :  { %4649 = vmatpush1.bf16.msra.mxu0 %v7368_v31  ;;  %v6927_v31 = vpack.c.bf16 %v5062_v25, %v5061_v50  ;;  %v4982_v50 = vrot.slane %v8986_v23, %v8569_v14 }
 0x551   :  { %5943 = vmatprep.subr.msk.bf16.mxu0 %vm3649_vm1, %v5942_v54 }
 0x554   :  { %4651 = vmatpush1.bf16.msra.mxu0 %v4633_v46  ;;  %v5064_v46 = vld [vmem:[#allocation8 + $0x58] sm:$0xff] }
 0x555   :  { %4780 = vmatprep.subr.bf16.mxu0 %v7375_v52 }
 0x557   :  { %5944 = vmatmul.mubr.msk.bf16.vlgmr.msra.gmra.mrb[236].mxu0 %vm3646_vm2, %v7737_v8 }
 0x558   :  { %4781 = vmatpush1.bf16.msra.mxu0 %v7373_v9  ;;  %4680 = vmatprep.mubr.bf16.mxu0 %v7613_v7 }
 0x559   :  { %4782 = vmatprep.subr.bf16.mxu0 %v7378_v24  ;;  %v6930_v24 = vpack.c.bf16 %v5064_v46, %v5063_v28 }
 0x55c   :  { %4783 = vmatpush1.bf16.msra.mxu0 %v7376_v19 }
 0x55d   :  { %4784 = vmatprep.subr.bf16.mxu0 %v7381_v27 }
 0x55f   :  { %5945 = vmatmul.mubr.msk.bf16.gmra.mrb[12].mxu0 %vm3646_vm2, %v7737_v8 }
 0x560   :  { %4785 = vmatpush1.bf16.msra.mxu0 %v7379_v35  ;;  %4812 = vmatprep.mubr.bf16.mxu0 %v7613_v7 }
 0x561   :  { %4786 = vmatprep.subr.bf16.mxu0 %v7384_v41  ;;  %v4100_v45 = vpop.f32.mrb[252].mxu0  ;;  %v5065_v41 = vld [vmem:[#allocation8 + $0x60] sm:$0xff] }
 0x562   :  { %v9016_v39 = vadd.f32 %v4100_v45, %v3969_v4  ;;  %v4102_v59 = vpop.f32.mrb[253].mxu0  ;;  %v5056_v4 = vld [vmem:[#allocation8 + $0x18] sm:$0xff]  ;;  %v5067_v45 = vld [vmem:[#allocation8 + $0x70] sm:$0xff] }
 0x563   :  { %v9018_v30 = vadd.f32 %v4102_v59, %v3970_v12  ;;  %v4104_v63 = vpop.f32.mrb[254].mxu0  ;;  %v6918_v22 = vpack.c.bf16 %v5056_v4, %v5055_v10  ;;  %v5057_v12 = vld [vmem:[#allocation8 + $0x20] sm:$0xff]  ;;  %v5068_v59 = vld [vmem:[#allocation8 + $0x78] sm:$0xff] }
 0x564   :  { %4787 = vmatpush1.bf16.msra.mxu0 %v7382_v47  ;;  %v4105_v58 = vpop.f32.mrb[255].mxu0  ;;  %v6921_v1 = vpack.c.bf16 %v5058_v34, %v5057_v12  ;;  %v5066_v47 = vld [vmem:[#allocation8 + $0x68] sm:$0xff]  ;;  %v6936_v63 = vpack.c.bf16 %v5068_v59, %v5067_v45 }
 0x565   :  { %4788 = vmatprep.subr.bf16.mxu0 %v7387_v33  ;;  %6919 = vmatpush1.bf16.msra.mxu1 %v6918_v22  ;;  %v6933_v33 = vpack.c.bf16 %v5066_v47, %v5065_v41 }
 0x566   :  { %6920 = vmatprep.subr.bf16.mxu1 %v7615_v51 }
 0x568   :  { %4789 = vmatpush1.bf16.msra.mxu0 %v7385_v55  ;;  %v5070_v55 = vld [vmem:[#allocation8 + $0x88] sm:$0xff] }
 0x569   :  { %4790 = vmatprep.subr.bf16.mxu0 %v7390_v43  ;;  %6922 = vmatpush1.bf16.msra.mxu1 %v6921_v1  ;;  %v5071_v43 = vld [vmem:[#allocation8 + $0x90] sm:$0xff] }
 0x56a   :  { %6923 = vmatprep.subr.bf16.mxu1 %v7615_v51  ;;  %v6942_v17 = vpack.c.bf16 %v5072_v49, %v5071_v43 }
 0x56c   :  { %4791 = vmatpush1.bf16.msra.mxu0 %v7388_v53 }
 0x56d   :  { %5960 = vmatprep.subr.msk.bf16.mxu0 %vm3649_vm1, %v5959_v18 }
 0x570   :  { %4793 = vmatpush1.bf16.msra.mxu0 %v4775_v60 }
 0x571   :  { %4922 = vmatprep.subr.bf16.mxu0 %v7395_v40 }
 0x573   :  { %5961 = vmatmul.mubr.msk.bf16.vlgmr.msra.gmra.mrb[236].mxu0 %vm3646_vm2, %v7737_v8 }
 0x574   :  { %4923 = vmatpush1.bf16.msra.mxu0 %v7393_v48  ;;  %4822 = vmatprep.mubr.bf16.mxu0 %v7613_v7 }
 0x575   :  { %4924 = vmatprep.subr.bf16.mxu0 %v7398_v6  ;;  %v5073_v6 = vld [vmem:[#allocation8 + $0xa0] sm:$0xff] }
 0x578   :  { %4925 = vmatpush1.bf16.msra.mxu0 %v7396_v20  ;;  %v5074_v20 = vld [vmem:[#allocation8 + $0xa8] sm:$0xff] }
 0x579   :  { %4926 = vmatprep.subr.bf16.mxu0 %v7401_v16  ;;  %v6945_v16 = vpack.c.bf16 %v5074_v20, %v5073_v6 }
 0x57b   :  { %5962 = vmatmul.mubr.msk.bf16.gmra.mrb[16].mxu0 %vm3646_vm2, %v7737_v8 }
 0x57c   :  { %4927 = vmatpush1.bf16.msra.mxu0 %v7399_v37  ;;  %4954 = vmatprep.mubr.bf16.mxu0 %v7613_v7  ;;  %v5075_v37 = vld [vmem:[#allocation8 + $0xb0] sm:$0xff] }
 0x57d   :  { %4928 = vmatprep.subr.bf16.mxu0 %v7404_v32  ;;  %v5076_v32 = vld [vmem:[#allocation8 + $0xb8] sm:$0xff] }
 0x580   :  { %4929 = vmatpush1.bf16.msra.mxu0 %v7402_v5  ;;  %v6948_v5 = vpack.c.bf16 %v5076_v32, %v5075_v37 }
 0x581   :  { %4930 = vmatprep.subr.bf16.mxu0 %v7407_v15  ;;  %v5077_v15 = vld [vmem:[#allocation8 + $0xc0] sm:$0xff] }
 0x584   :  { %4931 = vmatpush1.bf16.msra.mxu0 %v7405_v38 }
 0x585   :  { %4932 = vmatprep.subr.bf16.mxu0 %v7410_v13 }
 0x588   :  { %4933 = vmatpush1.bf16.msra.mxu0 %v7408_v56 }
 0x589   :  { %5977 = vmatprep.subr.msk.bf16.mxu0 %vm3649_vm1, %v5976_v26 }
 0x58c   :  { %4935 = vmatpush1.bf16.msra.mxu0 %v4917_v3 }
 0x58f   :  { %5978 = vmatmul.mubr.msk.bf16.vlgmr.msra.gmra.mrb[236].mxu0 %vm3646_vm2, %v7737_v8 }
 0x590   :  { %4964 = vmatprep.mubr.bf16.mxu0 %v7613_v7  ;;  %v5059_v7 = vld [vmem:[#allocation8 + $0x30] sm:$0xff] }
 0x597   :  { %5979 = vmatmul.mubr.msk.bf16.gmra.mrb[20].mxu0 %vm3646_vm2, %v7737_v8  ;;  %v5060_v8 = vld [vmem:[#allocation8 + $0x38] sm:$0xff] }
 0x598   :  { %v6924_v11 = vpack.c.bf16 %v5060_v8, %v5059_v7 }
 0x59a   :  { %6925 = vmatpush1.bf16.msra.mxu1 %v6924_v11  ;;  %v9054_v11 = vld [vmem:[%s9147_s5 + $0x18] sm:$0x1f] }
 0x59b   :  { %6926 = vmatprep.subr.bf16.mxu1 %v7615_v51 }
 0x59e   :  { %6928 = vmatpush1.bf16.msra.mxu1 %v6927_v31  ;;  %v4986_v31 = vrot.slane %v9054_v11, %v8569_v14 }
 0x59f   :  { %6929 = vmatprep.subr.bf16.mxu1 %v7615_v51 }
 0x5a2   :  { %6931 = vmatpush1.bf16.msra.mxu1 %v6930_v24 }
 0x5a3   :  { %6932 = vmatprep.subr.bf16.mxu1 %v7615_v51 }
 0x5a6   :  { %6934 = vmatpush1.bf16.msra.mxu1 %v6933_v33 }
 0x5a7   :  { %6935 = vmatprep.subr.bf16.mxu1 %v7615_v51 }
 0x5aa   :  { %6937 = vmatpush1.bf16.msra.mxu1 %v6936_v63 }
 0x5ab   :  { %6938 = vmatprep.subr.bf16.mxu1 %v7615_v51 }
 0x5ea   :  { %v4248_v54 = vpop.f32.mrb[0].mxu0 }
 0x5eb   :  { %v4259_v52 = vadd.f32 %v4248_v54, %v9016_v39  ;;  %v4250_v9 = vpop.f32.mrb[1].mxu0  ;;  %v5069_v39 = vld [vmem:[#allocation8 + $0x80] sm:$0xff] }
 0x5ec   :  { %v4260_v19 = vadd.f32 %v4250_v9, %v9018_v30  ;;  %v4252_v27 = vpop.f32.mrb[2].mxu0  ;;  %v6939_v30 = vpack.c.bf16 %v5070_v55, %v5069_v39 }
 0x5ed   :  { %v4253_v35 = vpop.f32.mrb[3].mxu0 }
 0x5ee   :  { %6940 = vmatpush1.bf16.msra.mxu1 %v6939_v30 }
 0x5ef   :  { %6941 = vmatprep.subr.bf16.mxu1 %v7615_v51 }
 0x5f2   :  { %6943 = vmatpush1.bf16.msra.mxu1 %v6942_v17 }
 0x5f3   :  { %6944 = vmatprep.subr.bf16.mxu1 %v7615_v51 }
 0x5f6   :  { %6946 = vmatpush1.bf16.msra.mxu1 %v6945_v16 }
 0x5f7   :  { %6947 = vmatprep.subr.bf16.mxu1 %v7615_v51 }
 0x5fa   :  { %v4394_v58 = vpop.f32.mrb[4].mxu0  ;;  %6949 = vmatpush1.bf16.msra.mxu1 %v6948_v5 }
 0x5fb   :  { %v4405_v53 = vadd.f32 %v4394_v58, %v4259_v52  ;;  %v4396_v18 = vpop.f32.mrb[5].mxu0  ;;  %5130 = vmatprep.subr.mxu1 %v7611_v0 }
 0x5fc   :  { %v4406_v60 = vadd.f32 %v4396_v18, %v4260_v19  ;;  %v4398_v40 = vpop.f32.mrb[6].mxu0 }
 0x5fd   :  { %v4399_v48 = vpop.f32.mrb[7].mxu0 }
 0x5fe   :  { %5131 = vmatpush1.msra.mxu1 %v5077_v15 }
 0x5ff   :  { %6950 = vmatprep.subr.bf16.mxu1 %v7615_v51 }
 0x616   :  { %v4540_v38 = vpop.f32.mrb[8].mxu0 }
 0x617   :  { %v4551_v13 = vadd.f32 %v4540_v38, %v4405_v53  ;;  %v4542_v42 = vpop.f32.mrb[9].mxu0 }
 0x618   :  { %v4552_v56 = vadd.f32 %v4542_v42, %v4406_v60  ;;  %v4544_v26 = vpop.f32.mrb[10].mxu0  ;;  %v5036_v42 = vrot.slane %v8986_v23, %v8579_v36 }
 0x619   :  { %v4545_v62 = vpop.f32.mrb[11].mxu0 }
 0x632   :  { %v4682_v3 = vpop.f32.mrb[12].mxu0 }
 0x633   :  { %v4693_v61 = vadd.f32 %v4682_v3, %v4551_v13  ;;  %v4684_v57 = vpop.f32.mrb[13].mxu0 }
 0x634   :  { %v4694_v2 = vadd.f32 %v4684_v57, %v4552_v56  ;;  %v4686_v10 = vpop.f32.mrb[14].mxu0 }
 0x635   :  { %v4687_v4 = vpop.f32.mrb[15].mxu0 }
 0x636   :  { %v5040_v4 = vrot.slane %v9054_v11, %v8579_v36  ;;  %v5160_v36 = vld [vmem:[#allocation8 + $0xd8] sm:$0xff] }
 0x64e   :  { %v4824_v22 = vpop.f32.mrb[16].mxu0 }
 0x64f   :  { %v4835_v12 = vadd.f32 %v4824_v22, %v4693_v61  ;;  %v4826_v34 = vpop.f32.mrb[17].mxu0 }
 0x650   :  { %v4836_v1 = vadd.f32 %v4826_v34, %v4694_v2  ;;  %v4828_v7 = vpop.f32.mrb[18].mxu0 }
 0x651   :  { %v4829_v8 = vpop.f32.mrb[19].mxu0  ;;  %v5050_v7 = vrot.slane %v9054_v11, %v8887_v44 }
 0x662   :  { %v4956_v25 = vpop.f32.mrb[236].mxu0 }
 0x663   :  { %v4958_v54 = vpop.f32.mrb[237].mxu0  ;;  %v4987_v46 = vadd.f32 %v4982_v50, %v4956_v25  ;;  %v5158_v25 = vld [vmem:[#allocation8 + $0xc8] sm:$0xff] }
 0x664   :  { %v4960_v28 = vpop.f32.mrb[238].mxu0  ;;  %v4988_v24 = vadd.f32 %v4986_v31, %v4958_v54 }
 0x665   :  { %v4989_v52 = vadd.f32 %v4982_v50, %v4960_v28  ;;  %v4962_v9 = vpop.f32.mrb[239].mxu0  ;;  %v4999_v41 = vmin.f32 %v4987_v46, 0.0  ;;  %vm4993_vm5 = vcmp.gt.f32.partialorder %v4987_v46, 0.0 }
 0x666   :  { %v4990_v19 = vadd.f32 %v4986_v31, %v4962_v9  ;;  %v5000_v47 = vmin.f32 %v4988_v24, 0.0  ;;  %vm4994_vm10 = vcmp.gt.f32.partialorder %v4988_v24, 0.0  ;;  %v5161_v9 = vld [vmem:[#allocation8 + $0xe0] sm:$0xff] }
 0x667   :  { %v5001_v27 = vmin.f32 %v4989_v52, 0.0  ;;  %v5005_v58 = vmul.f32 1.442695, %v4999_v41  ;;  %vm4995_vm7 = vcmp.gt.f32.partialorder %v4989_v52, 0.0 }
 0x668   :  { %v5002_v35 = vmin.f32 %v4990_v19, 0.0  ;;  %v5007_v49 = vmul.f32 1.442695, %v5000_v47  ;;  %vm4996_vm9 = vcmp.gt.f32.partialorder %v4990_v19, 0.0  ;;  %v5166_v47 = vld [vmem:[#allocation8 + $0x108] sm:$0xff] }
 0x669   :  { %v5009_v45 = vmul.f32 1.442695, %v5001_v27  ;;  %v5164_v27 = vld [vmem:[#allocation8 + $0xf8] sm:$0xff] }
 0x66a   :  { %v4966_v33 = vpop.f32.mrb[20].mxu0  ;;  %v5011_v39 = vmul.f32 1.442695, %v5002_v35  ;;  %v5165_v35 = vld [vmem:[#allocation8 + $0x100] sm:$0xff] }
 0x66b   :  { %v4977_v59 = vadd.f32 %v4966_v33, %v4835_v12  ;;  %v4968_v63 = vpop.f32.mrb[21].mxu0  ;;  %7467 = vpow2.f32 %v5009_v45  ;;  %v6960_v41 = vpack.c.bf16 %v5165_v35, %v5164_v27  ;;  %v5167_v33 = vld [vmem:[#allocation8 + $0x110] sm:$0xff]  ;;  %v5280_v27 = vld [vmem:[#allocation8 + $0x228] sm:$0xff] }
 0x66c   :  { %v4978_v55 = vadd.f32 %v4968_v63, %v4836_v1  ;;  %v4970_v30 = vpop.f32.mrb[22].mxu0  ;;  %7469 = vpow2.f32 %v5011_v39  ;;  %v6963_v45 = vpack.c.bf16 %v5167_v33, %v5166_v47  ;;  %v5169_v63 = vld [vmem:[#allocation8 + $0x120] sm:$0xff]  ;;  %v5282_v47 = vld [vmem:[#allocation8 + $0x238] sm:$0xff] }
 0x66d   :  { %v4991_v14 = vadd.f32 %v4982_v50, %v4977_v59  ;;  %v4971_v43 = vpop.f32.mrb[23].mxu0  ;;  %7471 = vpow2.f32 %v5005_v58  ;;  %v5046_v50 = vrot.slane %v8986_v23, %v8887_v44  ;;  %v6954_v44 = vpack.c.bf16 %v5161_v9, %v5160_v36  ;;  %v5162_v23 = vld [vmem:[#allocation8 + $0xe8] sm:$0xff]  ;;  %v5168_v59 = vld [vmem:[#allocation8 + $0x118] sm:$0xff]  ;;  %v5171_v30 = vld [vmem:[#allocation8 + $0x130] sm:$0xff] }
 0x66e   :  { %v4992_v53 = vadd.f32 %v4986_v31, %v4978_v55  ;;  %7473 = vpow2.f32 %v5007_v49  ;;  %v5159_v31 = vld [vmem:[#allocation8 + $0xd0] sm:$0xff]  ;;  %v6966_v39 = vpack.c.bf16 %v5169_v63, %v5168_v59  ;;  %v5170_v55 = vld [vmem:[#allocation8 + $0x128] sm:$0xff]  ;;  %v5173_v43 = vld [vmem:[#allocation8 + $0x140] sm:$0xff] }
 0x66f   :  { %v5003_v18 = vmin.f32 %v4991_v14, 0.0  ;;  %vm4997_vm8 = vcmp.gt.f32.partialorder %v4991_v14, 0.0  ;;  %v6969_v58 = vpack.c.bf16 %v5171_v30, %v5170_v55  ;;  %v5275_v36 = vld [vmem:[#allocation8 + $0x200] sm:$0xff]  ;;  %v5276_v9 = vld [vmem:[#allocation8 + $0x208] sm:$0xff]  ;;  %v5285_v30 = vld [vmem:[#allocation8 + $0x250] sm:$0xff] }
 0x670   :  { %v5004_v17 = vmin.f32 %v4992_v53, 0.0  ;;  %vm4998_vm0 = vcmp.gt.f32.partialorder %v4992_v53, 0.0  ;;  %v5284_v59 = vld [vmem:[#allocation8 + $0x248] sm:$0xff]  ;;  %v5364_v55 = vld [vmem:[#allocation8 + $0x260] sm:$0xff] }
 0x671   :  { %v5013_v60 = vmul.f32 1.442695, %v5003_v18  ;;  %v5175_v18 = vld [vmem:[#allocation8 + $0x150] sm:$0xff] }
 0x672   :  { %v5015_v40 = vmul.f32 1.442695, %v5004_v17 }
 0x673   :  { %7475 = vpow2.f32 %v5013_v60  ;;  %v5176_v60 = vld [vmem:[#allocation8 + $0x158] sm:$0xff] }
 0x674   :  { %7477 = vpow2.f32 %v5015_v40  ;;  %v5177_v40 = vld [vmem:[#allocation8 + $0x160] sm:$0xff] }
 0x675   :  { %v7468_v48 = vpop.eup %7467 }
 0x676   :  { %v7470_v6 = vpop.eup %7469  ;;  %v5982_v37 = vadd.f32 -1.0, %v7468_v48  ;;  %v6978_v48 = vpack.c.bf16 %v5177_v40, %v5176_v60  ;;  %v5368_v60 = vld [vmem:[#allocation8 + $0x280] sm:$0xff] }
 0x677   :  { %v7472_v20 = vpop.eup %7471  ;;  %v5983_v5 = vadd.f32 -1.0, %v7470_v6  ;;  %v5178_v6 = vld [vmem:[#allocation8 + $0x168] sm:$0xff] }
 0x678   :  { %v7474_v16 = vpop.eup %7473  ;;  %v5980_v38 = vadd.f32 -1.0, %v7472_v20  ;;  %v5025_v62 = vsel %vm4995_vm7, %v4989_v52, %v5982_v37  ;;  %v5179_v20 = vld [vmem:[#allocation8 + $0x170] sm:$0xff]  ;;  %v5180_v37 = vld [vmem:[#allocation8 + $0x178] sm:$0xff] }
 0x679   :  { %v5981_v56 = vadd.f32 -1.0, %v7474_v16  ;;  %v5026_v61 = vsel %vm4996_vm9, %v4990_v19, %v5983_v5  ;;  %v6981_v16 = vpack.c.bf16 %v5179_v20, %v5178_v6  ;;  %v5370_v6 = vld [vmem:[#allocation8 + $0x290] sm:$0xff] }
 0x67a   :  { %v5023_v10 = vsel %vm4993_vm5, %v4987_v46, %v5980_v38  ;;  %v6951_v46 = vpack.c.bf16 %v5159_v31, %v5158_v25  ;;  %v5262_v38 = vld [vmem:[#allocation8 + $0x198] sm:$0xff]  ;;  %v5273_v31 = vld [vmem:[#allocation8 + $0x1f0] sm:$0xff] }
 0x67b   :  { %v5024_v12 = vsel %vm4994_vm10, %v4988_v24, %v5981_v56  ;;  %v5163_v24 = vld [vmem:[#allocation8 + $0xf0] sm:$0xff] }
 0x67c   :  { %v6957_v19 = vpack.c.bf16 %v5163_v24, %v5162_v23  ;;  %v5278_v23 = vld [vmem:[#allocation8 + $0x218] sm:$0xff] }
 0x67d   :  { %v7476_v32 = vpop.eup %7475 }
 0x67e   :  { %v7478_v15 = vpop.eup %7477  ;;  %v5984_v13 = vadd.f32 -1.0, %v7476_v32  ;;  %v5181_v32 = vld [vmem:[#allocation8 + $0x180] sm:$0xff] }
 0x67f   :  { %v5985_v26 = vadd.f32 -1.0, %v7478_v15  ;;  %v6984_v5 = vpack.c.bf16 %v5181_v32, %v5180_v37  ;;  %v5261_v15 = vld [vmem:[#allocation8 + $0x190] sm:$0xff]  ;;  %v5373_v32 = vld [vmem:[#allocation8 + $0x2a8] sm:$0xff] }
 0x680   :  { %v5027_v3 = vsel %vm4997_vm8, %v4991_v14, %v5984_v13  ;;  %v5172_v14 = vld [vmem:[#allocation8 + $0x138] sm:$0xff]  ;;  %v5182_v13 = vld [vmem:[#allocation8 + $0x188] sm:$0xff] }
 0x681   :  { %v5029_v57 = vmax.f32 %v5025_v62, %v5027_v3  ;;  %v5028_v2 = vsel %vm4998_vm0, %v4992_v53, %v5985_v26  ;;  %v6972_v49 = vpack.c.bf16 %v5173_v43, %v5172_v14  ;;  %v5174_v53 = vld [vmem:[#allocation8 + $0x148] sm:$0xff]  ;;  %v5263_v26 = vld [vmem:[#allocation8 + $0x1a0] sm:$0xff] }
 0x682   :  { %v5030_v22 = vmax.f32 %v5026_v61, %v5028_v2  ;;  %v6975_v17 = vpack.c.bf16 %v5175_v18, %v5174_v53  ;;  %v5264_v62 = vld [vmem:[#allocation8 + $0x1a8] sm:$0xff]  ;;  %v5266_v2 = vld [vmem:[#allocation8 + $0x1b8] sm:$0xff] }
 0x683   :  { %v5031_v34 = vmax.f32 %v5023_v10, %v5029_v57  ;;  %v6990_v61 = vpack.c.bf16 %v5264_v62, %v5263_v26  ;;  %v5265_v57 = vld [vmem:[#allocation8 + $0x1b0] sm:$0xff]  ;;  %v5365_v43 = vld [vmem:[#allocation8 + $0x268] sm:$0xff] }
 0x684   :  { %v5032_v1 = vmax.f32 %v5024_v12, %v5030_v22  ;;  %v6993_v10 = vpack.c.bf16 %v5266_v2, %v5265_v57  ;;  %v5268_v22 = vld [vmem:[#allocation8 + $0x1c8] sm:$0xff]  ;;  %v5378_v26 = vld [vmem:[#allocation8 + $0x2d0] sm:$0xff] }
 0x685   :  { %v5041_v8 = vmul.f32 %v5036_v42, %v5031_v34  ;;  %v6987_v42 = vpack.c.bf16 %v5262_v38, %v5261_v15  ;;  %v5269_v34 = vld [vmem:[#allocation8 + $0x1d0] sm:$0xff]  ;;  %v5375_v38 = vld [vmem:[#allocation8 + $0x2b8] sm:$0xff]  ;;  %v5381_v2 = vld [vmem:[#allocation8 + $0x2e8] sm:$0xff] }
 0x686   :  { %v5042_v54 = vmul.f32 %v5040_v4, %v5032_v1  ;;  %v5267_v4 = vld [vmem:[#allocation8 + $0x1c0] sm:$0xff]  ;;  %v5270_v1 = vld [vmem:[#allocation8 + $0x1d8] sm:$0xff] }
 0x687   :  { %v9070_v52 = vadd.f32 %v5046_v50, %v5041_v8  ;;  %v6996_v12 = vpack.c.bf16 %v5268_v22, %v5267_v4  ;;  %v5271_v8 = vld [vmem:[#allocation8 + $0x1e0] sm:$0xff]  ;;  %v5272_v50 = vld [vmem:[#allocation8 + $0x1e8] sm:$0xff]  ;;  %v5383_v22 = vld [vmem:[#allocation8 + $0x2f8] sm:$0xff] }
 0x688   :  { %v9068_v28 = vadd.f32 %v5050_v7, %v5042_v54  ;;  %v6999_v7 = vpack.c.bf16 %v5270_v1, %v5269_v34  ;;  %v7002_v25 = vpack.c.bf16 %v5272_v50, %v5271_v8  ;;  %v5274_v54 = vld [vmem:[#allocation8 + $0x1f8] sm:$0xff]  ;;  %v5385_v1 = vld [vmem:[#allocation8 + $0x308] sm:$0xff] }
 0x689   :  { %v5184_v56 = vrot.slane %v9070_v52, 2  ;;  %v5286_v14 = vrot.slane %v9070_v52, 4  ;;  %v5387_v50 = vld [vmem:[#allocation8 + $0x318] sm:$0xff] }
 0x68a   :  { %5986 = vmatprep.mubr.msk.f32.mxu1 %vm5078_vm11, %v9068_v28  ;;  %v5185_v11 = vrot.slane %v9068_v28, 2  ;;  %v5287_v3 = vrot.slane %v9068_v28, 4  ;;  %v5389_v53 = vrot.slane %v9068_v28, 6  ;;  %v5371_v28 = vld [vmem:[#allocation8 + $0x298] sm:$0xff] }
 0x68b   :  { %5147 = vmatmul.mubr.f32.vlgmr.msra.gmra.mrb[28].mxu1 %v9070_v52 }
 0x68c   :  { %6952 = vmatpush1.bf16.msra.mxu1 %v6951_v46  ;;  %5987 = vmatprep.mubr.msk.f32.mxu1 %vm5078_vm11, %v5185_v11  ;;  %v7005_v46 = vpack.c.bf16 %v5274_v54, %v5273_v31  ;;  %v7008_v11 = vpack.c.bf16 %v5276_v9, %v5275_v36  ;;  %v7484_v31 = vld [vmem:[%s9147_s5 + $0x10] sm:$0x1f]  ;;  %s7616_s5 = smov [#allocation10]  }
 0x68d   :  { %6953 = vmatprep.subr.bf16.mxu1 %v7615_v51  ;;  %v5155_v54 = vrot.slane %v7484_v31, %v2653_v29  ;;  %s5483_s4 = sshll.u32 %s7616_s5, 4  ;;  %s5484_s4 = int_to_ptr.vmem [resolvable:$true] %s5483_s4 }
 0x68e   :  { %s7573_s25 = scalar_lea.vmem %s5484_s4, 32  ;;  %p7578_p5 = scmp.lt.s32.totalorder %s5484_s4, %s5484_s4 }
 0x68f   :  { %p7574_p4 = scmp.ne.s32.totalorder %s5484_s4, %s7573_s25  ;;  %p7579_p6 = scmp.lt.s32.totalorder %s7573_s25, %s7573_s25 }
 0x690   :  { %6955 = vmatpush1.bf16.msra.mxu1 %v6954_v44  ;;  %v5277_v44 = vld [vmem:[#allocation8 + $0x210] sm:$0xff] }
 0x691   :  { %6956 = vmatprep.subr.bf16.mxu1 %v7615_v51  ;;  %v7011_v24 = vpack.c.bf16 %v5278_v23, %v5277_v44  ;;  %p7580_p7 = por %p7579_p6, %p7578_p5 }
 0x693   :  { %p7581_p8 = pnand %p7580_p7, %p7574_p4 }
 0x694   :  { %6958 = vmatpush1.bf16.msra.mxu1 %v6957_v19  ;;  %v5279_v19 = vld [vmem:[#allocation8 + $0x220] sm:$0xff] }
 0x695   :  { %6959 = vmatprep.subr.bf16.mxu1 %v7615_v51  ;;  %v7014_v35 = vpack.c.bf16 %v5280_v27, %v5279_v19 }
 0x698   :  { %6961 = vmatpush1.bf16.msra.mxu1 %v6960_v41  ;;  %v5281_v41 = vld [vmem:[#allocation8 + $0x230] sm:$0xff] }
 0x699   :  { %6962 = vmatprep.subr.bf16.mxu1 %v7615_v51  ;;  %v7017_v33 = vpack.c.bf16 %v5282_v47, %v5281_v41 }
 0x69c   :  { %6964 = vmatpush1.bf16.msra.mxu1 %v6963_v45  ;;  %v5283_v45 = vld [vmem:[#allocation8 + $0x240] sm:$0xff] }
 0x69d   :  { %6965 = vmatprep.subr.bf16.mxu1 %v7615_v51  ;;  %v7020_v63 = vpack.c.bf16 %v5284_v59, %v5283_v45 }
 0x6a0   :  { %6967 = vmatpush1.bf16.msra.mxu1 %v6966_v39  ;;  %v5363_v39 = vld [vmem:[#allocation8 + $0x258] sm:$0xff] }
 0x6a1   :  { %6968 = vmatprep.subr.bf16.mxu1 %v7615_v51 }
 0x6a4   :  { %6970 = vmatpush1.bf16.msra.mxu1 %v6969_v58  ;;  %v7023_v58 = vpack.c.bf16 %v5364_v55, %v5363_v39 }
 0x6a5   :  { %6971 = vmatprep.subr.bf16.mxu1 %v7615_v51 }
 0x6a8   :  { %6973 = vmatpush1.bf16.msra.mxu1 %v6972_v49  ;;  %v5366_v49 = vld [vmem:[#allocation8 + $0x270] sm:$0xff] }
 0x6a9   :  { %6974 = vmatprep.subr.bf16.mxu1 %v7615_v51  ;;  %v7026_v18 = vpack.c.bf16 %v5366_v49, %v5365_v43 }
 0x6ac   :  { %6976 = vmatpush1.bf16.msra.mxu1 %v6975_v17  ;;  %v5367_v17 = vld [vmem:[#allocation8 + $0x278] sm:$0xff] }
 0x6ad   :  { %6977 = vmatprep.subr.bf16.mxu1 %v7615_v51  ;;  %v7029_v40 = vpack.c.bf16 %v5368_v60, %v5367_v17 }
 0x6b0   :  { %6979 = vmatpush1.bf16.msra.mxu1 %v6978_v48  ;;  %v5369_v48 = vld [vmem:[#allocation8 + $0x288] sm:$0xff] }
 0x6b1   :  { %6980 = vmatprep.subr.bf16.mxu1 %v7615_v51  ;;  %v7032_v20 = vpack.c.bf16 %v5370_v6, %v5369_v48 }
 0x6b4   :  { %6982 = vmatpush1.bf16.msra.mxu1 %v6981_v16  ;;  %v5372_v16 = vld [vmem:[#allocation8 + $0x2a0] sm:$0xff] }
 0x6b5   :  { %6983 = vmatprep.subr.bf16.mxu1 %v7615_v51  ;;  %v7035_v37 = vpack.c.bf16 %v5372_v16, %v5371_v28 }
 0x6b8   :  { %6985 = vmatpush1.bf16.msra.mxu1 %v6984_v5  ;;  %v5374_v5 = vld [vmem:[#allocation8 + $0x2b0] sm:$0xff] }
 0x6b9   :  { %5237 = vmatprep.subr.mxu1 %v7611_v0  ;;  %v7038_v15 = vpack.c.bf16 %v5374_v5, %v5373_v32 }
 0x6bc   :  { %5238 = vmatpush1.msra.mxu1 %v5182_v13  ;;  %v5376_v13 = vld [vmem:[#allocation8 + $0x2c0] sm:$0xff] }
 0x6bd   :  { %5254 = vmatmul.mubr.f32.vlgmr.msra.gmra.mrb[28].mxu1 %v5184_v56  ;;  %6986 = vmatprep.subr.bf16.mxu1 %v7615_v51  ;;  %v5377_v56 = vld [vmem:[#allocation8 + $0x2c8] sm:$0xff] }
 0x6be   :  { %6988 = vmatpush1.bf16.msra.mxu1 %v6987_v42  ;;  %5988 = vmatprep.mubr.msk.f32.mxu1 %vm5078_vm11, %v5287_v3  ;;  %v7041_v42 = vpack.c.bf16 %v5376_v13, %v5375_v38  ;;  %v7044_v62 = vpack.c.bf16 %v5378_v26, %v5377_v56  ;;  %v5379_v3 = vld [vmem:[#allocation8 + $0x2d8] sm:$0xff] }
 0x6bf   :  { %6989 = vmatprep.subr.bf16.mxu1 %v7615_v51 }
 0x6c2   :  { %6991 = vmatpush1.bf16.msra.mxu1 %v6990_v61  ;;  %v5380_v61 = vld [vmem:[#allocation8 + $0x2e0] sm:$0xff] }
 0x6c3   :  { %6992 = vmatprep.subr.bf16.mxu1 %v7615_v51  ;;  %v7047_v57 = vpack.c.bf16 %v5380_v61, %v5379_v3 }
 0x6c6   :  { %6994 = vmatpush1.bf16.msra.mxu1 %v6993_v10  ;;  %v5382_v10 = vld [vmem:[#allocation8 + $0x2f0] sm:$0xff] }
 0x6c7   :  { %6995 = vmatprep.subr.bf16.mxu1 %v7615_v51  ;;  %v7050_v4 = vpack.c.bf16 %v5382_v10, %v5381_v2 }
 0x6ca   :  { %6997 = vmatpush1.bf16.msra.mxu1 %v6996_v12  ;;  %v5384_v12 = vld [vmem:[#allocation8 + $0x300] sm:$0xff] }
 0x6cb   :  { %6998 = vmatprep.subr.bf16.mxu1 %v7615_v51  ;;  %v7053_v34 = vpack.c.bf16 %v5384_v12, %v5383_v22 }
 0x6ce   :  { %7000 = vmatpush1.bf16.msra.mxu1 %v6999_v7  ;;  %v5386_v7 = vld [vmem:[#allocation8 + $0x310] sm:$0xff] }
 0x6cf   :  { %7001 = vmatprep.subr.bf16.mxu1 %v7615_v51  ;;  %v7056_v8 = vpack.c.bf16 %v5386_v7, %v5385_v1 }
 0x6d2   :  { %7003 = vmatpush1.bf16.msra.mxu1 %v7002_v25  ;;  %v5388_v25 = vrot.slane %v9070_v52, 6 }
 0x6d3   :  { %7004 = vmatprep.subr.bf16.mxu1 %v7615_v51 }
 0x6d6   :  { %7006 = vmatpush1.bf16.msra.mxu1 %v7005_v46 }
 0x6d7   :  { %7007 = vmatprep.subr.bf16.mxu1 %v7615_v51 }
 0x6da   :  { %7009 = vmatpush1.bf16.msra.mxu1 %v7008_v11 }
 0x6db   :  { %7010 = vmatprep.subr.bf16.mxu1 %v7615_v51 }
 0x6de   :  { %7012 = vmatpush1.bf16.msra.mxu1 %v7011_v24 }
 0x6df   :  { %7013 = vmatprep.subr.bf16.mxu1 %v7615_v51 }
 0x6e2   :  { %7015 = vmatpush1.bf16.msra.mxu1 %v7014_v35 }
 0x6e3   :  { %7016 = vmatprep.subr.bf16.mxu1 %v7615_v51 }
 0x6e6   :  { %7018 = vmatpush1.bf16.msra.mxu1 %v7017_v33 }
 0x6e7   :  { %7019 = vmatprep.subr.bf16.mxu1 %v7615_v51 }
 0x6ea   :  { %7021 = vmatpush1.bf16.msra.mxu1 %v7020_v63 }
 0x6eb   :  { %5339 = vmatprep.subr.mxu1 %v7611_v0 }
 0x6ee   :  { %5340 = vmatpush1.msra.mxu1 %v5285_v30 }
 0x6ef   :  { %5356 = vmatmul.mubr.f32.vlgmr.msra.gmra.mrb[28].mxu1 %v5286_v14  ;;  %7022 = vmatprep.subr.bf16.mxu1 %v7615_v51 }
 0x6f0   :  { %7024 = vmatpush1.bf16.msra.mxu1 %v7023_v58  ;;  %5989 = vmatprep.mubr.msk.f32.mxu1 %vm5078_vm11, %v5389_v53 }
 0x6f1   :  { %7025 = vmatprep.subr.bf16.mxu1 %v7615_v51 }
 0x6f4   :  { %7027 = vmatpush1.bf16.msra.mxu1 %v7026_v18 }
 0x6f5   :  { %7028 = vmatprep.subr.bf16.mxu1 %v7615_v51 }
 0x6f8   :  { %7030 = vmatpush1.bf16.msra.mxu1 %v7029_v40 }
 0x6f9   :  { %7031 = vmatprep.subr.bf16.mxu1 %v7615_v51 }
 0x6fc   :  { %7033 = vmatpush1.bf16.msra.mxu1 %v7032_v20 }
 0x6fd   :  { %7034 = vmatprep.subr.bf16.mxu1 %v7615_v51 }
 0x700   :  { %7036 = vmatpush1.bf16.msra.mxu1 %v7035_v37 }
 0x701   :  { %7037 = vmatprep.subr.bf16.mxu1 %v7615_v51 }
 0x704   :  { %7039 = vmatpush1.bf16.msra.mxu1 %v7038_v15 }
 0x705   :  { %7040 = vmatprep.subr.bf16.mxu1 %v7615_v51 }
 0x708   :  { %7042 = vmatpush1.bf16.msra.mxu1 %v7041_v42 }
 0x709   :  { %7043 = vmatprep.subr.bf16.mxu1 %v7615_v51 }
 0x70c   :  { %7045 = vmatpush1.bf16.msra.mxu1 %v7044_v62 }
 0x70d   :  { %7046 = vmatprep.subr.bf16.mxu1 %v7615_v51 }
 0x710   :  { %7048 = vmatpush1.bf16.msra.mxu1 %v7047_v57 }
 0x711   :  { %7049 = vmatprep.subr.bf16.mxu1 %v7615_v51 }
 0x714   :  { %7051 = vmatpush1.bf16.msra.mxu1 %v7050_v4 }
 0x715   :  { %7052 = vmatprep.subr.bf16.mxu1 %v7615_v51 }
 0x718   :  { %7054 = vmatpush1.bf16.msra.mxu1 %v7053_v34 }
 0x719   :  { %7055 = vmatprep.subr.bf16.mxu1 %v7615_v51 }
 0x71c   :  { %7057 = vmatpush1.bf16.msra.mxu1 %v7056_v8 }
 0x71d   :  { %5441 = vmatprep.subr.mxu1 %v7611_v0 }
 0x720   :  { %5442 = vmatpush1.msra.mxu1 %v5387_v50 }
 0x721   :  { %5458 = vmatmul.mubr.f32.vlgmr.msra.gmra.mrb[28].mxu1 %v5388_v25 }
 0x7f4   :  { %v5459_v46 = vpop.f32.mrb[28].mxu1 }
 0x7f5   :  { %v7066_v36 = vadd.f32 %v5459_v46, %v5155_v54  ;;  %v5461_v9 = vpop.f32.mrb[29].mxu1 }
 0x7f7   :  { %v5465_v51 = vsel %vm5464_vm12, %v7066_v36, -inf }
 0x7f8   :  { %5466 = vmax.xlane.f32.xlu0 %v5465_v51 }
 0x885   :  { %v5467_v0 = vpop.xlane.xlu0 %5466 }
 0x886   :  { %v5468_v11 = vsub.f32 %v7066_v36, %v5467_v0 }
 0x888   :  { %v5469_v44 = vmul.f32 1.442695, %v5468_v11 }
 0x88a   :  { %7479 = vpow2.f32 %v5469_v44 }
 0x894   :  { %v7480_v52 = vpop.eup %7479 }
 0x895   :  { %v5471_v23 = vsel %vm5464_vm12, %v7480_v52, 0.0 }
 0x896   :  { %5472 = vadd.xlane.f32.xlu0 %v5471_v23 }
 0x923   :  { %v5473_v24 = vpop.xlane.xlu0 %5472 }
 0x924   :  { %7481 = vrcp.f32 %v5473_v24 }
 0x92e   :  { %v7482_v21 = vpop.eup %7481 }
 0x92f   :  { %v5475_v29 = vmul.f32 %v7482_v21, %v7480_v52 }
 0x931   :  { %5476 = vst.msk [vmem:[#allocation10] sm:$0x3] %vm5464_vm12, %v5475_v29 }
 0x932   :  { %7584 = shalt.err (!%p7581_p8)
}
 0x933   :  { %s7585_s28 = scalar_lea.hbm %s9149_s7, 32 }
 0x934   :  { %p7586_p9 = scmp.ne.s32.totalorder %s9149_s7, %s7585_s28  ;;  %p7589_p10 = scmp.lt.u32.totalorder %s7585_s28, %s9149_s7 }
 0x936   :  { %p7591_p11 = pnand %p7589_p10, %p7586_p9 }
 0x938   :  { %7594 = shalt.err (!%p7591_p11)
}
 0x939   :  { %5486 = dma.vmem_to_hbm [thread:$0]  %s5484_s4, 32, %s9149_s7, [#allocation4]  }
 0x93a   :  { %7601 = dma.done.wait [#allocation4], 32  }
 0x93b   :  { %7602 = vsyncadd [#allocation4], 4294967264 }
 0x93c   :  { %5490 = vsyncpa [#allocation3], 1 }
 0x93d   :  { %5491 = vsyncpa [#allocation6], 1 }
 0x93e   :  { %5492 = vsyncpa [#allocation9], 1 }
 0x93f   :  { %5493 = vsyncpa [#allocation4], 1 }

</bundles_post_ra>
